<compile_context>
chip_gen: v6e
topology: v6e:2x2x1
jax: 0.10.0
libtpu: 0.0.40
codegen_flags: <defaults>
</compile_context>

<pallas_src>
import numpy as np
import jax
import jax.numpy as jnp
from jax.experimental import pallas as pl
from jax.experimental.pallas import tpu as pltpu

L = 19             # sequence length implied by fc1 = Linear(128 * 19, 256)
LP = 24            # L padded to a multiple of 8 sublanes
C1, C2 = 64, 128   # conv channel counts
H1, H2 = 256, 128  # fc hidden sizes
NUM_CLASSES = 10
OUT_PAD = 128      # lane-dense padded class dim


def cnn_kernel(x_ref, w1_ref, b1_ref, w2_ref, b2_ref,
               wfc1_ref, bfc1_ref, wfc2_ref, bfc2_ref, wfc3_ref, bfc3_ref,
               out_ref):
    TB = out_ref.shape[0]
    f32, bf16 = jnp.float32, jnp.bfloat16

    xp = x_ref[...]                                    # (TB, LP+2, 1) f32
    w1 = w1_ref[...]                                   # (3, C1)      f32

    # ---- conv1 on the VPU: 3 shifted FMAs over the 24-row padded window ----
    h1 = xp[:, 0:LP, :] * w1[0:1, :][None]
    h1 = h1 + xp[:, 1:LP + 1, :] * w1[1:2, :][None]
    h1 = h1 + xp[:, 2:LP + 2, :] * w1[2:3, :][None]
    h1 = jnp.maximum(h1 + b1_ref[...][None], 0.0)      # (TB, LP, C1) f32
    # zero the pad rows (l >= 19) so the shifted conv2 taps see zero padding
    lmask = jax.lax.broadcasted_iota(jnp.int32, (1, LP, 1), 1) < L
    h1 = jnp.where(lmask, h1, 0.0)

    # ---- conv2: 3 accumulating K=64 matmuls on in-register shifted taps ----
    h1b = h1.reshape(TB * LP, C1).astype(bf16)         # layout-preserving (LP % 8 == 0)
    zrow = jnp.zeros((1, C1), bf16)
    t_prev = jnp.concatenate([zrow, h1b[:-1, :]], axis=0)   # row r -> h1 row r-1
    t_next = jnp.concatenate([h1b[1:, :], zrow], axis=0)    # row r -> h1 row r+1
    h2 = jnp.dot(t_prev, w2_ref[0], preferred_element_type=f32)
    h2 = h2 + jnp.dot(h1b, w2_ref[1], preferred_element_type=f32)
    h2 = h2 + jnp.dot(t_next, w2_ref[2], preferred_element_type=f32)
    h2 = jnp.maximum(h2 + b2_ref[...], 0.0).astype(bf16)    # (TB*LP, C2)

    # ---- fc1 as ONE K=2432 contraction (l-major flatten via lane concat) ----
    h2_3d = h2.reshape(TB, LP, C2)                     # layout-preserving
    h2f = jnp.concatenate([h2_3d[:, l, :] for l in range(L)], axis=-1)  # (TB, 2432) bf16
    a1 = jnp.dot(h2f, wfc1_ref[...], preferred_element_type=f32)
    a1 = jnp.maximum(a1 + bfc1_ref[...], 0.0).astype(bf16)   # (TB, H1)

    # ---- fc2 / fc3 (fc3 padded to 128 output lanes) ----
    a2 = jnp.maximum(jnp.dot(a1, wfc2_ref[...], preferred_element_type=f32)
                     + bfc2_ref[...], 0.0).astype(bf16)      # (TB, H2)
    logits = jnp.dot(a2, wfc3_ref[...],
                     preferred_element_type=f32) + bfc3_ref[...]   # (TB, 128) f32

    # ---- softmax over the lane-dense class axis; pad lanes carry -1e30 ----
    m = jnp.max(logits, axis=-1, keepdims=True)
    e = jnp.exp(logits - m)
    inv = pl.reciprocal(jnp.sum(e, axis=-1, keepdims=True), approx=True)
    out_ref[...] = e * inv


def _round_up(n, m):
    return ((n + m - 1) // m) * m


def cnn_forward(x, params, *, tb=None):
    """x: (B, 1, L) float32, NCL like the PyTorch input."""
    (w1, b1, w2, b2, wfc1, bfc1, wfc2, bfc2, wfc3, bfc3) = params
    B = x.shape[0]
    if tb is None:
        # fill the MXU M dim but cap at 256 so B > 256 keeps nb >= 2 (v7x: two
        # TCs share the grid and VMEM is 64 MiB/core); no dead rows for small B
        tb = min(256, _round_up(B, 8))
    tb = max(8, _round_up(min(tb, _round_up(B, 8)), 8))
    nb = pl.cdiv(B, tb)
    b_pad = nb * tb

    # input prep: conv zero-pad (1 left) + pad length to LP+2, pad batch to a
    # tile multiple, trailing singleton dim for the in-kernel lane broadcast
    x_sq = jnp.pad(x[:, 0, :], ((0, b_pad - B), (1, LP - L + 1)))   # (b_pad, LP+2)
    x_in = x_sq[:, :, None]                                         # (b_pad, LP+2, 1)

    # weight layout prep (channels-last, lane-dense, matmul weights in bf16)
    w1t = jnp.transpose(w1[:, 0, :])                                # (3, C1) f32
    w2k = jnp.transpose(w2, (2, 1, 0)).astype(jnp.bfloat16)         # (3, C1, C2)
    # torch fc1 flat index is c*19 + l; kernel flatten is l*128 + c -> regroup
    wfc1_lc = (wfc1.T.reshape(C2, L, H1).transpose(1, 0, 2)
               .reshape(L * C2, H1)).astype(jnp.bfloat16)           # (2432, H1)
    wfc2_t = wfc2.T.astype(jnp.bfloat16)                            # (H1, H2)
    # pad fc3 to 128 lanes; pad bias -1e30 (f32) so padded softmax lanes -> 0
    wfc3_p = (jnp.zeros((H2, OUT_PAD), jnp.float32)
              .at[:, :NUM_CLASSES].set(wfc3.T)).astype(jnp.bfloat16)
    bfc3_p = jnp.full((1, OUT_PAD), -1e30, jnp.float32).at[0, :NUM_CLASSES].set(bfc3)

    def const(shape):
        return pl.BlockSpec(shape, lambda i: (0,) * len(shape))

    grid_spec = pltpu.PrefetchScalarGridSpec(
        num_scalar_prefetch=0,
        grid=(nb,),
        in_specs=[
            pl.BlockSpec((tb, LP + 2, 1), lambda i: (i, 0, 0)),     # activations
            const((3, C1)), const((1, C1)),                         # conv1 w, b
            const((3, C1, C2)), const((1, C2)),                     # conv2 w, b
            const((L * C2, H1)), const((1, H1)),                    # fc1 w, b
            const((H1, H2)), const((1, H2)),                        # fc2 w, b
            const((H2, OUT_PAD)), const((1, OUT_PAD)),              # fc3 w, b (padded)
        ],
        out_specs=pl.BlockSpec((tb, OUT_PAD), lambda i: (i, 0)),
    )

    out_padded = pl.pallas_call(
        cnn_kernel,
        out_shape=jax.ShapeDtypeStruct((b_pad, OUT_PAD), jnp.float32),
        grid_spec=grid_spec,
        compiler_params=pltpu.CompilerParams(
            dimension_semantics=("parallel",),
            vmem_limit_bytes=48 * 1024 * 1024,
        ),
    )(x_in, w1t, b1.reshape(1, C1), w2k, b2.reshape(1, C2),
      wfc1_lc, bfc1.reshape(1, H1), wfc2_t, bfc2.reshape(1, H2),
      wfc3_p, bfc3_p)

    return out_padded[:B, :NUM_CLASSES]


def cnn_reference(x, params):
    """Pure-JAX f32 reference matching the PyTorch forward exactly."""
    (w1, b1, w2, b2, wfc1, bfc1, wfc2, bfc2, wfc3, bfc3) = params
    dn = ('NCH', 'OIH', 'NCH')
    h = jax.lax.conv_general_dilated(x, w1, (1,), [(1, 1)], dimension_numbers=dn)
    h = jax.nn.relu(h + b1[None, :, None])
    h = jax.lax.conv_general_dilated(h, w2, (1,), [(1, 1)], dimension_numbers=dn)
    h = jax.nn.relu(h + b2[None, :, None])
    h = h.reshape(x.shape[0], -1)                       # (B, 128*19), c-major
    h = jax.nn.relu(h @ wfc1.T + bfc1)
    h = jax.nn.relu(h @ wfc2.T + bfc2)
    logits = h @ wfc3.T + bfc3
    return jax.nn.softmax(logits, axis=1)


def init_params(key):
    ks = jax.random.split(key, 10)
    s = 0.1
    w1 = jax.random.normal(ks[0], (C1, 1, 3), jnp.float32) * s
    b1 = jax.random.normal(ks[1], (C1,), jnp.float32) * s
    w2 = jax.random.normal(ks[2], (C2, C1, 3), jnp.float32) * s
    b2 = jax.random.normal(ks[3], (C2,), jnp.float32) * s
    wfc1 = jax.random.normal(ks[4], (H1, C2 * L), jnp.float32) * s
    bfc1 = jax.random.normal(ks[5], (H1,), jnp.float32) * s
    wfc2 = jax.random.normal(ks[6], (H2, H1), jnp.float32) * s
    bfc2 = jax.random.normal(ks[7], (H2,), jnp.float32) * s
    wfc3 = jax.random.normal(ks[8], (NUM_CLASSES, H2), jnp.float32) * s
    bfc3 = jax.random.normal(ks[9], (NUM_CLASSES,), jnp.float32) * s
    return (w1, b1, w2, b2, wfc1, bfc1, wfc2, bfc2, wfc3, bfc3)


if __name__ == "__main__":
    key = jax.random.PRNGKey(0)
    pkey, xkey = jax.random.split(key)
    params = init_params(pkey)
    x = jax.random.normal(xkey, (2, 1, L), jnp.float32)   # (B=2, C=1, L=19)

    out = jax.block_until_ready(cnn_forward(x, params))
    ref = jax.block_until_ready(cnn_reference(x, params))

    # bf16 matmul operands (f32 accumulation): relaxed tolerance vs f32 ref.
    np.testing.assert_allclose(np.asarray(out), np.asarray(ref),
                               rtol=2e-2, atol=2e-2)
    assert out.shape == (2, NUM_CLASSES)
    print("KERNEL_OK")
</pallas_src>

<mosaic_0001>
module attributes {stable_mosaic.version = 11 : i64} {
  func.func @cnn_kernel(%arg0: i32, %arg1: memref<8x26x1xf32, #tpu.memory_space<vmem>>, %arg2: memref<3x64xf32, #tpu.memory_space<vmem>>, %arg3: memref<1x64xf32, #tpu.memory_space<vmem>>, %arg4: memref<3x64x128xbf16, #tpu.memory_space<vmem>>, %arg5: memref<1x128xf32, #tpu.memory_space<vmem>>, %arg6: memref<2432x256xbf16, #tpu.memory_space<vmem>>, %arg7: memref<1x256xf32, #tpu.memory_space<vmem>>, %arg8: memref<256x128xbf16, #tpu.memory_space<vmem>>, %arg9: memref<1x128xf32, #tpu.memory_space<vmem>>, %arg10: memref<128x128xbf16, #tpu.memory_space<vmem>>, %arg11: memref<1x128xf32, #tpu.memory_space<vmem>>, %arg12: memref<8x128xf32, #tpu.memory_space<vmem>>) attributes {dimension_semantics = [#tpu.dimension_semantics<parallel>], iteration_bounds = array<i64: 1>, scalar_prefetch = 0 : i64, scratch_operands = 0 : i64, tpu.core_type = #tpu.core_type<tc>, window_params = [{transform_indices = @transform_0, window_bounds = array<i64: 8, 26, 1>}, {pipeline_mode = #tpu.pipeline_mode<synchronous>, transform_indices = @transform_1, window_bounds = array<i64: 3, 64>}, {pipeline_mode = #tpu.pipeline_mode<synchronous>, transform_indices = @transform_2, window_bounds = array<i64: 1, 64>}, {pipeline_mode = #tpu.pipeline_mode<synchronous>, transform_indices = @transform_3, window_bounds = array<i64: 3, 64, 128>}, {pipeline_mode = #tpu.pipeline_mode<synchronous>, transform_indices = @transform_4, window_bounds = array<i64: 1, 128>}, {pipeline_mode = #tpu.pipeline_mode<synchronous>, transform_indices = @transform_5, window_bounds = array<i64: 2432, 256>}, {pipeline_mode = #tpu.pipeline_mode<synchronous>, transform_indices = @transform_6, window_bounds = array<i64: 1, 256>}, {pipeline_mode = #tpu.pipeline_mode<synchronous>, transform_indices = @transform_7, window_bounds = array<i64: 256, 128>}, {pipeline_mode = #tpu.pipeline_mode<synchronous>, transform_indices = @transform_8, window_bounds = array<i64: 1, 128>}, {pipeline_mode = #tpu.pipeline_mode<synchronous>, transform_indices = @transform_9, window_bounds = array<i64: 128, 128>}, {pipeline_mode = #tpu.pipeline_mode<synchronous>, transform_indices = @transform_10, window_bounds = array<i64: 1, 128>}, {transform_indices = @transform_11, window_bounds = array<i64: 8, 128>}]} {
    %c0 = arith.constant 0 : index
    %c0_0 = arith.constant 0 : index
    %c0_1 = arith.constant 0 : index
    %0 = vector.load %arg1[%c0, %c0_0, %c0_1] : memref<8x26x1xf32, #tpu.memory_space<vmem>>, vector<8x26x1xf32>
    %c0_2 = arith.constant 0 : index
    %c0_3 = arith.constant 0 : index
    %1 = vector.load %arg2[%c0_2, %c0_3] : memref<3x64xf32, #tpu.memory_space<vmem>>, vector<3x64xf32>
    %2 = vector.extract_strided_slice %0 {offsets = [0, 0, 0], sizes = [8, 24, 1], strides = [1, 1, 1]} : vector<8x26x1xf32> to vector<8x24x1xf32>
    %3 = vector.extract_strided_slice %1 {offsets = [0, 0], sizes = [1, 64], strides = [1, 1]} : vector<3x64xf32> to vector<1x64xf32>
    %4 = vector.shape_cast %3 : vector<1x64xf32> to vector<1x1x64xf32>
    %5 = vector.broadcast %2 : vector<8x24x1xf32> to vector<8x24x64xf32>
    %6 = vector.broadcast %4 : vector<1x1x64xf32> to vector<8x24x64xf32>
    %7 = arith.mulf %5, %6 : vector<8x24x64xf32>
    %8 = vector.extract_strided_slice %0 {offsets = [0, 1, 0], sizes = [8, 24, 1], strides = [1, 1, 1]} : vector<8x26x1xf32> to vector<8x24x1xf32>
    %9 = vector.extract_strided_slice %1 {offsets = [1, 0], sizes = [1, 64], strides = [1, 1]} : vector<3x64xf32> to vector<1x64xf32>
    %10 = vector.shape_cast %9 : vector<1x64xf32> to vector<1x1x64xf32>
    %11 = vector.broadcast %8 : vector<8x24x1xf32> to vector<8x24x64xf32>
    %12 = vector.broadcast %10 : vector<1x1x64xf32> to vector<8x24x64xf32>
    %13 = arith.mulf %11, %12 : vector<8x24x64xf32>
    %14 = arith.addf %7, %13 : vector<8x24x64xf32>
    %15 = vector.extract_strided_slice %0 {offsets = [0, 2, 0], sizes = [8, 24, 1], strides = [1, 1, 1]} : vector<8x26x1xf32> to vector<8x24x1xf32>
    %16 = vector.extract_strided_slice %1 {offsets = [2, 0], sizes = [1, 64], strides = [1, 1]} : vector<3x64xf32> to vector<1x64xf32>
    %17 = vector.shape_cast %16 : vector<1x64xf32> to vector<1x1x64xf32>
    %18 = vector.broadcast %15 : vector<8x24x1xf32> to vector<8x24x64xf32>
    %19 = vector.broadcast %17 : vector<1x1x64xf32> to vector<8x24x64xf32>
    %20 = arith.mulf %18, %19 : vector<8x24x64xf32>
    %21 = arith.addf %14, %20 : vector<8x24x64xf32>
    %c0_4 = arith.constant 0 : index
    %c0_5 = arith.constant 0 : index
    %22 = vector.load %arg3[%c0_4, %c0_5] : memref<1x64xf32, #tpu.memory_space<vmem>>, vector<1x64xf32>
    %23 = vector.shape_cast %22 : vector<1x64xf32> to vector<1x1x64xf32>
    %24 = vector.broadcast %23 : vector<1x1x64xf32> to vector<8x24x64xf32>
    %25 = arith.addf %21, %24 : vector<8x24x64xf32>
    %cst = arith.constant 0.000000e+00 : f32
    %26 = vector.broadcast %cst : f32 to vector<8x24x64xf32>
    %27 = arith.maximumf %25, %26 : vector<8x24x64xf32>
    %28 = tpu.iota {dimensions = array<i32: 1>} : vector<1x24x1xi32>
    %c19_i32 = arith.constant 19 : i32
    %29 = vector.broadcast %c19_i32 : i32 to vector<1x24x1xi32>
    %30 = arith.cmpi slt, %28, %29 : vector<1x24x1xi32>
    %cst_6 = arith.constant 0.000000e+00 : f32
    %31 = vector.shape_cast %30 : vector<1x24x1xi1> to vector<1x24x1xi1>
    %32 = vector.broadcast %31 : vector<1x24x1xi1> to vector<8x24x64xi1>
    %33 = vector.broadcast %cst_6 : f32 to vector<8x24x64xf32>
    %34 = arith.select %32, %27, %33 : vector<8x24x64xi1>, vector<8x24x64xf32>
    %35 = vector.shape_cast %34 : vector<8x24x64xf32> to vector<192x64xf32>
    %36 = arith.truncf %35 : vector<192x64xf32> to vector<192x64xbf16>
    %cst_7 = arith.constant 0.000000e+00 : bf16
    %37 = vector.broadcast %cst_7 : bf16 to vector<1x64xbf16>
    %38 = vector.extract_strided_slice %36 {offsets = [0, 0], sizes = [191, 64], strides = [1, 1]} : vector<192x64xbf16> to vector<191x64xbf16>
    %39 = tpu.concatenate %37, %38 in 0 : vector<1x64xbf16>, vector<191x64xbf16> -> vector<192x64xbf16>
    %40 = vector.extract_strided_slice %36 {offsets = [1, 0], sizes = [191, 64], strides = [1, 1]} : vector<192x64xbf16> to vector<191x64xbf16>
    %41 = tpu.concatenate %40, %37 in 0 : vector<191x64xbf16>, vector<1x64xbf16> -> vector<192x64xbf16>
    %c0_8 = arith.constant 0 : index
    %c0_9 = arith.constant 0 : index
    %c0_10 = arith.constant 0 : index
    %42 = vector.load %arg4[%c0_8, %c0_9, %c0_10] : memref<3x64x128xbf16, #tpu.memory_space<vmem>>, vector<1x64x128xbf16>
    %43 = vector.shape_cast %42 : vector<1x64x128xbf16> to vector<64x128xbf16>
    %cst_11 = arith.constant dense<0.000000e+00> : vector<192x128xf32>
    %44 = tpu.matmul %39, %43, %cst_11 {dimension_numbers = #tpu.dot_dimension_numbers<[1], [0], [0], [1], [0, 0, 1, 1], [], []>} : vector<192x64xbf16>, vector<64x128xbf16>, vector<192x128xf32> -> vector<192x128xf32>
    %c1 = arith.constant 1 : index
    %c0_12 = arith.constant 0 : index
    %c0_13 = arith.constant 0 : index
    %45 = vector.load %arg4[%c1, %c0_12, %c0_13] : memref<3x64x128xbf16, #tpu.memory_space<vmem>>, vector<1x64x128xbf16>
    %46 = vector.shape_cast %45 : vector<1x64x128xbf16> to vector<64x128xbf16>
    %cst_14 = arith.constant dense<0.000000e+00> : vector<192x128xf32>
    %47 = tpu.matmul %36, %46, %cst_14 {dimension_numbers = #tpu.dot_dimension_numbers<[1], [0], [0], [1], [0, 0, 1, 1], [], []>} : vector<192x64xbf16>, vector<64x128xbf16>, vector<192x128xf32> -> vector<192x128xf32>
    %48 = arith.addf %44, %47 : vector<192x128xf32>
    %c2 = arith.constant 2 : index
    %c0_15 = arith.constant 0 : index
    %c0_16 = arith.constant 0 : index
    %49 = vector.load %arg4[%c2, %c0_15, %c0_16] : memref<3x64x128xbf16, #tpu.memory_space<vmem>>, vector<1x64x128xbf16>
    %50 = vector.shape_cast %49 : vector<1x64x128xbf16> to vector<64x128xbf16>
    %cst_17 = arith.constant dense<0.000000e+00> : vector<192x128xf32>
    %51 = tpu.matmul %41, %50, %cst_17 {dimension_numbers = #tpu.dot_dimension_numbers<[1], [0], [0], [1], [0, 0, 1, 1], [], []>} : vector<192x64xbf16>, vector<64x128xbf16>, vector<192x128xf32> -> vector<192x128xf32>
    %52 = arith.addf %48, %51 : vector<192x128xf32>
    %c0_18 = arith.constant 0 : index
    %c0_19 = arith.constant 0 : index
    %53 = vector.load %arg5[%c0_18, %c0_19] : memref<1x128xf32, #tpu.memory_space<vmem>>, vector<1x128xf32>
    %54 = vector.broadcast %53 : vector<1x128xf32> to vector<192x128xf32>
    %55 = arith.addf %52, %54 : vector<192x128xf32>
    %cst_20 = arith.constant 0.000000e+00 : f32
    %56 = vector.broadcast %cst_20 : f32 to vector<192x128xf32>
    %57 = arith.maximumf %55, %56 : vector<192x128xf32>
    %58 = arith.truncf %57 : vector<192x128xf32> to vector<192x128xbf16>
    %59 = vector.shape_cast %58 : vector<192x128xbf16> to vector<8x24x128xbf16>
    %60 = vector.extract_strided_slice %59 {offsets = [0, 0, 0], sizes = [8, 1, 128], strides = [1, 1, 1]} : vector<8x24x128xbf16> to vector<8x1x128xbf16>
    %61 = vector.shape_cast %60 : vector<8x1x128xbf16> to vector<8x128xbf16>
    %62 = vector.extract_strided_slice %59 {offsets = [0, 1, 0], sizes = [8, 1, 128], strides = [1, 1, 1]} : vector<8x24x128xbf16> to vector<8x1x128xbf16>
    %63 = vector.shape_cast %62 : vector<8x1x128xbf16> to vector<8x128xbf16>
    %64 = vector.extract_strided_slice %59 {offsets = [0, 2, 0], sizes = [8, 1, 128], strides = [1, 1, 1]} : vector<8x24x128xbf16> to vector<8x1x128xbf16>
    %65 = vector.shape_cast %64 : vector<8x1x128xbf16> to vector<8x128xbf16>
    %66 = vector.extract_strided_slice %59 {offsets = [0, 3, 0], sizes = [8, 1, 128], strides = [1, 1, 1]} : vector<8x24x128xbf16> to vector<8x1x128xbf16>
    %67 = vector.shape_cast %66 : vector<8x1x128xbf16> to vector<8x128xbf16>
    %68 = vector.extract_strided_slice %59 {offsets = [0, 4, 0], sizes = [8, 1, 128], strides = [1, 1, 1]} : vector<8x24x128xbf16> to vector<8x1x128xbf16>
    %69 = vector.shape_cast %68 : vector<8x1x128xbf16> to vector<8x128xbf16>
    %70 = vector.extract_strided_slice %59 {offsets = [0, 5, 0], sizes = [8, 1, 128], strides = [1, 1, 1]} : vector<8x24x128xbf16> to vector<8x1x128xbf16>
    %71 = vector.shape_cast %70 : vector<8x1x128xbf16> to vector<8x128xbf16>
    %72 = vector.extract_strided_slice %59 {offsets = [0, 6, 0], sizes = [8, 1, 128], strides = [1, 1, 1]} : vector<8x24x128xbf16> to vector<8x1x128xbf16>
    %73 = vector.shape_cast %72 : vector<8x1x128xbf16> to vector<8x128xbf16>
    %74 = vector.extract_strided_slice %59 {offsets = [0, 7, 0], sizes = [8, 1, 128], strides = [1, 1, 1]} : vector<8x24x128xbf16> to vector<8x1x128xbf16>
    %75 = vector.shape_cast %74 : vector<8x1x128xbf16> to vector<8x128xbf16>
    %76 = vector.extract_strided_slice %59 {offsets = [0, 8, 0], sizes = [8, 1, 128], strides = [1, 1, 1]} : vector<8x24x128xbf16> to vector<8x1x128xbf16>
    %77 = vector.shape_cast %76 : vector<8x1x128xbf16> to vector<8x128xbf16>
    %78 = vector.extract_strided_slice %59 {offsets = [0, 9, 0], sizes = [8, 1, 128], strides = [1, 1, 1]} : vector<8x24x128xbf16> to vector<8x1x128xbf16>
    %79 = vector.shape_cast %78 : vector<8x1x128xbf16> to vector<8x128xbf16>
    %80 = vector.extract_strided_slice %59 {offsets = [0, 10, 0], sizes = [8, 1, 128], strides = [1, 1, 1]} : vector<8x24x128xbf16> to vector<8x1x128xbf16>
    %81 = vector.shape_cast %80 : vector<8x1x128xbf16> to vector<8x128xbf16>
    %82 = vector.extract_strided_slice %59 {offsets = [0, 11, 0], sizes = [8, 1, 128], strides = [1, 1, 1]} : vector<8x24x128xbf16> to vector<8x1x128xbf16>
    %83 = vector.shape_cast %82 : vector<8x1x128xbf16> to vector<8x128xbf16>
    %84 = vector.extract_strided_slice %59 {offsets = [0, 12, 0], sizes = [8, 1, 128], strides = [1, 1, 1]} : vector<8x24x128xbf16> to vector<8x1x128xbf16>
    %85 = vector.shape_cast %84 : vector<8x1x128xbf16> to vector<8x128xbf16>
    %86 = vector.extract_strided_slice %59 {offsets = [0, 13, 0], sizes = [8, 1, 128], strides = [1, 1, 1]} : vector<8x24x128xbf16> to vector<8x1x128xbf16>
    %87 = vector.shape_cast %86 : vector<8x1x128xbf16> to vector<8x128xbf16>
    %88 = vector.extract_strided_slice %59 {offsets = [0, 14, 0], sizes = [8, 1, 128], strides = [1, 1, 1]} : vector<8x24x128xbf16> to vector<8x1x128xbf16>
    %89 = vector.shape_cast %88 : vector<8x1x128xbf16> to vector<8x128xbf16>
    %90 = vector.extract_strided_slice %59 {offsets = [0, 15, 0], sizes = [8, 1, 128], strides = [1, 1, 1]} : vector<8x24x128xbf16> to vector<8x1x128xbf16>
    %91 = vector.shape_cast %90 : vector<8x1x128xbf16> to vector<8x128xbf16>
    %92 = vector.extract_strided_slice %59 {offsets = [0, 16, 0], sizes = [8, 1, 128], strides = [1, 1, 1]} : vector<8x24x128xbf16> to vector<8x1x128xbf16>
    %93 = vector.shape_cast %92 : vector<8x1x128xbf16> to vector<8x128xbf16>
    %94 = vector.extract_strided_slice %59 {offsets = [0, 17, 0], sizes = [8, 1, 128], strides = [1, 1, 1]} : vector<8x24x128xbf16> to vector<8x1x128xbf16>
    %95 = vector.shape_cast %94 : vector<8x1x128xbf16> to vector<8x128xbf16>
    %96 = vector.extract_strided_slice %59 {offsets = [0, 18, 0], sizes = [8, 1, 128], strides = [1, 1, 1]} : vector<8x24x128xbf16> to vector<8x1x128xbf16>
    %97 = vector.shape_cast %96 : vector<8x1x128xbf16> to vector<8x128xbf16>
    %98 = tpu.concatenate %61, %63, %65, %67, %69, %71, %73, %75, %77, %79, %81, %83, %85, %87, %89, %91 in 1 : vector<8x128xbf16>, vector<8x128xbf16>, vector<8x128xbf16>, vector<8x128xbf16>, vector<8x128xbf16>, vector<8x128xbf16>, vector<8x128xbf16>, vector<8x128xbf16>, vector<8x128xbf16>, vector<8x128xbf16>, vector<8x128xbf16>, vector<8x128xbf16>, vector<8x128xbf16>, vector<8x128xbf16>, vector<8x128xbf16>, vector<8x128xbf16> -> vector<8x2048xbf16>
    %99 = tpu.concatenate %93, %95, %97 in 1 : vector<8x128xbf16>, vector<8x128xbf16>, vector<8x128xbf16> -> vector<8x384xbf16>
    %100 = tpu.concatenate %98, %99 in 1 : vector<8x2048xbf16>, vector<8x384xbf16> -> vector<8x2432xbf16>
    %c0_21 = arith.constant 0 : index
    %c0_22 = arith.constant 0 : index
    %101 = vector.load %arg6[%c0_21, %c0_22] : memref<2432x256xbf16, #tpu.memory_space<vmem>>, vector<2432x256xbf16>
    %cst_23 = arith.constant dense<0.000000e+00> : vector<8x256xf32>
    %102 = tpu.matmul %100, %101, %cst_23 {dimension_numbers = #tpu.dot_dimension_numbers<[1], [0], [0], [1], [0, 0, 1, 1], [], []>} : vector<8x2432xbf16>, vector<2432x256xbf16>, vector<8x256xf32> -> vector<8x256xf32>
    %c0_24 = arith.constant 0 : index
    %c0_25 = arith.constant 0 : index
    %103 = vector.load %arg7[%c0_24, %c0_25] : memref<1x256xf32, #tpu.memory_space<vmem>>, vector<1x256xf32>
    %104 = vector.broadcast %103 : vector<1x256xf32> to vector<8x256xf32>
    %105 = arith.addf %102, %104 : vector<8x256xf32>
    %cst_26 = arith.constant 0.000000e+00 : f32
    %106 = vector.broadcast %cst_26 : f32 to vector<8x256xf32>
    %107 = arith.maximumf %105, %106 : vector<8x256xf32>
    %108 = arith.truncf %107 : vector<8x256xf32> to vector<8x256xbf16>
    %c0_27 = arith.constant 0 : index
    %c0_28 = arith.constant 0 : index
    %109 = vector.load %arg8[%c0_27, %c0_28] : memref<256x128xbf16, #tpu.memory_space<vmem>>, vector<256x128xbf16>
    %cst_29 = arith.constant dense<0.000000e+00> : vector<8x128xf32>
    %110 = tpu.matmul %108, %109, %cst_29 {dimension_numbers = #tpu.dot_dimension_numbers<[1], [0], [0], [1], [0, 0, 1, 1], [], []>} : vector<8x256xbf16>, vector<256x128xbf16>, vector<8x128xf32> -> vector<8x128xf32>
    %c0_30 = arith.constant 0 : index
    %c0_31 = arith.constant 0 : index
    %111 = vector.load %arg9[%c0_30, %c0_31] : memref<1x128xf32, #tpu.memory_space<vmem>>, vector<1x128xf32>
    %112 = vector.broadcast %111 : vector<1x128xf32> to vector<8x128xf32>
    %113 = arith.addf %110, %112 : vector<8x128xf32>
    %cst_32 = arith.constant 0.000000e+00 : f32
    %114 = vector.broadcast %cst_32 : f32 to vector<8x128xf32>
    %115 = arith.maximumf %113, %114 : vector<8x128xf32>
    %116 = arith.truncf %115 : vector<8x128xf32> to vector<8x128xbf16>
    %c0_33 = arith.constant 0 : index
    %c0_34 = arith.constant 0 : index
    %117 = vector.load %arg10[%c0_33, %c0_34] : memref<128x128xbf16, #tpu.memory_space<vmem>>, vector<128x128xbf16>
    %cst_35 = arith.constant dense<0.000000e+00> : vector<8x128xf32>
    %118 = tpu.matmul %116, %117, %cst_35 {dimension_numbers = #tpu.dot_dimension_numbers<[1], [0], [0], [1], [0, 0, 1, 1], [], []>} : vector<8x128xbf16>, vector<128x128xbf16>, vector<8x128xf32> -> vector<8x128xf32>
    %c0_36 = arith.constant 0 : index
    %c0_37 = arith.constant 0 : index
    %119 = vector.load %arg11[%c0_36, %c0_37] : memref<1x128xf32, #tpu.memory_space<vmem>>, vector<1x128xf32>
    %120 = vector.broadcast %119 : vector<1x128xf32> to vector<8x128xf32>
    %121 = arith.addf %118, %120 : vector<8x128xf32>
    %cst_38 = arith.constant dense<0xFF800000> : vector<8xf32>
    %122 = vector.multi_reduction <maximumf>, %121, %cst_38 [1] : vector<8x128xf32> to vector<8xf32>
    %123 = vector.shape_cast %122 : vector<8xf32> to vector<8x1xf32>
    %124 = vector.broadcast %123 : vector<8x1xf32> to vector<8x128xf32>
    %125 = arith.subf %121, %124 : vector<8x128xf32>
    %126 = math.exp %125 : vector<8x128xf32>
    %cst_39 = arith.constant dense<0.000000e+00> : vector<8xf32>
    %127 = vector.multi_reduction <add>, %126, %cst_39 [1] : vector<8x128xf32> to vector<8xf32>
    %128 = vector.shape_cast %127 : vector<8xf32> to vector<8x1xf32>
    %129 = tpu.reciprocal %128 {approx = true} : vector<8x1xf32> -> vector<8x1xf32>
    %130 = vector.broadcast %129 : vector<8x1xf32> to vector<8x128xf32>
    %131 = arith.mulf %126, %130 : vector<8x128xf32>
    %c0_40 = arith.constant 0 : index
    %c0_41 = arith.constant 0 : index
    %132 = vector.load %arg12[%c0_40, %c0_41] : memref<8x128xf32, #tpu.memory_space<vmem>>, vector<8x128xf32>
    tpu.vector_store %arg12[%c0_40, %c0_41], %131 {strides = array<i32>} : memref<8x128xf32, #tpu.memory_space<vmem>>, vector<8x128xf32>,
    return
  }
  func.func @transform_0(%arg0: i32) -> (i32, i32, i32) {
    %c0_i32 = arith.constant 0 : i32
    %c0_i32_0 = arith.constant 0 : i32
    %c0_i32_1 = arith.constant 0 : i32
    return %arg0, %c0_i32, %c0_i32_0 : i32, i32, i32
  }
  func.func @transform_1(%arg0: i32) -> (i32, i32) {
    %c0_i32 = arith.constant 0 : i32
    %c0_i32_0 = arith.constant 0 : i32
    %c0_i32_1 = arith.constant 0 : i32
    return %c0_i32, %c0_i32_0 : i32, i32
  }
  func.func @transform_2(%arg0: i32) -> (i32, i32) {
    %c0_i32 = arith.constant 0 : i32
    %c0_i32_0 = arith.constant 0 : i32
    %c0_i32_1 = arith.constant 0 : i32
    return %c0_i32, %c0_i32_0 : i32, i32
  }
  func.func @transform_3(%arg0: i32) -> (i32, i32, i32) {
    %c0_i32 = arith.constant 0 : i32
    %c0_i32_0 = arith.constant 0 : i32
    %c0_i32_1 = arith.constant 0 : i32
    %c0_i32_2 = arith.constant 0 : i32
    return %c0_i32, %c0_i32_0, %c0_i32_1 : i32, i32, i32
  }
  func.func @transform_4(%arg0: i32) -> (i32, i32) {
    %c0_i32 = arith.constant 0 : i32
    %c0_i32_0 = arith.constant 0 : i32
    %c0_i32_1 = arith.constant 0 : i32
    return %c0_i32, %c0_i32_0 : i32, i32
  }
  func.func @transform_5(%arg0: i32) -> (i32, i32) {
    %c0_i32 = arith.constant 0 : i32
    %c0_i32_0 = arith.constant 0 : i32
    %c0_i32_1 = arith.constant 0 : i32
    return %c0_i32, %c0_i32_0 : i32, i32
  }
  func.func @transform_6(%arg0: i32) -> (i32, i32) {
    %c0_i32 = arith.constant 0 : i32
    %c0_i32_0 = arith.constant 0 : i32
    %c0_i32_1 = arith.constant 0 : i32
    return %c0_i32, %c0_i32_0 : i32, i32
  }
  func.func @transform_7(%arg0: i32) -> (i32, i32) {
    %c0_i32 = arith.constant 0 : i32
    %c0_i32_0 = arith.constant 0 : i32
    %c0_i32_1 = arith.constant 0 : i32
    return %c0_i32, %c0_i32_0 : i32, i32
  }
  func.func @transform_8(%arg0: i32) -> (i32, i32) {
    %c0_i32 = arith.constant 0 : i32
    %c0_i32_0 = arith.constant 0 : i32
    %c0_i32_1 = arith.constant 0 : i32
    return %c0_i32, %c0_i32_0 : i32, i32
  }
  func.func @transform_9(%arg0: i32) -> (i32, i32) {
    %c0_i32 = arith.constant 0 : i32
    %c0_i32_0 = arith.constant 0 : i32
    %c0_i32_1 = arith.constant 0 : i32
    return %c0_i32, %c0_i32_0 : i32, i32
  }
  func.func @transform_10(%arg0: i32) -> (i32, i32) {
    %c0_i32 = arith.constant 0 : i32
    %c0_i32_0 = arith.constant 0 : i32
    %c0_i32_1 = arith.constant 0 : i32
    return %c0_i32, %c0_i32_0 : i32, i32
  }
  func.func @transform_11(%arg0: i32) -> (i32, i32) {
    %c0_i32 = arith.constant 0 : i32
    %c0_i32_0 = arith.constant 0 : i32
    return %arg0, %c0_i32 : i32, i32
  }
}

</mosaic_0001>

<bundles_post_ra>
// kernel: tpu_custom_call.1
= control target key start
LH: loop header
LB: loop body
LE: loop exit
PB: predicated region body
PF: predicated region fallthrough
CT: control target
= control target key end

     0   :  { %16 = vsyncpa [#allocation3], 0  ;;  %s7227_s0 = inlined_call_operand.vmem [shape: f32[8,26,1], index: 0, kind: input, shape index: {}]   ;;  %s7228_s1 = inlined_call_operand.hbm [shape: f32[3,64], index: 1, kind: input, shape index: {}]   ;;  %s7229_s2 = inlined_call_operand.hbm [shape: f32[1,64], index: 2, kind: input, shape index: {}]   ;;  %s7230_s3 = inlined_call_operand.hbm [shape: bf16[3,64,128], index: 3, kind: input, shape index: {}]   ;;  %s7231_s4 = inlined_call_operand.hbm [shape: f32[1,128], index: 4, kind: input, shape index: {}]   ;;  %s7232_s5 = inlined_call_operand.hbm [shape: bf16[2432,256], index: 5, kind: input, shape index: {}]   ;;  %s7233_s6 = inlined_call_operand.hbm [shape: f32[1,256], index: 6, kind: input, shape index: {}]   ;;  %s7234_s7 = inlined_call_operand.hbm [shape: bf16[256,128], index: 7, kind: input, shape index: {}]   ;;  %s7235_s8 = inlined_call_operand.hbm [shape: f32[1,128], index: 8, kind: input, shape index: {}]   ;;  %s7236_s9 = inlined_call_operand.hbm [shape: bf16[128,128], index: 9, kind: input, shape index: {}]   ;;  %s7237_s10 = inlined_call_operand.hbm [shape: f32[1,128], index: 10, kind: input, shape index: {}]   ;;  %s7238_s11 = inlined_call_operand.hbm [shape: f32[8,128], index: 11, kind: output, shape index: {}]  }
   0x1   :  { %17 = vsyncpa [#allocation6], 0 }
   0x2   :  { %18 = vsyncpa [#allocation9], 0 }
   0x3   :  { %19 = vsyncpa [#allocation12], 0 }
   0x4   :  { %20 = vsyncpa [#allocation15], 0 }
   0x5   :  { %21 = vsyncpa [#allocation18], 0 }
   0x6   :  { %22 = vsyncpa [#allocation4], 0  ;;  %s5984_s17 = smov [#allocation5]   ;;  %s5985_s19 = smov [#allocation8]  }
   0x7   :  { %s41_s18 = sshll.u32 %s5984_s17, 4  ;;  %s63_s20 = sshll.u32 %s5985_s19, 4  ;;  %s42_s18 = int_to_ptr.vmem [resolvable:$true] %s41_s18  ;;  %s64_s20 = int_to_ptr.vmem [resolvable:$true] %s63_s20 }
   0x8   :  { %s5758_s21 = scalar_lea.vmem %s42_s18, 16  ;;  %s5762_s22 = scalar_lea.vmem %s42_s18, 32 }
   0x9   :  { %p5759_p0 = scmp.ne.s32.totalorder %s42_s18, %s5758_s21  ;;  %p5763_p1 = scmp.lt.s32.totalorder %s42_s18, %s42_s18 }
   0xa   :  { %p5764_p2 = scmp.lt.s32.totalorder %s5762_s22, %s5758_s21 }
   0xc   :  { %p5765_p3 = por %p5764_p2, %p5763_p1 }
   0xe   :  { %p5766_p4 = pnand %p5765_p3, %p5759_p0 }
  0x10   :  { %5769 = shalt.err (!%p5766_p4)
}
  0x11   :  { %44 = dma.hbm_to_vmem [thread:$0]  %s7229_s2, 16, %s42_s18, [#allocation6]  }
  0x12   :  { %s5778_s25 = scalar_lea.vmem %s64_s20, 16  ;;  %s5782_s26 = scalar_lea.vmem %s64_s20, 32 }
  0x13   :  { %p5779_p5 = scmp.ne.s32.totalorder %s64_s20, %s5778_s25  ;;  %p5783_p6 = scmp.lt.s32.totalorder %s64_s20, %s64_s20 }
  0x14   :  { %p5784_p7 = scmp.lt.s32.totalorder %s5782_s26, %s5778_s25 }
  0x16   :  { %p5785_p8 = por %p5784_p7, %p5783_p6 }
  0x18   :  { %p5786_p9 = pnand %p5785_p8, %p5779_p5 }
  0x1a   :  { %5789 = shalt.err (!%p5786_p9)
}
  0x1b   :  { %66 = dma.hbm_to_vmem [thread:$0]  %s7231_s4, 16, %s64_s20, [#allocation9]  }
  0x1c   :  { %s5986_s29 = smov [#allocation11]   ;;  %s5987_s12 = smov [#allocation14]  }
  0x1d   :  { %s85_s30 = sshll.u32 %s5986_s29, 4  ;;  %s107_s13 = sshll.u32 %s5987_s12, 4  ;;  %s86_s30 = int_to_ptr.vmem [resolvable:$true] %s85_s30  ;;  %s108_s13 = int_to_ptr.vmem [resolvable:$true] %s107_s13 }
  0x1e   :  { %s5798_s14 = scalar_lea.vmem %s86_s30, 32  ;;  %p5803_p11 = scmp.lt.s32.totalorder %s86_s30, %s86_s30 }
  0x1f   :  { %p5799_p10 = scmp.ne.s32.totalorder %s86_s30, %s5798_s14  ;;  %p5804_p12 = scmp.lt.s32.totalorder %s5798_s14, %s5798_s14 }
  0x21   :  { %p5805_p13 = por %p5804_p12, %p5803_p11 }
  0x23   :  { %p5806_p0 = pnand %p5805_p13, %p5799_p10 }
  0x25   :  { %5809 = shalt.err (!%p5806_p0)
}
  0x26   :  { %88 = dma.hbm_to_vmem [thread:$0]  %s7233_s6, 32, %s86_s30, [#allocation12]  }
  0x27   :  { %s5818_s16 = scalar_lea.vmem %s108_s13, 16  ;;  %s5822_s4 = scalar_lea.vmem %s108_s13, 32 }
  0x28   :  { %p5819_p1 = scmp.ne.s32.totalorder %s108_s13, %s5818_s16  ;;  %p5823_p2 = scmp.lt.s32.totalorder %s108_s13, %s108_s13 }
  0x29   :  { %p5824_p3 = scmp.lt.s32.totalorder %s5822_s4, %s5818_s16 }
  0x2b   :  { %p5825_p4 = por %p5824_p3, %p5823_p2 }
  0x2d   :  { %p5826_p5 = pnand %p5825_p4, %p5819_p1 }
  0x2f   :  { %5829 = shalt.err (!%p5826_p5)
}
  0x30   :  { %110 = dma.hbm_to_vmem [thread:$0]  %s7235_s8, 16, %s108_s13, [#allocation15]  }
  0x31   :  { %s5988_s19 = smov [#allocation2]   ;;  %s5989_s21 = smov [#allocation7]  }
  0x32   :  { %s31_s20 = sshll.u32 %s5988_s19, 4  ;;  %s50_s22 = sshll.u32 %s5989_s21, 4  ;;  %s32_s20 = int_to_ptr.vmem [resolvable:$true] %s31_s20  ;;  %s51_s22 = int_to_ptr.vmem [resolvable:$true] %s50_s22 }
  0x33   :  { %s5838_s23 = scalar_lea.vmem %s32_s20, 64  ;;  %p5843_p7 = scmp.lt.s32.totalorder %s32_s20, %s32_s20 }
  0x34   :  { %p5839_p6 = scmp.ne.s32.totalorder %s32_s20, %s5838_s23  ;;  %p5844_p8 = scmp.lt.s32.totalorder %s5838_s23, %s5838_s23 }
  0x36   :  { %p5845_p9 = por %p5844_p8, %p5843_p7 }
  0x38   :  { %p5846_p10 = pnand %p5845_p9, %p5839_p6 }
  0x3a   :  { %5849 = shalt.err (!%p5846_p10)
}
  0x3b   :  { %34 = dma.hbm_to_vmem [thread:$0]  %s7228_s1, 64, %s32_s20, [#allocation3]  }
  0x3c   :  { %s5858_s25 = scalar_lea.vmem %s51_s22, 1536  ;;  %p5863_p12 = scmp.lt.s32.totalorder %s51_s22, %s51_s22 }
  0x3d   :  { %p5859_p11 = scmp.ne.s32.totalorder %s51_s22, %s5858_s25  ;;  %p5864_p13 = scmp.lt.s32.totalorder %s5858_s25, %s5858_s25 }
  0x3f   :  { %p5865_p0 = por %p5864_p13, %p5863_p12 }
  0x41   :  { %p5866_p1 = pnand %p5865_p0, %p5859_p11 }
  0x43   :  { %5869 = shalt.err (!%p5866_p1)
}
  0x44   :  { %s5990_s8 = smov 64   ;;  %s5991_s26 = smov 4  }
  0x45   :  { %56 = dma.hbm_to_vmem [thread:$0]  %s7230_s3, 1536, %s51_s22, [#allocation6], %s5990_s8, %s5990_s8, %s5991_s26  }
  0x46   :  { %s5992_s29 = smov [#allocation10]  }
  0x47   :  { %s72_s30 = sshll.u32 %s5992_s29, 4  ;;  %s73_s30 = int_to_ptr.vmem [resolvable:$true] %s72_s30 }
  0x48   :  { %s5878_s1 = scalar_lea.vmem %s73_s30, 38912  ;;  %p5883_p3 = scmp.lt.s32.totalorder %s73_s30, %s73_s30 }
  0x49   :  { %p5879_p2 = scmp.ne.s32.totalorder %s73_s30, %s5878_s1  ;;  %p5884_p4 = scmp.lt.s32.totalorder %s5878_s1, %s5878_s1 }
  0x4b   :  { %p5885_p5 = por %p5884_p4, %p5883_p3 }
  0x4d   :  { %p5886_p6 = pnand %p5885_p5, %p5879_p2 }
  0x4f   :  { %5889 = shalt.err (!%p5886_p6)
}
  0x50   :  { %s5993_s12 = smov 128   ;;  %s5994_s13 = smov 8  }
  0x51   :  { %78 = dma.hbm_to_vmem [thread:$0]  %s7232_s5, 38912, %s73_s30, [#allocation9], %s5993_s12, %s5993_s12, %s5994_s13  }
  0x52   :  { %s5995_s15 = smov [#allocation13]   ;;  %s5996_s3 = smov [#allocation16]  }
  0x53   :  { %s94_s16 = sshll.u32 %s5995_s15, 4  ;;  %s116_s4 = sshll.u32 %s5996_s3, 4  ;;  %s95_s16 = int_to_ptr.vmem [resolvable:$true] %s94_s16  ;;  %s117_s4 = int_to_ptr.vmem [resolvable:$true] %s116_s4 }
  0x54   :  { %s5898_s17 = scalar_lea.vmem %s95_s16, 2048  ;;  %p5903_p8 = scmp.lt.s32.totalorder %s95_s16, %s95_s16 }
  0x55   :  { %p5899_p7 = scmp.ne.s32.totalorder %s95_s16, %s5898_s17  ;;  %p5904_p9 = scmp.lt.s32.totalorder %s5898_s17, %s5898_s17 }
  0x57   :  { %p5905_p10 = por %p5904_p9, %p5903_p8 }
  0x59   :  { %p5906_p11 = pnand %p5905_p10, %p5899_p7 }
  0x5b   :  { %5909 = shalt.err (!%p5906_p11)
}
  0x5c   :  { %100 = dma.hbm_to_vmem [thread:$0]  %s7234_s7, 2048, %s95_s16, [#allocation12], %s5990_s8, %s5990_s8, %s5991_s26  }
  0x5d   :  { %s5918_s5 = scalar_lea.vmem %s117_s4, 1024  ;;  %p5923_p13 = scmp.lt.s32.totalorder %s117_s4, %s117_s4 }
  0x5e   :  { %p5919_p12 = scmp.ne.s32.totalorder %s117_s4, %s5918_s5  ;;  %p5924_p0 = scmp.lt.s32.totalorder %s5918_s5, %s5918_s5 }
  0x60   :  { %p5925_p1 = por %p5924_p0, %p5923_p13 }
  0x62   :  { %p5926_p2 = pnand %p5925_p1, %p5919_p12 }
  0x64   :  { %5929 = shalt.err (!%p5926_p2)
}
  0x65   :  { %122 = dma.hbm_to_vmem [thread:$0]  %s7236_s9, 1024, %s117_s4, [#allocation15], %s5990_s8, %s5990_s8, %s5991_s26  }
  0x66   :  { %s5997_s22 = smov [#allocation17]  }
  0x67   :  { %s129_s23 = sshll.u32 %s5997_s22, 4  ;;  %s130_s23 = int_to_ptr.vmem [resolvable:$true] %s129_s23 }
  0x68   :  { %s5938_s6 = scalar_lea.vmem %s130_s23, 16  ;;  %s5942_s7 = scalar_lea.vmem %s130_s23, 32 }
  0x69   :  { %p5939_p3 = scmp.ne.s32.totalorder %s130_s23, %s5938_s6  ;;  %p5943_p4 = scmp.lt.s32.totalorder %s130_s23, %s130_s23 }
  0x6a   :  { %p5944_p5 = scmp.lt.s32.totalorder %s5942_s7, %s5938_s6 }
  0x6c   :  { %p5945_p6 = por %p5944_p5, %p5943_p4 }
  0x6e   :  { %p5946_p7 = pnand %p5945_p6, %p5939_p3 }
  0x70   :  { %5949 = shalt.err (!%p5946_p7)
}
  0x71   :  { %132 = dma.hbm_to_vmem [thread:$0]  %s7237_s10, 16, %s130_s23, [#allocation18]  }
  0x72   :  { %5970 = dma.done.wait [#allocation3], 64  }
  0x73   :  { %5971 = vsyncadd [#allocation3], 4294967232 }
  0x74   :  { %5972 = dma.done.wait [#allocation6], 1552  }
  0x75   :  { %5973 = vsyncadd [#allocation6], 4294965744 }
  0x76   :  { %5974 = dma.done.wait [#allocation9], 38928  }
  0x77   :  { %5975 = vsyncadd [#allocation9], 4294928368 }
  0x78   :  { %5976 = dma.done.wait [#allocation12], 2080  }
  0x79   :  { %5977 = vsyncadd [#allocation12], 4294965216 }
  0x7a   :  { %5978 = dma.done.wait [#allocation15], 1040  }
  0x7b   :  { %5979 = vsyncadd [#allocation15], 4294966256 }
  0x7c   :  { %5980 = dma.done.wait [#allocation18], 16  }
  0x7d   :  { %5981 = vsyncadd [#allocation18], 4294967280  ;;  %v5998_v0 = vmov 0   ;;  %v166_v1 = vld [vmem:[%s7227_s0 + $0x10] sm:$0xff]  ;;  %v164_v2 = vld [vmem:[%s7227_s0] sm:$0xff]  ;;  %v317_v42 = vlaneseq  ;;  %vm453_vm0 = vcmask 1046528  }
  0x7e   :  { %5253 = vset.pattern.permute.xlu1 %v5998_v0  ;;  %5252 = vset.pattern.permute.xlu0 %v5998_v0  ;;  %v167_v3 = vld [vmem:[%s7227_s0 + $0x18] sm:$0x3]  ;;  %v165_v4 = vld [vmem:[%s7227_s0 + $0x8] sm:$0xff]  ;;  %v168_v6 = vld [vmem:[%s7227_s0 + $0x20] sm:$0xff]  ;;  %vm626_vm1 = vcmask 1045504   ;;  %vm1016_vm2 = vcmask 523264  }
  0x7f   :  { %209 = vperm.xlu1 %5253, %v166_v1   ;;  %199 = vperm.xlu0 %5252, %v164_v2   ;;  %v169_v5 = vld [vmem:[%s7227_s0 + $0x28] sm:$0xff]  ;;  %v171_v7 = vld [vmem:[%s7227_s0 + $0x38] sm:$0x3]  ;;  %v170_v8 = vld [vmem:[%s7227_s0 + $0x30] sm:$0xff]  ;;  %v6202_v43 = vshrl.u32 %v317_v42, 7  ;;  %vm932_vm5 = vcmask 1040384  }
  0x80   :  { %v173_v9 = vld [vmem:[%s7227_s0 + $0x48] sm:$0xff]  ;;  %v172_v10 = vld [vmem:[%s7227_s0 + $0x40] sm:$0xff]  ;;  %v5255_v12 = vld [vmem:[#allocation7 + $0x30] sm:$0xff]   ;;  %vm835_vm4 = vsmask.f32 256  ;;  %vm972_vm8 = vcmask 1047552  }
  0x81   :  { %v5254_v11 = vld [vmem:[#allocation7 + $0x38] sm:$0xff]   ;;  %v5257_v14 = vld [vmem:[#allocation7 + $0x28] sm:$0xff]   ;;  %v175_v15 = vld [vmem:[%s7227_s0 + $0x58] sm:$0x3]  ;;  %v387_v45 = vsub.s32 1, %v6202_v43  ;;  %v560_v46 = vsub.s32 2, %v6202_v43 }
  0x82   :  { %5118 = vmatprep.subr.bf16.mxu0 %v5254_v11  ;;  %v5256_v13 = vld [vmem:[#allocation7 + $0x18] sm:$0xff]   ;;  %v174_v16 = vld [vmem:[%s7227_s0 + $0x50] sm:$0xff]  ;;  %v5259_v18 = vld [vmem:[#allocation7 + $0x20] sm:$0xff]   ;;  %v319_v49 = vsub.s32 0, %v6202_v43  ;;  %v6217_v55 = vadd.s32 16, %v6202_v43  ;;  %vm1701_vm10 = vcmask 1041409  }
  0x83   :  { %347 = vperm.xlu1 %5253, %v167_v3   ;;  %204 = vperm.xlu0 %5252, %v165_v4   ;;  %v5258_v17 = vld [vmem:[#allocation7 + $0x10] sm:$0xff]   ;;  %v177_v19 = vld [vmem:[%s7227_s0 + $0x68] sm:$0xff]  ;;  %v176_v20 = vld [vmem:[%s7227_s0 + $0x60] sm:$0xff]  ;;  %vm935_vm7 = vsmask.f32 7424  ;;  %vm1704_vm11 = vcmask 1042434  }
  0x84   :  { %5119 = vmatpush3.bf16.msra.mxu0 %v5254_v11  ;;  %5150 = vmatprep.subr.bf16.mxu1 %v5256_v13  ;;  %v179_v21 = vld [vmem:[%s7227_s0 + $0x78] sm:$0x3]  ;;  %v178_v22 = vld [vmem:[%s7227_s0 + $0x70] sm:$0xff]  ;;  %v181_v24 = vld [vmem:[%s7227_s0 + $0x88] sm:$0xff]  ;;  %vm792_vm3 = vcmp.lt.s32.totalorder %v6217_v55, 19  ;;  %vm1707_vm12 = vcmask 1043459  }
  0x85   :  { %5120 = vmatprep.subr.bf16.mxu0 %v5255_v12  ;;  %5151 = vmatpush3.bf16.msra.mxu1 %v5256_v13  ;;  %v5260_v23 = vld [vmem:[#allocation7 + $0x8] sm:$0xff]   ;;  %v180_v25 = vld [vmem:[%s7227_s0 + $0x80] sm:$0xff]  ;;  %v183_v26 = vld [vmem:[%s7227_s0 + $0x98] sm:$0x3]  ;;  %vm1710_vm13 = vcmask 1044484   ;;  %vm1713_vm14 = vcmask 1045509  }
  0x86   :  { %5152 = vmatprep.subr.bf16.mxu1 %v5258_v17  ;;  %v5261_v27 = vld [vmem:[#allocation7] sm:$0xff]   ;;  %v182_v28 = vld [vmem:[%s7227_s0 + $0x90] sm:$0xff]  ;;  %v187_v31 = vld [vmem:[%s7227_s0 + $0xb8] sm:$0x3]  ;;  %vm1716_vm15 = vcmask 1046534  }
  0x87   :  { %219 = vperm.xlu1 %5253, %v169_v5   ;;  %214 = vperm.xlu0 %5252, %v168_v6   ;;  %v185_v29 = vld [vmem:[%s7227_s0 + $0xa8] sm:$0xff]  ;;  %v184_v30 = vld [vmem:[%s7227_s0 + $0xa0] sm:$0xff]  ;;  %v186_v32 = vld [vmem:[%s7227_s0 + $0xb0] sm:$0xff] }
  0x88   :  { %5121 = vmatpush3.bf16.msra.mxu0 %v5255_v12  ;;  %v189_v33 = vld [vmem:[%s7227_s0 + $0xc8] sm:$0xff]  ;;  %v188_v34 = vld [vmem:[%s7227_s0 + $0xc0] sm:$0xff]  ;;  %v191_v35 = vld [vmem:[%s7227_s0 + $0xd8] sm:$0x3] }
  0x89   :  { %5122 = vmatprep.subr.bf16.mxu0 %v5257_v14  ;;  %5153 = vmatpush3.bf16.msra.mxu1 %v5258_v17  ;;  %v190_v36 = vld [vmem:[%s7227_s0 + $0xd0] sm:$0xff]  ;;  %v6187_v37 = vld [vmem:[#allocation7 + $0x58] sm:$0xff]   ;;  %v193_v38 = vld [vmem:[%s7227_s0 + $0xe8] sm:$0xff] }
  0x8a   :  { %5154 = vmatprep.subr.bf16.mxu1 %v5260_v23  ;;  %v192_v39 = vld [vmem:[%s7227_s0 + $0xe0] sm:$0xff]  ;;  %v195_v40 = vld [vmem:[%s7227_s0 + $0xf8] sm:$0x3]  ;;  %v194_v41 = vld [vmem:[%s7227_s0 + $0xf0] sm:$0xff]  ;;  %s6001_s0 = smov [#allocation19]  }
  0x8b   :  { %352 = vperm.xlu1 %5253, %v171_v7   ;;  %224 = vperm.xlu0 %5252, %v170_v8   ;;  %v196_v44 = vld [vmem:[#allocation2] sm:$0x7]  ;;  %v6230_v13 = vld [vmem:[#allocation5] ss:$0 sm:$0xff]  ;;  %vm6329_vm6 = vmand %vm932_vm5, %vm835_vm4  ;;  %s4597_s29 = sshll.u32 %s6001_s0, 4  ;;  %s4598_s29 = int_to_ptr.vmem [resolvable:$true] %s4597_s29 }
  0x8c   :  { %5123 = vmatpush3.bf16.msra.mxu0 %v5257_v14  ;;  %v6208_v47 = vrot.slane %v196_v44, %v387_v45  ;;  %v6210_v48 = vrot.slane %v196_v44, %v560_v46  ;;  %v6221_v56 = vrot.slane %v196_v44, %v319_v49  ;;  %vm973_vm9 = vmand %vm972_vm8, %vm935_vm7  ;;  %s5950_s30 = scalar_lea.vmem %s4598_s29, 128  ;;  %p5955_p9 = scmp.lt.s32.totalorder %s4598_s29, %s4598_s29 }
  0x8d   :  { %5124 = vmatprep.subr.bf16.mxu0 %v5259_v18  ;;  %5155 = vmatpush3.bf16.msra.mxu1 %v5260_v23  ;;  %p5951_p8 = scmp.ne.s32.totalorder %s4598_s29, %s5950_s30  ;;  %p5956_p10 = scmp.lt.s32.totalorder %s5950_s30, %s5950_s30 }
  0x8e   :  { %5156 = vmatprep.subr.bf16.mxu1 %v5261_v27 }
  0x8f   :  { %234 = vperm.xlu1 %5253, %v173_v9   ;;  %229 = vperm.xlu0 %5252, %v172_v10   ;;  %p5957_p11 = por %p5956_p10, %p5955_p9 }
  0x90   :  { %5125 = vmatpush3.bf16.msra.mxu0 %v5259_v18 }
  0x91   :  { %5157 = vmatpush3.bf16.msra.mxu1 %v5261_v27  ;;  %5182 = vmatprep.subr.bf16.mxu0 %v6187_v37  ;;  %p5958_p12 = pnand %p5957_p11, %p5951_p8 }
  0x93   :  { %357 = vperm.xlu1 %5253, %v175_v15   ;;  %239 = vperm.xlu0 %5252, %v174_v16  }
  0x97   :  { %249 = vperm.xlu1 %5253, %v177_v19   ;;  %244 = vperm.xlu0 %5252, %v176_v20  }
  0x9b   :  { %362 = vperm.xlu1 %5253, %v179_v21   ;;  %254 = vperm.xlu0 %5252, %v178_v22  }
  0x9f   :  { %264 = vperm.xlu1 %5253, %v181_v24   ;;  %259 = vperm.xlu0 %5252, %v180_v25  }
  0xa3   :  { %367 = vperm.xlu1 %5253, %v183_v26   ;;  %269 = vperm.xlu0 %5252, %v182_v28  }
  0xa7   :  { %279 = vperm.xlu1 %5253, %v185_v29   ;;  %274 = vperm.xlu0 %5252, %v184_v30  }
  0xab   :  { %372 = vperm.xlu1 %5253, %v187_v31   ;;  %284 = vperm.xlu0 %5252, %v186_v32  }
  0xaf   :  { %294 = vperm.xlu1 %5253, %v189_v33   ;;  %289 = vperm.xlu0 %5252, %v188_v34  }
  0xb3   :  { %377 = vperm.xlu1 %5253, %v191_v35   ;;  %299 = vperm.xlu0 %5252, %v190_v36  }
  0xb7   :  { %309 = vperm.xlu1 %5253, %v193_v38   ;;  %304 = vperm.xlu0 %5252, %v192_v39  }
  0xbb   :  { %382 = vperm.xlu1 %5253, %v195_v40   ;;  %314 = vperm.xlu0 %5252, %v194_v41  }
  0xfa   :  { %v210_v50 = vpop.permute.xlu1 %209  ;;  %v200_v51 = vpop.permute.xlu0 %199 }
  0xfb   :  { %v391_v52 = vmul.f32 %v6208_v47, %v210_v50  ;;  %v564_v53 = vmul.f32 %v6210_v48, %v210_v50  ;;  %v389_v54 = vmul.f32 %v6208_v47, %v200_v51  ;;  %v562_v59 = vmul.f32 %v6210_v48, %v200_v51 }
  0xfc   :  { %v323_v7 = vmul.f32 %v6221_v56, %v210_v50  ;;  %v321_v8 = vmul.f32 %v6221_v56, %v200_v51 }
  0xfd   :  { %v457_v57 = vrot.slane %v391_v52, 1  ;;  %v630_v58 = vrot.slane %v564_v53, 2  ;;  %v454_v3 = vrot.slane %v389_v54, 1  ;;  %v627_v9 = vrot.slane %v562_v59, 2 }
  0xfe   :  { %v348_v60 = vpop.permute.xlu1 %347  ;;  %v205_v61 = vpop.permute.xlu0 %204 }
  0xff   :  { %v392_v62 = vmul.f32 %v6208_v47, %v348_v60  ;;  %v565_v63 = vmul.f32 %v6210_v48, %v348_v60  ;;  %v390_v1 = vmul.f32 %v6208_v47, %v205_v61  ;;  %v563_v2 = vmul.f32 %v6210_v48, %v205_v61 }
 0x100   :  { %v322_v15 = vmul.f32 %v6221_v56, %v205_v61 }
 0x101   :  { %v459_v4 = vrot.slane %v392_v62, 1  ;;  %v632_v5 = vrot.slane %v565_v63, 2  ;;  %v455_v6 = vrot.slane %v390_v1, 1  ;;  %v628_v10 = vrot.slane %v563_v2, 2 }
 0x102   :  { %v220_v11 = vpop.permute.xlu1 %219  ;;  %v215_v12 = vpop.permute.xlu0 %214 }
 0x103   :  { %v460_v14 = vsel %vm453_vm0, %v457_v57, %v459_v4  ;;  %v456_v16 = vsel %vm453_vm0, %v454_v3, %v455_v6  ;;  %v458_v17 = vsel %vm453_vm0, %v455_v6, %v457_v57  ;;  %v633_v19 = vsel %vm626_vm1, %v630_v58, %v632_v5 }
 0x104   :  { %v536_v18 = vadd.f32 %v460_v14, %v323_v7  ;;  %v534_v20 = vadd.f32 %v456_v16, %v321_v8  ;;  %v535_v21 = vadd.f32 %v458_v17, %v322_v15  ;;  %v629_v22 = vsel %vm626_vm1, %v627_v9, %v628_v10 }
 0x105   :  { %v394_v23 = vmul.f32 %v6208_v47, %v220_v11  ;;  %v567_v24 = vmul.f32 %v6210_v48, %v220_v11  ;;  %v631_v26 = vsel %vm626_vm1, %v628_v10, %v630_v58  ;;  %v325_v27 = vmul.f32 %v6221_v56, %v220_v11 }
 0x106   :  { %v709_v25 = vadd.f32 %v633_v19, %v536_v18  ;;  %v393_v28 = vmul.f32 %v6208_v47, %v215_v12  ;;  %v353_v29 = vpop.permute.xlu1 %352  ;;  %v225_v30 = vpop.permute.xlu0 %224  ;;  %v324_v32 = vmul.f32 %v6221_v56, %v215_v12  ;;  %v566_v33 = vmul.f32 %v6210_v48, %v215_v12 }
 0x107   :  { %v462_v31 = vrot.slane %v394_v23, 1  ;;  %v396_v34 = vmul.f32 %v6208_v47, %v353_v29  ;;  %v635_v36 = vrot.slane %v567_v24, 2  ;;  %v569_v39 = vmul.f32 %v6210_v48, %v353_v29 }
 0x108   :  { %v6247_v35 = vadd.f32 %v6230_v13, %v709_v25  ;;  %v461_v38 = vrot.slane %v393_v28, 1  ;;  %v634_v40 = vrot.slane %v566_v33, 2  ;;  %v395_v42 = vmul.f32 %v6208_v47, %v225_v30 }
 0x109   :  { %v466_v41 = vrot.slane %v396_v34, 1  ;;  %v568_v44 = vmul.f32 %v6210_v48, %v225_v30  ;;  %v708_v50 = vadd.f32 %v631_v26, %v535_v21  ;;  %v639_v52 = vrot.slane %v569_v39, 2 }
 0x10a   :  { %v764_v46 = vmax.f32 %v6247_v35, 0.0  ;;  %v463_v51 = vsel %vm453_vm0, %v461_v38, %v462_v31  ;;  %v235_v53 = vpop.permute.xlu1 %234  ;;  %v230_v54 = vpop.permute.xlu0 %229  ;;  %v326_v58 = vmul.f32 %v6221_v56, %v225_v30  ;;  %v464_v59 = vrot.slane %v395_v42, 1 }
 0x10b   :  { %v537_v57 = vadd.f32 %v463_v51, %v324_v32  ;;  %v637_v60 = vrot.slane %v568_v44, 2  ;;  %v636_v61 = vsel %vm626_vm1, %v634_v40, %v635_v36  ;;  %v398_v62 = vmul.f32 %v6208_v47, %v235_v53 }
 0x10c   :  { %v6258_v63 = vmul.f32 %v6210_v48, %v235_v53  ;;  %v707_v1 = vadd.f32 %v629_v22, %v534_v20  ;;  %v465_v2 = vsel %vm453_vm0, %v462_v31, %v464_v59  ;;  %v467_v3 = vsel %vm453_vm0, %v464_v59, %v466_v41 }
 0x10d   :  { %v328_v4 = vmul.f32 %v6221_v56, %v235_v53  ;;  %v327_v5 = vmul.f32 %v6221_v56, %v230_v54  ;;  %v710_v6 = vadd.f32 %v636_v61, %v537_v57  ;;  %v538_v7 = vadd.f32 %v465_v2, %v325_v27 }
 0x10e   :  { %v539_v8 = vadd.f32 %v467_v3, %v326_v58  ;;  %v638_v9 = vsel %vm626_vm1, %v635_v36, %v637_v60  ;;  %v358_v10 = vpop.permute.xlu1 %357  ;;  %v240_v11 = vpop.permute.xlu0 %239  ;;  %v640_v12 = vsel %vm626_vm1, %v637_v60, %v639_v52  ;;  %v469_v14 = vrot.slane %v398_v62, 1 }
 0x10f   :  { %v397_v15 = vmul.f32 %v6208_v47, %v230_v54  ;;  %v570_v16 = vmul.f32 %v6210_v48, %v230_v54  ;;  %v642_v18 = vrot.slane %v6258_v63, 2  ;;  %v400_v19 = vmul.f32 %v6208_v47, %v358_v10 }
 0x110   :  { %v712_v17 = vadd.f32 %v640_v12, %v539_v8  ;;  %v573_v20 = vmul.f32 %v6210_v48, %v358_v10  ;;  %v738_v23 = vadd.f32 %v6230_v13, %v707_v1  ;;  %v739_v24 = vadd.f32 %v6230_v13, %v708_v50 }
 0x111   :  { %v468_v21 = vrot.slane %v397_v15, 1  ;;  %v641_v22 = vrot.slane %v570_v16, 2  ;;  %v741_v25 = vadd.f32 %v6230_v13, %v710_v6  ;;  %v6275_v26 = vadd.f32 %v638_v9, %v538_v7  ;;  %v5263_v9 = vld [vmem:[#allocation7 + $0x50] sm:$0xff]  }
 0x112   :  { %v6278_v27 = vadd.f32 %v6230_v13, %v712_v17  ;;  %v473_v28 = vrot.slane %v400_v19, 1  ;;  %v250_v29 = vpop.permute.xlu1 %249  ;;  %v646_v31 = vrot.slane %v573_v20, 2  ;;  %v762_v32 = vmax.f32 %v738_v23, 0.0  ;;  %v245_v34 = vpop.permute.xlu0 %244 }
 0x113   :  { %v470_v30 = vsel %vm453_vm0, %v468_v21, %v469_v14  ;;  %v763_v33 = vmax.f32 %v739_v24, 0.0  ;;  %v329_v38 = vmul.f32 %v6221_v56, %v240_v11  ;;  %v399_v39 = vmul.f32 %v6208_v47, %v240_v11 }
 0x114   :  { %v540_v36 = vadd.f32 %v470_v30, %v327_v5  ;;  %v572_v40 = vmul.f32 %v6210_v48, %v240_v11  ;;  %v643_v41 = vsel %vm626_vm1, %v641_v22, %v642_v18  ;;  %v6288_v44 = vmul.f32 %v6208_v47, %v250_v29 }
 0x115   :  { %v6285_v42 = vpack.c.bf16 %v763_v33, %v762_v32  ;;  %v6291_v50 = vmul.f32 %v6210_v48, %v250_v29  ;;  %v471_v52 = vrot.slane %v399_v39, 1  ;;  %v765_v54 = vmax.f32 %v741_v25, 0.0 }
 0x116   :  { %v713_v51 = vadd.f32 %v643_v41, %v540_v36  ;;  %v644_v53 = vrot.slane %v572_v40, 2  ;;  %v767_v57 = vmax.f32 %v6278_v27, 0.0  ;;  %v331_v58 = vmul.f32 %v6221_v56, %v250_v29  ;;  %v363_v61 = vpop.permute.xlu1 %362  ;;  %v255_v8 = vpop.permute.xlu0 %254  ;;  %v5264_v27 = vld [vmem:[#allocation7 + $0x48] sm:$0xff]  }
 0x117   :  { %5126 = vmatprep.mubr.msk.bf16.mxu0 %vm1016_vm2, %v6285_v42  ;;  %v476_v59 = vrot.slane %v6288_v44, 1  ;;  %v649_v60 = vrot.slane %v6291_v50, 2  ;;  %v472_v62 = vsel %vm453_vm0, %v469_v14, %v471_v52  ;;  %v474_v63 = vsel %vm453_vm0, %v471_v52, %v473_v28 }
 0x118   :  { %v801_v1 = vsel %vm792_vm3, %v764_v46, 0.0  ;;  %v330_v2 = vmul.f32 %v6221_v56, %v245_v34  ;;  %v6307_v3 = vadd.f32 %v6230_v13, %v713_v51  ;;  %v541_v5 = vadd.f32 %v472_v62, %v328_v4 }
 0x119   :  { %v542_v6 = vadd.f32 %v474_v63, %v329_v38  ;;  %v6309_v7 = vpack.c.bf16 %v765_v54, %v801_v1  ;;  %v647_v10 = vsel %vm626_vm1, %v644_v53, %v646_v31  ;;  %v401_v11 = vmul.f32 %v6208_v47, %v245_v34 }
 0x11a   :  { %v574_v35 = vmul.f32 %v6210_v48, %v245_v34  ;;  %v837_v12 = vshrl.u32 %v6285_v42, 16  ;;  %v645_v46 = vsel %vm626_vm1, %v642_v18, %v644_v53  ;;  %v404_v4 = vmul.f32 %v6208_v47, %v363_v61  ;;  %v265_v25 = vpop.permute.xlu1 %264  ;;  %v260_v36 = vpop.permute.xlu0 %259 }
 0x11b   :  { %v715_v14 = vadd.f32 %v647_v10, %v542_v6  ;;  %5127 = vmatmul.mubr.msk.bf16.vlgmr.msra.gmra.mxu0 %vm1016_vm2, %v6309_v7  ;;  %v577_v15 = vmul.f32 %v6210_v48, %v363_v61  ;;  %v475_v16 = vrot.slane %v401_v11, 1  ;;  %v840_v20 = vshll.u32 %v6285_v42, 16 }
 0x11c   :  { %v648_v17 = vrot.slane %v574_v35, 2  ;;  %v839_v19 = vrot.slane %v837_v12, 7  ;;  %5183 = vmatpush3.bf16.msra.mxu0 %v6187_v37  ;;  %v714_v21 = vadd.f32 %v645_v46, %v541_v5  ;;  %v480_v23 = vrot.slane %v404_v4, 1 }
 0x11d   :  { %v6325_v18 = vadd.f32 %v6230_v13, %v715_v14  ;;  %v653_v24 = vrot.slane %v577_v15, 2  ;;  %5184 = vmatprep.subr.bf16.mxu0 %v5263_v9  ;;  %v477_v28 = vsel %vm453_vm0, %v475_v16, %v476_v59  ;;  %v332_v29 = vmul.f32 %v6221_v56, %v255_v8 }
 0x11e   :  { %v842_v37 = vor.u32 %v840_v20, %v839_v19  ;;  %v403_v30 = vmul.f32 %v6208_v47, %v255_v8  ;;  %v543_v31 = vadd.f32 %v477_v28, %v330_v2  ;;  %v650_v32 = vsel %vm626_vm1, %v648_v17, %v649_v60  ;;  %v368_v6 = vpop.permute.xlu1 %367  ;;  %v270_v35 = vpop.permute.xlu0 %269 }
 0x11f   :  { %v576_v33 = vmul.f32 %v6210_v48, %v255_v8  ;;  %v742_v34 = vadd.f32 %v6230_v13, %v6275_v26  ;;  %v770_v38 = vmax.f32 %v6325_v18, 0.0  ;;  %v844_v41 = vshrl.u32 %v6309_v7, 16  ;;  %v5265_v26 = vld [vmem:[#allocation7 + $0x40] sm:$0xff]  }
 0x120   :  { %v934_v39 = vsel %vm6329_vm6, 0, %v842_v37  ;;  %v478_v40 = vrot.slane %v403_v30, 1  ;;  %5185 = vmatpush3.bf16.msra.mxu0 %v5263_v9  ;;  %v716_v44 = vadd.f32 %v650_v32, %v543_v31  ;;  %v804_v52 = vsel %vm792_vm3, %v767_v57, 0.0 }
 0x121   :  { %5158 = vmatprep.mubr.msk.bf16.mxu1 %vm1016_vm2, %v934_v39  ;;  %v651_v50 = vrot.slane %v576_v33, 2  ;;  %v766_v51 = vmax.f32 %v742_v34, 0.0  ;;  %5186 = vmatprep.subr.bf16.mxu0 %v5264_v27  ;;  %v846_v61 = vrot.slane %v844_v41, 7  ;;  %v847_v62 = vshll.u32 %v6309_v7, 16 }
 0x122   :  { %v479_v53 = vsel %vm453_vm0, %v476_v59, %v478_v40  ;;  %v481_v54 = vsel %vm453_vm0, %v478_v40, %v480_v23  ;;  %v334_v5 = vmul.f32 %v6221_v56, %v265_v25  ;;  %v406_v9 = vmul.f32 %v6208_v47, %v265_v25  ;;  %v280_v31 = vpop.permute.xlu1 %279 }
 0x123   :  { %v544_v63 = vadd.f32 %v479_v53, %v331_v58  ;;  %v545_v1 = vadd.f32 %v481_v54, %v332_v29  ;;  %v652_v2 = vsel %vm626_vm1, %v649_v60, %v651_v50  ;;  %v654_v57 = vsel %vm626_vm1, %v651_v50, %v653_v24  ;;  %v275_v50 = vpop.permute.xlu0 %274 }
 0x124   :  { %v6357_v8 = vpack.c.bf16 %v804_v52, %v766_v51  ;;  %v849_v59 = vor.u32 %v847_v62, %v846_v61  ;;  %5187 = vmatpush3.bf16.msra.mxu0 %v5264_v27  ;;  %v747_v10 = vadd.f32 %v6230_v13, %v716_v44  ;;  %v579_v60 = vmul.f32 %v6210_v48, %v265_v25 }
 0x125   :  { %v6363_v11 = vadd.f32 %v652_v2, %v544_v63  ;;  %v718_v58 = vadd.f32 %v654_v57, %v545_v1  ;;  %5188 = vmatprep.subr.bf16.mxu0 %v5265_v26  ;;  %v483_v14 = vrot.slane %v406_v9, 1  ;;  %v405_v4 = vmul.f32 %v6208_v47, %v260_v36 }
 0x126   :  { %5130 = vmatprep.mubr.msk.bf16.mxu0 %vm1016_vm2, %v6357_v8  ;;  %v850_v46 = vsel %vm835_vm4, %v839_v19, %v849_v59  ;;  %v578_v15 = vmul.f32 %v6210_v48, %v260_v36  ;;  %v656_v17 = vrot.slane %v579_v60, 2  ;;  %v408_v22 = vmul.f32 %v6208_v47, %v368_v6 }
 0x127   :  { %v6372_v16 = vadd.f32 %v6230_v13, %v718_v58  ;;  %5159 = vmatmul.mubr.msk.bf16.vlgmr.msra.gmra.mxu1 %vm1016_vm2, %v850_v46  ;;  %v581_v23 = vmul.f32 %v6210_v48, %v368_v6  ;;  %v333_v24 = vmul.f32 %v6221_v56, %v260_v36  ;;  %v482_v25 = vrot.slane %v405_v4, 1  ;;  %v373_v46 = vpop.permute.xlu1 %372 }
 0x128   :  { %v655_v27 = vrot.slane %v578_v15, 2  ;;  %v745_v19 = vadd.f32 %v6230_v13, %v714_v21  ;;  %5189 = vmatpush3.bf16.msra.mxu0 %v5265_v26  ;;  %v487_v37 = vrot.slane %v408_v22, 1  ;;  %v768_v29 = vmax.f32 %v6307_v3, 0.0 }
 0x129   :  { %v773_v28 = vmax.f32 %v6372_v16, 0.0  ;;  %v852_v30 = vshrl.u32 %v6357_v8, 16  ;;  %v484_v32 = vsel %vm453_vm0, %v482_v25, %v483_v14  ;;  %v660_v34 = vrot.slane %v581_v23, 2 }
 0x12a   :  { %v657_v33 = vsel %vm626_vm1, %v655_v27, %v656_v17  ;;  %v769_v39 = vmax.f32 %v745_v19, 0.0  ;;  %v546_v36 = vadd.f32 %v484_v32, %v333_v24  ;;  %v855_v21 = vshll.u32 %v6357_v8, 16 }
 0x12b   :  { %v6386_v40 = vrot.slane %v852_v30, 7  ;;  %v407_v44 = vmul.f32 %v6208_v47, %v270_v35  ;;  %v335_v51 = vmul.f32 %v6221_v56, %v270_v35  ;;  %v580_v52 = vmul.f32 %v6210_v48, %v270_v35 }
 0x12c   :  { %v6390_v3 = vpack.c.bf16 %v769_v39, %v768_v29  ;;  %v337_v26 = vmul.f32 %v6221_v56, %v280_v31  ;;  %v719_v53 = vadd.f32 %v657_v33, %v546_v36  ;;  %v410_v1 = vmul.f32 %v6208_v47, %v280_v31 }
 0x12d   :  { %v857_v54 = vor.u32 %v855_v21, %v6386_v40  ;;  %v485_v63 = vrot.slane %v407_v44, 1  ;;  %v658_v2 = vrot.slane %v580_v52, 2  ;;  %v583_v6 = vmul.f32 %v6210_v48, %v280_v31 }
 0x12e   :  { %5131 = vmatmul.mubr.msk.bf16.gmra.mxu0 %vm1016_vm2, %v6390_v3  ;;  %v771_v57 = vmax.f32 %v747_v10, 0.0  ;;  %v807_v59 = vsel %vm792_vm3, %v770_v38, 0.0  ;;  %v6407_v9 = vadd.f32 %v6230_v13, %v719_v53  ;;  %v490_v22 = vrot.slane %v410_v1, 1 }
 0x12f   :  { %v858_v58 = vsel %vm835_vm4, %v846_v61, %v857_v54  ;;  %v486_v60 = vsel %vm453_vm0, %v483_v14, %v485_v63  ;;  %v488_v35 = vsel %vm453_vm0, %v485_v63, %v487_v37  ;;  %v659_v10 = vsel %vm626_vm1, %v656_v17, %v658_v2  ;;  %v285_v61 = vpop.permute.xlu0 %284 }
 0x130   :  { %5162 = vmatprep.mubr.msk.bf16.mxu1 %vm1016_vm2, %v858_v58  ;;  %v547_v4 = vadd.f32 %v486_v60, %v334_v5  ;;  %v548_v15 = vadd.f32 %v488_v35, %v335_v51  ;;  %v661_v18 = vsel %vm626_vm1, %v658_v2, %v660_v34  ;;  %v663_v38 = vrot.slane %v583_v6, 2  ;;  %v295_v51 = vpop.permute.xlu1 %294 }
 0x131   :  { %v6415_v23 = vpack.c.bf16 %v771_v57, %v807_v59  ;;  %v336_v24 = vmul.f32 %v6221_v56, %v275_v50  ;;  %v409_v27 = vmul.f32 %v6208_v47, %v275_v50  ;;  %v582_v19 = vmul.f32 %v6210_v48, %v275_v50 }
 0x132   :  { %v6418_v25 = vadd.f32 %v659_v10, %v547_v4  ;;  %v721_v14 = vadd.f32 %v661_v18, %v548_v15  ;;  %v860_v5 = vshrl.u32 %v6390_v3, 16  ;;  %v863_v17 = vshll.u32 %v6390_v3, 16 }
 0x133   :  { %5134 = vmatprep.mubr.msk.bf16.mxu0 %vm1016_vm2, %v6415_v23  ;;  %v412_v37 = vmul.f32 %v6208_v47, %v373_v46  ;;  %v585_v29 = vmul.f32 %v6210_v48, %v373_v46  ;;  %v489_v32 = vrot.slane %v409_v27, 1  ;;  %v662_v33 = vrot.slane %v582_v19, 2  ;;  %v290_v59 = vpop.permute.xlu0 %289 }
 0x134   :  { %v6429_v31 = vadd.f32 %v6230_v13, %v721_v14  ;;  %v338_v34 = vmul.f32 %v6221_v56, %v285_v61  ;;  %v862_v39 = vrot.slane %v860_v5, 7  ;;  %v411_v50 = vmul.f32 %v6208_v47, %v285_v61 }
 0x135   :  { %v494_v36 = vrot.slane %v412_v37, 1  ;;  %v667_v44 = vrot.slane %v585_v29, 2  ;;  %v491_v53 = vsel %vm453_vm0, %v489_v32, %v490_v22  ;;  %v664_v54 = vsel %vm626_vm1, %v662_v33, %v663_v38 }
 0x136   :  { %v776_v52 = vmax.f32 %v6429_v31, 0.0  ;;  %v584_v63 = vmul.f32 %v6210_v48, %v285_v61  ;;  %v549_v1 = vadd.f32 %v491_v53, %v336_v24  ;;  %v865_v2 = vor.u32 %v863_v17, %v862_v39 }
 0x137   :  { %v492_v6 = vrot.slane %v411_v50, 1  ;;  %v748_v57 = vadd.f32 %v6230_v13, %v6363_v11  ;;  %v810_v60 = vsel %vm792_vm3, %v773_v28, 0.0  ;;  %v868_v35 = vshrl.u32 %v6415_v23, 16 }
 0x138   :  { %v665_v58 = vrot.slane %v584_v63, 2  ;;  %v871_v46 = vshll.u32 %v6415_v23, 16  ;;  %v722_v4 = vadd.f32 %v664_v54, %v549_v1  ;;  %v866_v15 = vsel %vm835_vm4, %v6386_v40, %v865_v2 }
 0x139   :  { %v493_v10 = vsel %vm453_vm0, %v490_v22, %v492_v6  ;;  %v495_v18 = vsel %vm453_vm0, %v492_v6, %v494_v36  ;;  %5163 = vmatmul.mubr.msk.bf16.gmra.mxu1 %vm1016_vm2, %v866_v15  ;;  %v772_v14 = vmax.f32 %v748_v57, 0.0  ;;  %v870_v27 = vrot.slane %v868_v35, 7  ;;  %v378_v22 = vpop.permute.xlu1 %377  ;;  %v300_v36 = vpop.permute.xlu0 %299 }
 0x13a   :  { %v550_v11 = vadd.f32 %v493_v10, %v337_v26  ;;  %v551_v24 = vadd.f32 %v495_v18, %v338_v34  ;;  %v666_v16 = vsel %vm626_vm1, %v663_v38, %v665_v58  ;;  %v668_v28 = vsel %vm626_vm1, %v665_v58, %v667_v44 }
 0x13b   :  { %v6457_v61 = vadd.f32 %v6230_v13, %v722_v4  ;;  %v340_v40 = vmul.f32 %v6221_v56, %v295_v51  ;;  %v414_v26 = vmul.f32 %v6208_v47, %v295_v51  ;;  %v587_v29 = vmul.f32 %v6210_v48, %v295_v51 }
 0x13c   :  { %v6462_v19 = vadd.f32 %v666_v16, %v550_v11  ;;  %v724_v37 = vadd.f32 %v668_v28, %v551_v24  ;;  %v6466_v38 = vpack.c.bf16 %v810_v60, %v772_v14  ;;  %v873_v32 = vor.u32 %v871_v46, %v870_v27 }
 0x13d   :  { %v339_v33 = vmul.f32 %v6221_v56, %v290_v59  ;;  %v413_v34 = vmul.f32 %v6208_v47, %v290_v59  ;;  %v497_v50 = vrot.slane %v414_v26, 1  ;;  %v670_v53 = vrot.slane %v587_v29, 2  ;;  %v310_v10 = vpop.permute.xlu1 %309 }
 0x13e   :  { %v6473_v44 = vadd.f32 %v6230_v13, %v724_v37  ;;  %v586_v54 = vmul.f32 %v6210_v48, %v290_v59  ;;  %5135 = vmatmul.mubr.msk.bf16.gmra.mxu0 %vm1016_vm2, %v6466_v38  ;;  %v874_v51 = vsel %vm835_vm4, %v862_v39, %v873_v32  ;;  %v416_v1 = vmul.f32 %v6208_v47, %v378_v22 }
 0x13f   :  { %v496_v63 = vrot.slane %v413_v34, 1  ;;  %v589_v2 = vmul.f32 %v6210_v48, %v378_v22  ;;  %5166 = vmatprep.mubr.msk.bf16.mxu1 %vm1016_vm2, %v874_v51  ;;  %v751_v58 = vadd.f32 %v6230_v13, %v6418_v25  ;;  %v774_v59 = vmax.f32 %v6407_v9, 0.0  ;;  %v305_v22 = vpop.permute.xlu0 %304 }
 0x140   :  { %v779_v6 = vmax.f32 %v6473_v44, 0.0  ;;  %v669_v57 = vrot.slane %v586_v54, 2  ;;  %v501_v4 = vrot.slane %v416_v1, 1  ;;  %v876_v39 = vshrl.u32 %v6466_v38, 16 }
 0x141   :  { %v498_v60 = vsel %vm453_vm0, %v496_v63, %v497_v50  ;;  %v674_v15 = vrot.slane %v589_v2, 2  ;;  %v775_v24 = vmax.f32 %v751_v58, 0.0  ;;  %v879_v16 = vshll.u32 %v6466_v38, 16 }
 0x142   :  { %v552_v18 = vadd.f32 %v498_v60, %v339_v33  ;;  %v671_v11 = vsel %vm626_vm1, %v669_v57, %v670_v53  ;;  %v878_v28 = vrot.slane %v876_v39, 7  ;;  %v341_v25 = vmul.f32 %v6221_v56, %v300_v36 }
 0x143   :  { %v415_v9 = vmul.f32 %v6208_v47, %v300_v36  ;;  %v588_v14 = vmul.f32 %v6210_v48, %v300_v36  ;;  %v6495_v26 = vpack.c.bf16 %v775_v24, %v774_v59  ;;  %v343_v29 = vmul.f32 %v6221_v56, %v310_v10  ;;  %v383_v24 = vpop.permute.xlu1 %382 }
 0x144   :  { %v725_v37 = vadd.f32 %v671_v11, %v552_v18  ;;  %v418_v32 = vmul.f32 %v6208_v47, %v310_v10  ;;  %v881_v33 = vor.u32 %v879_v16, %v878_v28  ;;  %v591_v51 = vmul.f32 %v6210_v48, %v310_v10 }
 0x145   :  { %v499_v34 = vrot.slane %v415_v9, 1  ;;  %v672_v54 = vrot.slane %v588_v14, 2  ;;  %5138 = vmatprep.mubr.msk.bf16.mxu0 %vm1016_vm2, %v6495_v26  ;;  %v777_v1 = vmax.f32 %v6457_v61, 0.0  ;;  %v813_v2 = vsel %vm792_vm3, %v776_v52, 0.0  ;;  %v315_v9 = vpop.permute.xlu0 %314 }
 0x146   :  { %v6503_v63 = vadd.f32 %v6230_v13, %v725_v37  ;;  %v504_v36 = vrot.slane %v418_v32, 1  ;;  %v882_v57 = vsel %vm835_vm4, %v870_v27, %v881_v33  ;;  %v677_v61 = vrot.slane %v591_v51, 2 }
 0x147   :  { %v500_v58 = vsel %vm453_vm0, %v497_v50, %v499_v34  ;;  %v502_v59 = vsel %vm453_vm0, %v499_v34, %v501_v4  ;;  %v673_v60 = vsel %vm626_vm1, %v670_v53, %v672_v54  ;;  %5167 = vmatmul.mubr.msk.bf16.gmra.mxu1 %vm1016_vm2, %v882_v57  ;;  %v675_v11 = vsel %vm626_vm1, %v672_v54, %v674_v15 }
 0x148   :  { %v553_v10 = vadd.f32 %v500_v58, %v340_v40  ;;  %v554_v18 = vadd.f32 %v502_v59, %v341_v25  ;;  %v6518_v31 = vpack.c.bf16 %v777_v1, %v813_v2  ;;  %v342_v52 = vmul.f32 %v6221_v56, %v305_v22 }
 0x149   :  { %v417_v27 = vmul.f32 %v6208_v47, %v305_v22  ;;  %v590_v50 = vmul.f32 %v6210_v48, %v305_v22  ;;  %v884_v53 = vshrl.u32 %v6495_v26, 16  ;;  %v887_v40 = vshll.u32 %v6495_v26, 16 }
 0x14a   :  { %v726_v4 = vadd.f32 %v673_v60, %v553_v10  ;;  %v727_v14 = vadd.f32 %v675_v11, %v554_v18  ;;  %5139 = vmatmul.mubr.msk.bf16.gmra.mxu0 %vm1016_vm2, %v6518_v31  ;;  %v420_v37 = vmul.f32 %v6208_v47, %v383_v24  ;;  %v593_v32 = vmul.f32 %v6210_v48, %v383_v24 }
 0x14b   :  { %v503_v15 = vrot.slane %v417_v27, 1  ;;  %v676_v25 = vrot.slane %v590_v50, 2  ;;  %v886_v22 = vrot.slane %v884_v53, 7  ;;  %v344_v34 = vmul.f32 %v6221_v56, %v315_v9 }
 0x14c   :  { %v758_v33 = vadd.f32 %v6230_v13, %v727_v14  ;;  %v419_v54 = vmul.f32 %v6208_v47, %v315_v9  ;;  %v508_v2 = vrot.slane %v420_v37, 1  ;;  %v681_v57 = vrot.slane %v593_v32, 2 }
 0x14d   :  { %v505_v51 = vsel %vm453_vm0, %v503_v15, %v504_v36  ;;  %v678_v1 = vsel %vm626_vm1, %v676_v25, %v677_v61  ;;  %v889_v60 = vor.u32 %v887_v40, %v886_v22  ;;  %v592_v18 = vmul.f32 %v6210_v48, %v315_v9 }
 0x14e   :  { %v782_v58 = vmax.f32 %v758_v33, 0.0  ;;  %v555_v59 = vadd.f32 %v505_v51, %v342_v52  ;;  %v506_v10 = vrot.slane %v419_v54, 1  ;;  %v754_v11 = vadd.f32 %v6230_v13, %v6462_v19 }
 0x14f   :  { %v816_v47 = vsel %vm792_vm3, %v779_v6, 0.0  ;;  %v892_v56 = vshrl.u32 %v6518_v31, 16  ;;  %v890_v27 = vsel %vm835_vm4, %v878_v28, %v889_v60  ;;  %v679_v14 = vrot.slane %v592_v18, 2 }
 0x150   :  { %v728_v24 = vadd.f32 %v678_v1, %v555_v59  ;;  %v507_v52 = vsel %vm453_vm0, %v504_v36, %v506_v10  ;;  %v509_v50 = vsel %vm453_vm0, %v506_v10, %v508_v2  ;;  %5170 = vmatprep.mubr.msk.bf16.mxu1 %vm1016_vm2, %v890_v27  ;;  %v778_v19 = vmax.f32 %v754_v11, 0.0 }
 0x151   :  { %v556_v48 = vadd.f32 %v507_v52, %v343_v29  ;;  %v557_v9 = vadd.f32 %v509_v50, %v344_v34  ;;  %v894_v6 = vrot.slane %v892_v56, 7  ;;  %v895_v15 = vshll.u32 %v6518_v31, 16 }
 0x152   :  { %v759_v44 = vadd.f32 %v6230_v13, %v728_v24  ;;  %v757_v25 = vadd.f32 %v6230_v13, %v726_v4  ;;  %v680_v28 = vsel %vm626_vm1, %v677_v61, %v679_v14  ;;  %v682_v36 = vsel %vm626_vm1, %v679_v14, %v681_v57 }
 0x153   :  { %v6557_v37 = vpack.c.bf16 %v816_v47, %v778_v19  ;;  %v780_v29 = vmax.f32 %v6503_v63, 0.0  ;;  %v729_v32 = vadd.f32 %v680_v28, %v556_v48  ;;  %v730_v33 = vadd.f32 %v682_v36, %v557_v9 }
 0x154   :  { %v897_v34 = vor.u32 %v895_v15, %v894_v6  ;;  %v781_v54 = vmax.f32 %v757_v25, 0.0  ;;  %v783_v4 = vmax.f32 %v759_v44, 0.0  ;;  %v819_v61 = vsel %vm792_vm3, %v782_v58, 0.0 }
 0x155   :  { %5142 = vmatprep.mubr.msk.bf16.mxu0 %vm1016_vm2, %v6557_v37  ;;  %v900_v51 = vshrl.u32 %v6557_v37, 16  ;;  %v761_v1 = vadd.f32 %v6230_v13, %v730_v33  ;;  %v760_v57 = vadd.f32 %v6230_v13, %v729_v32  ;;  %v903_v60 = vshll.u32 %v6557_v37, 16 }
 0x156   :  { %v898_v2 = vsel %vm835_vm4, %v886_v22, %v897_v34  ;;  %v6569_v63 = vpack.c.bf16 %v781_v54, %v780_v29  ;;  %v6576_v10 = vpack.c.bf16 %v783_v4, %v819_v61  ;;  %v936_v47 = vrot.slane %v840_v20, 1 }
 0x157   :  { %5171 = vmatmul.mubr.msk.bf16.gmra.mxu1 %vm1016_vm2, %v898_v2  ;;  %v902_v59 = vrot.slane %v900_v51, 7  ;;  %v785_v18 = vmax.f32 %v761_v1, 0.0  ;;  %v784_v22 = vmax.f32 %v760_v57, 0.0  ;;  %v938_v19 = vrot.slane %v847_v62, 1 }
 0x158   :  { %5143 = vmatmul.mubr.msk.bf16.gmra.mxu0 %vm1016_vm2, %v6569_v63  ;;  %v908_v58 = vshrl.u32 %v6569_v63, 16  ;;  %v916_v13 = vshrl.u32 %v6576_v10, 16  ;;  %v911_v27 = vshll.u32 %v6569_v63, 16  ;;  %v919_v14 = vshll.u32 %v6576_v10, 16  ;;  %v5266_v63 = vld [vmem:[#allocation10 + $0x70] ss:$8 sps:$4 sm:$0xff]  }
 0x159   :  { %v905_v11 = vor.u32 %v903_v60, %v902_v59  ;;  %5146 = vmatprep.mubr.msk.bf16.mxu0 %vm1016_vm2, %v6576_v10  ;;  %v822_v52 = vsel %vm792_vm3, %v785_v18, 0.0  ;;  %v941_v42 = vrot.slane %v855_v21, 1  ;;  %v944_v33 = vrot.slane %v863_v17, 1  ;;  %v5269_v18 = vld [vmem:[#allocation10 + $0x170] ss:$8 sps:$4 sm:$0xff]  }
 0x15a   :  { %v910_v24 = vrot.slane %v908_v58, 7  ;;  %v6592_v48 = vpack.c.bf16 %v822_v52, %v784_v22  ;;  %v918_v9 = vrot.slane %v916_v13, 7  ;;  %v940_v34 = vor.u32 %v938_v19, %v844_v41  ;;  %v5271_v10 = vld [vmem:[#allocation10 + $0x174] ss:$8 sps:$4 sm:$0xff]   ;;  %v5274_v22 = vld [vmem:[#allocation10 + $0x64] ss:$8 sps:$4 sm:$0xff]  }
 0x15b   :  { %v906_v50 = vsel %vm835_vm4, %v894_v6, %v905_v11  ;;  %v937_v6 = vor.u32 %v936_v47, %v837_v12  ;;  %v943_v54 = vor.u32 %v941_v42, %v852_v30  ;;  %v947_v21 = vrot.slane %v871_v46, 1  ;;  %3920 = vmatprep.subr.bf16.mxu0 %v5271_v10  ;;  %v5275_v11 = vld [vmem:[#allocation10 + $0x160] ss:$8 sps:$4 sm:$0xff]   ;;  %v5278_v47 = vld [vmem:[#allocation10 + $0x50] ss:$8 sps:$4 sm:$0xff]  }
 0x15c   :  { %5174 = vmatprep.mubr.msk.bf16.mxu1 %vm1016_vm2, %v906_v50  ;;  %v913_v20 = vor.u32 %v911_v27, %v910_v24  ;;  %v921_v44 = vor.u32 %v919_v14, %v918_v9  ;;  %v924_v55 = vshrl.u32 %v6592_v48, 16  ;;  %v927_v29 = vshll.u32 %v6592_v48, 16  ;;  %v5283_v52 = vld [vmem:[#allocation10 + $0x154] ss:$8 sps:$4 sm:$0xff]   ;;  %v5284_v50 = vld [vmem:[#allocation10 + $0x40] ss:$8 sps:$4 sm:$0xff]  }
 0x15d   :  { %v939_v62 = vsel %vm935_vm7, %v937_v6, %v938_v19  ;;  %v942_v4 = vsel %vm935_vm7, %v940_v34, %v941_v42  ;;  %v945_v61 = vsel %vm935_vm7, %v943_v54, %v944_v33  ;;  %v950_v7 = vrot.slane %v879_v16, 1  ;;  %v5292_v19 = vld [vmem:[#allocation10 + $0x34] ss:$8 sps:$4 sm:$0xff]   ;;  %v5298_v6 = vld [vmem:[#allocation10 + $0x24] ss:$8 sps:$4 sm:$0xff]  }
 0x15e   :  { %v914_v25 = vsel %vm835_vm4, %v902_v59, %v913_v20  ;;  %v922_v28 = vsel %vm835_vm4, %v910_v24, %v921_v44  ;;  %v926_v36 = vrot.slane %v924_v55, 7  ;;  %v946_v41 = vor.u32 %v944_v33, %v860_v5  ;;  %v5280_v24 = vld [vmem:[#allocation10 + $0x54] ss:$8 sps:$4 sm:$0xff]   ;;  %v5290_v20 = vld [vmem:[#allocation10 + $0x30] ss:$8 sps:$4 sm:$0xff]  }
 0x15f   :  { %5175 = vmatmul.mubr.msk.bf16.gmra.mxu1 %vm1016_vm2, %v914_v25  ;;  %v949_v8 = vor.u32 %v947_v21, %v868_v35  ;;  %v953_v46 = vrot.slane %v887_v40, 1  ;;  %v956_v16 = vrot.slane %v895_v15, 1  ;;  %v952_v3 = vor.u32 %v950_v7, %v876_v39  ;;  %v5293_v44 = vld [vmem:[#allocation10 + $0x130] ss:$8 sps:$4 sm:$0xff]   ;;  %v5296_v25 = vld [vmem:[#allocation10 + $0x20] ss:$8 sps:$4 sm:$0xff]  }
 0x160   :  { %5147 = vmatmul.mubr.msk.bf16.gmra.mxu0 %vm1016_vm2, %v6592_v48  ;;  %5178 = vmatprep.mubr.msk.bf16.mxu1 %vm1016_vm2, %v922_v28  ;;  %v929_v32 = vor.u32 %v927_v29, %v926_v36  ;;  %v948_v30 = vsel %vm935_vm7, %v946_v41, %v947_v21  ;;  %v959_v1 = vrot.slane %v903_v60, 1  ;;  %v962_v2 = vrot.slane %v911_v27, 1  ;;  %v5268_v60 = vld [vmem:[#allocation10 + $0x74] ss:$8 sps:$4 sm:$0xff]   ;;  %v5281_v27 = vld [vmem:[#allocation10 + $0x150] ss:$8 sps:$4 sm:$0xff]  }
 0x161   :  { %5190 = vmatprep.mubr.msk.bf16.mxu0 %vm1016_vm2, %v939_v62  ;;  %v951_v17 = vsel %vm935_vm7, %v949_v8, %v950_v7  ;;  %v955_v23 = vor.u32 %v953_v46, %v884_v53  ;;  %v954_v5 = vsel %vm935_vm7, %v952_v3, %v953_v46  ;;  %v958_v40 = vor.u32 %v956_v16, %v892_v56  ;;  %v5286_v48 = vld [vmem:[#allocation10 + $0x44] ss:$8 sps:$4 sm:$0xff]   ;;  %v5299_v28 = vld [vmem:[#allocation10 + $0x120] ss:$8 sps:$4 sm:$0xff]   ;;  %v5304_v62 = vld [vmem:[#allocation10 + $0x14] ss:$8 sps:$4 sm:$0xff]  }
 0x162   :  { %v930_v12 = vsel %vm835_vm4, %v918_v9, %v929_v32  ;;  %v961_v38 = vor.u32 %v959_v1, %v900_v51  ;;  %v965_v53 = vrot.slane %v919_v14, 1  ;;  %v968_v15 = vrot.slane %v927_v29, 1  ;;  %3879 = vmatprep.subr.bf16.mxu1 %v5268_v60  ;;  %v5287_v9 = vld [vmem:[#allocation10 + $0x140] ss:$8 sps:$4 sm:$0xff]   ;;  %v5289_v14 = vld [vmem:[#allocation10 + $0x144] ss:$8 sps:$4 sm:$0xff]  }
 0x163   :  { %v957_v35 = vsel %vm935_vm7, %v955_v23, %v956_v16  ;;  %v960_v39 = vsel %vm935_vm7, %v958_v40, %v959_v1  ;;  %v964_v57 = vor.u32 %v962_v2, %v908_v58  ;;  %3880 = vmatpush1.bf16.msra.mxu1 %v5266_v63  ;;  %v5272_v58 = vld [vmem:[#allocation10 + $0x60] ss:$8 sps:$4 sm:$0xff]   ;;  %v5301_v36 = vld [vmem:[#allocation10 + $0x124] ss:$8 sps:$4 sm:$0xff]   ;;  %v5302_v29 = vld [vmem:[#allocation10 + $0x10] ss:$8 sps:$4 sm:$0xff]  }
 0x164   :  { %v963_v26 = vsel %vm935_vm7, %v961_v38, %v962_v2  ;;  %v967_v31 = vor.u32 %v965_v53, %v916_v13  ;;  %v970_v51 = vor.u32 %v968_v15, %v924_v55  ;;  %v5277_v13 = vld [vmem:[#allocation10 + $0x164] ss:$8 sps:$4 sm:$0xff]   ;;  %3881 = vmatprep.subr.bf16.mxu1 %v5274_v22  ;;  %v5295_v55 = vld [vmem:[#allocation10 + $0x134] ss:$8 sps:$4 sm:$0xff]   ;;  %v5305_v32 = vld [vmem:[#allocation10 + $0x110] ss:$8 sps:$4 sm:$0xff]  }
 0x165   :  { %v966_v56 = vsel %vm935_vm7, %v964_v57, %v965_v53  ;;  %v5307_v42 = vld [vmem:[#allocation10 + $0x114] ss:$8 sps:$4 sm:$0xff]   ;;  %v5310_v33 = vld [vmem:[#allocation10 + $0x4] ss:$8 sps:$4 sm:$0xff]   ;;  %v5311_v34 = vld [vmem:[#allocation10 + $0x100] ss:$8 sps:$4 sm:$0xff]  }
 0x166   :  { %v969_v37 = vsel %vm935_vm7, %v967_v31, %v968_v15  ;;  %v974_v59 = vsel %vm973_vm9, %v970_v51, 0  ;;  %v5313_v54 = vld [vmem:[#allocation10 + $0x104] ss:$8 sps:$4 sm:$0xff]   ;;  %v5319_v21 = vld [vmem:[#allocation10 + $0x1f4] ss:$8 sps:$4 sm:$0xff]   ;;  %vm1719_vm0 = vcmask 1047559  }
 0x167   :  { %5179 = vmatmul.mubr.msk.bf16.gmra.mxu1 %vm1016_vm2, %v930_v12  ;;  %v5308_v12 = vld [vmem:[#allocation10] ss:$8 sps:$4 sm:$0xff]   ;;  %v5317_v7 = vld [vmem:[#allocation10 + $0x1f0] ss:$8 sps:$4 sm:$0xff]   ;;  %v5322_v41 = vld [vmem:[#allocation10 + $0xe4] ss:$8 sps:$4 sm:$0xff]  }
 0x168   :  { %5191 = vmatmul.mubr.msk.bf16.vlgmr.msra.gmra.mxu0 %vm1016_vm2, %v942_v4  ;;  %3882 = vmatpush1.bf16.msra.mxu1 %v5272_v58  ;;  %v5316_v4 = vld [vmem:[#allocation10 + $0xf4] ss:$8 sps:$4 sm:$0xff]   ;;  %v5325_v8 = vld [vmem:[#allocation10 + $0x1e4] ss:$8 sps:$4 sm:$0xff]   ;;  %v5326_v3 = vld [vmem:[#allocation10 + $0xd0] ss:$8 sps:$4 sm:$0xff]  }
 0x169   :  { %5194 = vmatprep.mubr.msk.bf16.mxu0 %vm1016_vm2, %v945_v61  ;;  %3921 = vmatpush1.bf16.msra.mxu0 %v5269_v18  ;;  %v5314_v61 = vld [vmem:[#allocation10 + $0xf0] ss:$8 sps:$4 sm:$0xff]   ;;  %v5328_v46 = vld [vmem:[#allocation10 + $0xd4] ss:$8 sps:$4 sm:$0xff]   ;;  %v5337_v1 = vld [vmem:[#allocation10 + $0x1c4] ss:$8 sps:$4 sm:$0xff]  }
 0x16a   :  { %3922 = vmatprep.subr.bf16.mxu0 %v5277_v13  ;;  %3883 = vmatprep.subr.bf16.mxu1 %v5280_v24  ;;  %v5331_v16 = vld [vmem:[#allocation10 + $0x1d4] ss:$8 sps:$4 sm:$0xff]   ;;  %v5329_v23 = vld [vmem:[#allocation10 + $0x1d0] ss:$8 sps:$4 sm:$0xff]   ;;  %v5335_v2 = vld [vmem:[#allocation10 + $0x1c0] ss:$8 sps:$4 sm:$0xff]  }
 0x16b   :  { %v5340_v38 = vld [vmem:[#allocation10 + $0xb4] ss:$8 sps:$4 sm:$0xff]   ;;  %v5341_v53 = vld [vmem:[#allocation10 + $0x1b0] ss:$8 sps:$4 sm:$0xff]   ;;  %v5346_v15 = vld [vmem:[#allocation10 + $0xa4] ss:$8 sps:$4 sm:$0xff]  }
 0x16c   :  { %3884 = vmatpush1.bf16.msra.mxu1 %v5278_v47  ;;  %v5349_v31 = vld [vmem:[#allocation10 + $0x1a4] ss:$8 sps:$4 sm:$0xff]   ;;  %v5352_v63 = vld [vmem:[#allocation10 + $0x94] ss:$8 sps:$4 sm:$0xff]   ;;  %v5350_v22 = vld [vmem:[#allocation10 + $0x90] ss:$8 sps:$4 sm:$0xff]  }
 0x16d   :  { %3923 = vmatpush1.bf16.msra.mxu0 %v5275_v11  ;;  %3885 = vmatprep.subr.bf16.mxu1 %v5286_v48  ;;  %v5355_v10 = vld [vmem:[#allocation10 + $0x194] ss:$8 sps:$4 sm:$0xff]   ;;  %v5353_v11 = vld [vmem:[#allocation10 + $0x190] ss:$8 sps:$4 sm:$0xff]   ;;  %v5358_v13 = vld [vmem:[#allocation10 + $0x84] ss:$8 sps:$4 sm:$0xff]  }
 0x16e   :  { %3924 = vmatprep.subr.bf16.mxu0 %v5283_v52  ;;  %v5356_v48 = vld [vmem:[#allocation10 + $0x80] ss:$8 sps:$4 sm:$0xff]   ;;  %vm6000_vm1 = vmmov 0  }
 0x170   :  { %5195 = vmatmul.mubr.msk.bf16.gmra.mxu0 %vm1016_vm2, %v948_v30  ;;  %3886 = vmatpush1.bf16.msra.mxu1 %v5284_v50  ;;  %v5320_v30 = vld [vmem:[#allocation10 + $0xe0] ss:$8 sps:$4 sm:$0xff]  }
 0x171   :  { %5198 = vmatprep.mubr.msk.bf16.mxu0 %vm1016_vm2, %v951_v17  ;;  %3925 = vmatpush1.bf16.msra.mxu0 %v5281_v27  ;;  %v5323_v17 = vld [vmem:[#allocation10 + $0x1e0] ss:$8 sps:$4 sm:$0xff]   ;;  %v5361_v27 = vld [vmem:[#allocation10 + $0x184] ss:$8 sps:$4 sm:$0xff]  }
 0x172   :  { %3926 = vmatprep.subr.bf16.mxu0 %v5289_v14  ;;  %3887 = vmatprep.subr.bf16.mxu1 %v5292_v19  ;;  %v5364_v14 = vld [vmem:[#allocation10 + $0x274] ss:$8 sps:$4 sm:$0xff]  }
 0x174   :  { %3888 = vmatpush1.bf16.msra.mxu1 %v5290_v20  ;;  %v5367_v20 = vld [vmem:[#allocation10 + $0x374] ss:$8 sps:$4 sm:$0xff]  }
 0x175   :  { %3927 = vmatpush1.bf16.msra.mxu0 %v5287_v9  ;;  %3889 = vmatprep.subr.bf16.mxu1 %v5298_v6  ;;  %v5359_v9 = vld [vmem:[#allocation10 + $0x180] ss:$8 sps:$4 sm:$0xff]  }
 0x176   :  { %3928 = vmatprep.subr.bf16.mxu0 %v5295_v55 }
 0x178   :  { %5199 = vmatmul.mubr.msk.bf16.gmra.mxu0 %vm1016_vm2, %v954_v5  ;;  %3890 = vmatpush1.bf16.msra.mxu1 %v5296_v25  ;;  %v5334_v5 = vld [vmem:[#allocation10 + $0xc4] ss:$8 sps:$4 sm:$0xff]  }
 0x179   :  { %5202 = vmatprep.mubr.msk.bf16.mxu0 %vm1016_vm2, %v957_v35  ;;  %3929 = vmatpush1.bf16.msra.mxu0 %v5293_v44  ;;  %v5332_v35 = vld [vmem:[#allocation10 + $0xc0] ss:$8 sps:$4 sm:$0xff]  }
 0x17a   :  { %3930 = vmatprep.subr.bf16.mxu0 %v5301_v36  ;;  %3891 = vmatprep.subr.bf16.mxu1 %v5304_v62 }
 0x17c   :  { %3892 = vmatpush1.bf16.msra.mxu1 %v5302_v29 }
 0x17d   :  { %3931 = vmatpush1.bf16.msra.mxu0 %v5299_v28  ;;  %3893 = vmatprep.subr.bf16.mxu1 %v5310_v33 }
 0x17e   :  { %3932 = vmatprep.subr.bf16.mxu0 %v5307_v42 }
 0x180   :  { %5203 = vmatmul.mubr.msk.bf16.gmra.mxu0 %vm1016_vm2, %v960_v39  ;;  %3894 = vmatpush1.bf16.msra.mxu1 %v5308_v12  ;;  %v5343_v39 = vld [vmem:[#allocation10 + $0x1b4] ss:$8 sps:$4 sm:$0xff]  }
 0x181   :  { %5206 = vmatprep.mubr.msk.bf16.mxu0 %vm1016_vm2, %v963_v26  ;;  %3933 = vmatpush1.bf16.msra.mxu0 %v5305_v32  ;;  %v5338_v26 = vld [vmem:[#allocation10 + $0xb0] ss:$8 sps:$4 sm:$0xff]  }
 0x182   :  { %3934 = vmatprep.subr.bf16.mxu0 %v5313_v54  ;;  %3895 = vmatprep.subr.bf16.mxu1 %v5316_v4 }
 0x184   :  { %3896 = vmatpush2.bf16.msra.mxu1 %v5314_v61 }
 0x185   :  { %3935 = vmatpush1.bf16.msra.mxu0 %v5311_v34  ;;  %3897 = vmatprep.subr.bf16.mxu1 %v5322_v41 }
 0x186   :  { %3936 = vmatprep.subr.bf16.mxu0 %v5319_v21 }
 0x188   :  { %5207 = vmatmul.mubr.msk.bf16.gmra.mxu0 %vm1016_vm2, %v966_v56  ;;  %3898 = vmatpush2.bf16.msra.mxu1 %v5320_v30 }
 0x189   :  { %5210 = vmatprep.mubr.msk.bf16.mxu0 %vm1016_vm2, %v969_v37  ;;  %3937 = vmatpush2.bf16.msra.mxu0 %v5317_v7  ;;  %v5344_v37 = vld [vmem:[#allocation10 + $0xa0] ss:$8 sps:$4 sm:$0xff]  }
 0x18a   :  { %3938 = vmatprep.subr.bf16.mxu0 %v5325_v8  ;;  %3899 = vmatprep.subr.bf16.mxu1 %v5328_v46 }
 0x18c   :  { %3900 = vmatpush2.bf16.msra.mxu1 %v5326_v3 }
 0x18d   :  { %3939 = vmatpush2.bf16.msra.mxu0 %v5323_v17  ;;  %3901 = vmatprep.subr.bf16.mxu1 %v5334_v5 }
 0x18e   :  { %3940 = vmatprep.subr.bf16.mxu0 %v5331_v16 }
 0x190   :  { %5211 = vmatmul.mubr.msk.bf16.gmra.mxu0 %vm1016_vm2, %v974_v59  ;;  %3902 = vmatpush2.bf16.msra.mxu1 %v5332_v35  ;;  %v5347_v59 = vld [vmem:[#allocation10 + $0x1a0] ss:$8 sps:$4 sm:$0xff]  }
 0x191   :  { %3941 = vmatpush2.bf16.msra.mxu0 %v5329_v23  ;;  %3903 = vmatprep.subr.bf16.mxu1 %v5340_v38 }
 0x192   :  { %3942 = vmatprep.subr.bf16.mxu0 %v5337_v1 }
 0x194   :  { %3904 = vmatpush2.bf16.msra.mxu1 %v5338_v26 }
 0x195   :  { %3943 = vmatpush2.bf16.msra.mxu0 %v5335_v2  ;;  %3905 = vmatprep.subr.bf16.mxu1 %v5346_v15 }
 0x196   :  { %3944 = vmatprep.subr.bf16.mxu0 %v5343_v39 }
 0x198   :  { %3906 = vmatpush2.bf16.msra.mxu1 %v5344_v37 }
 0x199   :  { %3945 = vmatpush2.bf16.msra.mxu0 %v5341_v53  ;;  %3907 = vmatprep.subr.bf16.mxu1 %v5352_v63 }
 0x19a   :  { %3946 = vmatprep.subr.bf16.mxu0 %v5349_v31 }
 0x19c   :  { %3908 = vmatpush2.bf16.msra.mxu1 %v5350_v22 }
 0x19d   :  { %3947 = vmatpush2.bf16.msra.mxu0 %v5347_v59  ;;  %3909 = vmatprep.subr.bf16.mxu1 %v5358_v13 }
 0x19e   :  { %3948 = vmatprep.subr.bf16.mxu0 %v5355_v10 }
 0x1a0   :  { %3910 = vmatpush2.bf16.msra.mxu1 %v5356_v48  ;;  %v6726_v48 = vld [vmem:[#allocation8] ss:$0 sm:$0xff] }
 0x1a1   :  { %3949 = vmatpush2.bf16.msra.mxu0 %v5353_v11  ;;  %3961 = vmatprep.subr.bf16.mxu1 %v5364_v14 }
 0x1a2   :  { %3950 = vmatprep.subr.bf16.mxu0 %v5361_v27 }
 0x1a5   :  { %3951 = vmatpush2.bf16.msra.mxu0 %v5359_v9 }
 0x1a6   :  { %4002 = vmatprep.subr.bf16.mxu0 %v5367_v20 }
 0x1db   :  { %v5128_v40 = vpop.f32.mrf.mxu0 }
 0x1dd   :  { %v6668_v57 = vpop.f32.mrf.mxu0 }
 0x1df   :  { %v6672_v60 = vpop.f32.mrf.mxu0 }
 0x1e1   :  { %v1078_v47 = vpop.f32.mrf.mxu0 }
 0x1e7   :  { %v5160_v56 = vpop.f32.mrf.mxu1 }
 0x1e8   :  { %v6670_v51 = vadd.f32 %v5160_v56, %v5128_v40 }
 0x1e9   :  { %v6674_v18 = vpop.f32.mrf.mxu1 }
 0x1ea   :  { %v1265_v9 = vadd.f32 %v6674_v18, %v6668_v57 }
 0x1eb   :  { %v6676_v58 = vpop.f32.mrf.mxu1 }
 0x1ed   :  { %v1267_v24 = vpop.f32.mrf.mxu1 }
 0x1ee   :  { %v6678_v52 = vadd.f32 %v1267_v24, %v1078_v47  ;;  %v6680_v50 = vpop.f32.mrf.mxu0 }
 0x1f0   :  { %v1091_v19 = vpop.f32.mrf.mxu0 }
 0x1f2   :  { %v5133_v44 = vpop.f32.mrf.mxu0 }
 0x1f4   :  { %v1094_v25 = vpop.f32.mrf.mxu0 }
 0x1f9   :  { %v6682_v55 = vpop.f32.mrf.mxu1 }
 0x1fb   :  { %v1280_v6 = vpop.f32.mrf.mxu1 }
 0x1fc   :  { %v6684_v28 = vadd.f32 %v1280_v6, %v1091_v19 }
 0x1fd   :  { %v5165_v36 = vpop.f32.mrf.mxu1 }
 0x1fe   :  { %v5136_v29 = vpop.f32.mrf.mxu0  ;;  %v6686_v62 = vadd.f32 %v5165_v36, %v5133_v44 }
 0x1ff   :  { %v1283_v32 = vpop.f32.mrf.mxu1 }
 0x200   :  { %v1107_v42 = vpop.f32.mrf.mxu0  ;;  %v6688_v12 = vadd.f32 %v1283_v32, %v1094_v25  ;;  %v1276_v25 = vadd.f32 %v6676_v58, %v6672_v60 }
 0x202   :  { %v5137_v33 = vpop.f32.mrf.mxu0 }
 0x204   :  { %v6690_v54 = vpop.f32.mrf.mxu0 }
 0x207   :  { %v5168_v34 = vpop.f32.mrf.mxu1 }
 0x208   :  { %v6692_v4 = vadd.f32 %v5168_v34, %v5136_v29 }
 0x209   :  { %v1296_v61 = vpop.f32.mrf.mxu1 }
 0x20a   :  { %v6694_v21 = vadd.f32 %v1296_v61, %v1107_v42  ;;  %v5140_v7 = vpop.f32.mrf.mxu0 }
 0x20b   :  { %v5169_v41 = vpop.f32.mrf.mxu1 }
 0x20c   :  { %v6696_v8 = vadd.f32 %v5169_v41, %v5137_v33  ;;  %v6698_v30 = vpop.f32.mrf.mxu0 }
 0x20d   :  { %v6702_v46 = vpop.f32.mrf.mxu1 }
 0x20e   :  { %v6700_v17 = vpop.f32.mrf.mxu0 }
 0x210   :  { %v1126_v16 = vpop.f32.mrf.mxu0 }
 0x217   :  { %v5172_v3 = vpop.f32.mrf.mxu1 }
 0x218   :  { %v6704_v23 = vadd.f32 %v5172_v3, %v5140_v7  ;;  %v6706_v5 = vpop.f32.mrf.mxu0  ;;  %v1289_v7 = vadd.f32 %v6682_v55, %v6680_v50 }
 0x219   :  { %v6708_v35 = vpop.f32.mrf.mxu1 }
 0x21a   :  { %v1139_v1 = vpop.f32.mrf.mxu0 }
 0x21b   :  { %v6710_v2 = vpop.f32.mrf.mxu1 }
 0x21c   :  { %v5145_v40 = vpop.f32.mrf.mxu0 }
 0x21d   :  { %v1315_v38 = vpop.f32.mrf.mxu1 }
 0x21e   :  { %v6712_v39 = vadd.f32 %v1315_v38, %v1126_v16  ;;  %v1142_v26 = vpop.f32.mrf.mxu0 }
 0x21f   :  { %v6714_v53 = vpop.f32.mrf.mxu1 }
 0x220   :  { %v5148_v15 = vpop.f32.mrf.mxu0 }
 0x221   :  { %v1328_v31 = vpop.f32.mrf.mxu1 }
 0x222   :  { %v6716_v56 = vadd.f32 %v1328_v31, %v1139_v1  ;;  %v1155_v37 = vpop.f32.mrf.mxu0 }
 0x223   :  { %v5177_v59 = vpop.f32.mrf.mxu1 }
 0x224   :  { %v6718_v63 = vadd.f32 %v5177_v59, %v5145_v40  ;;  %v5149_v10 = vpop.f32.mrf.mxu0 }
 0x225   :  { %v1331_v22 = vpop.f32.mrf.mxu1 }
 0x226   :  { %v6720_v11 = vadd.f32 %v1331_v22, %v1142_v26  ;;  %v6722_v13 = vpop.f32.mrf.mxu0 }
 0x227   :  { %v5180_v47 = vpop.f32.mrf.mxu1 }
 0x228   :  { %v6724_v24 = vadd.f32 %v5180_v47, %v5148_v15  ;;  %v5192_v27 = vpop.f32.mrf.mxu0 }
 0x229   :  { %v1559_v14 = vadd.f32 %v5192_v27, %v6670_v51  ;;  %v1344_v20 = vpop.f32.mrf.mxu1 }
 0x22a   :  { %v6731_v19 = vadd.f32 %v1344_v20, %v1155_v37  ;;  %v1462_v44 = vpop.f32.mrf.mxu0  ;;  %v1300_v20 = vadd.f32 %v6702_v46, %v6690_v54  ;;  %v6777_v54 = vadd.f32 %v6714_v53, %v6706_v5 }
 0x22b   :  { %v1590_v6 = vadd.f32 %v6726_v48, %v1559_v14  ;;  %v1557_v36 = vadd.f32 %v1462_v44, %v1265_v9  ;;  %v5181_v29 = vpop.f32.mrf.mxu1  ;;  %v1313_v44 = vadd.f32 %v6708_v35, %v6698_v30 }
 0x22c   :  { %v6736_v32 = vadd.f32 %v5181_v29, %v5149_v10  ;;  %v5193_v42 = vpop.f32.mrf.mxu0 }
 0x22d   :  { %v1588_v33 = vadd.f32 %v6726_v48, %v1557_v36  ;;  %v1560_v34 = vadd.f32 %v5193_v42, %v1276_v25  ;;  %v1614_v58 = vmax.f32 %v1590_v6, 0.0  ;;  %v1347_v25 = vpop.f32.mrf.mxu1 }
 0x22e   :  { %v1465_v57 = vpop.f32.mrf.mxu0 }
 0x22f   :  { %v1612_v18 = vmax.f32 %v1588_v33, 0.0  ;;  %v1591_v51 = vadd.f32 %v6726_v48, %v1560_v34  ;;  %v1558_v61 = vadd.f32 %v1465_v57, %v6678_v52  ;;  %v5031_v37 = vpack.c.bf16 %v1614_v58, %v1614_v58 }
 0x230   :  { %v5196_v60 = vpop.f32.mrf.mxu0  ;;  %v1324_v57 = vadd.f32 %v6710_v2, %v6700_v17 }
 0x231   :  { %v5015_v41 = vpack.c.bf16 %v1612_v18, %v1612_v18  ;;  %v1615_v16 = vmax.f32 %v1591_v51, 0.0  ;;  %v6744_v3 = vadd.f32 %v6726_v48, %v1558_v61  ;;  %v1563_v1 = vadd.f32 %v5196_v60, %v1289_v7 }
 0x232   :  { %v1478_v40 = vpop.f32.mrf.mxu0  ;;  %v1987_v42 = vunpack.c.l.b16 %v5031_v37  ;;  %v6784_v18 = vadd.f32 %v1347_v25, %v6722_v13 }
 0x233   :  { %v6746_v38 = vunpack.c.l.b16 %v5015_v41  ;;  %v5016_v26 = vpack.c.bf16 %v1615_v16, %v1615_v16  ;;  %v1594_v15 = vadd.f32 %v6726_v48, %v1563_v1  ;;  %v1561_v31 = vadd.f32 %v1478_v40, %v6684_v28 }
 0x234   :  { %v5197_v52 = vpop.f32.mrf.mxu0  ;;  %v2011_v60 = vrot.slane %v1987_v42, 1 }
 0x235   :  { %v6750_v50 = vunpack.c.l.b16 %v5016_v26  ;;  %v1564_v55 = vadd.f32 %v5197_v52, %v6686_v62  ;;  %v1723_v59 = vrot.slane %v6746_v38, 1  ;;  %v1618_v10 = vmax.f32 %v1594_v15, 0.0 }
 0x236   :  { %v6755_v22 = vadd.f32 %v6726_v48, %v1561_v31  ;;  %v1481_v47 = vpop.f32.mrf.mxu0  ;;  %v1755_v27 = vrot.slane %v6746_v38, 3  ;;  %v1739_v41 = vrot.slane %v6746_v38, 2  ;;  %v2027_v15 = vrot.slane %v1987_v42, 2 }
 0x237   :  { %v6759_v9 = vadd.f32 %v6726_v48, %v1564_v55  ;;  %v1562_v28 = vadd.f32 %v1481_v47, %v6688_v12  ;;  %v1724_v14 = vsel %vm1701_vm10, %v6750_v50, %v1723_v59  ;;  %v1756_v62 = vrot.slane %v6750_v50, 2 }
 0x238   :  { %v5017_v6 = vpack.c.bf16 %v1618_v10, %v1618_v10  ;;  %v5200_v36 = vpop.f32.mrf.mxu0  ;;  %v1700_v29 = vrot.slane %v6750_v50, 7  ;;  %v1740_v7 = vrot.slane %v6750_v50, 1  ;;  %v1613_v55 = vmax.f32 %v6744_v3, 0.0 }
 0x239   :  { %v1593_v33 = vadd.f32 %v6726_v48, %v1562_v28  ;;  %v1567_v12 = vadd.f32 %v5200_v36, %v6692_v4  ;;  %v1757_v34 = vsel %vm1701_vm10, %v1756_v62, %v1755_v27  ;;  %v1787_v47 = vrot.slane %v6746_v38, 5 }
 0x23a   :  { %v6779_v30 = vunpack.c.l.b16 %v5017_v6  ;;  %v1494_v46 = vpop.f32.mrf.mxu0  ;;  %v1702_v35 = vsel %vm1701_vm10, %v1700_v29, %v6746_v38  ;;  %v1788_v62 = vrot.slane %v6750_v50, 4 }
 0x23b   :  { %v1617_v51 = vmax.f32 %v1593_v33, 0.0  ;;  %v6787_v4 = vadd.f32 %v6726_v48, %v1567_v12  ;;  %v1565_v61 = vadd.f32 %v1494_v46, %v6694_v21 }
 0x23c   :  { %v5201_v17 = vpop.f32.mrf.mxu0  ;;  %v1725_v2 = vrot.slane %v6779_v30, 7  ;;  %v1758_v5 = vrot.slane %v6779_v30, 1  ;;  %v1703_v53 = vrot.slane %v6779_v30, 6 }
 0x23d   :  { %v5032_v58 = vpack.c.bf16 %v1617_v51, %v1617_v51  ;;  %v1596_v13 = vadd.f32 %v6726_v48, %v1565_v61  ;;  %v1568_v16 = vadd.f32 %v5201_v17, %v6696_v8  ;;  %v1741_v8 = vsel %vm1701_vm10, %v1740_v7, %v1739_v41 }
 0x23e   :  { %v1497_v1 = vpop.f32.mrf.mxu0  ;;  %v6798_v21 = vsel %vm1704_vm11, %v1725_v2, %v1724_v14  ;;  %v6801_v40 = vsel %vm1704_vm11, %v1758_v5, %v1757_v34  ;;  %v6804_v26 = vsel %vm1704_vm11, %v1703_v53, %v1702_v35  ;;  %v6818_v34 = vsel %vm1704_vm11, %v6779_v30, %v1741_v8 }
 0x23f   :  { %v1988_v31 = vunpack.c.l.b16 %v5032_v58  ;;  %v1620_v52 = vmax.f32 %v1596_v13, 0.0  ;;  %v1566_v37 = vadd.f32 %v1497_v1, %v1300_v20  ;;  %v1599_v59 = vadd.f32 %v6726_v48, %v1568_v16 }
 0x240   :  { %v5204_v10 = vpop.f32.mrf.mxu0  ;;  %v5023_v2 = vpack.c.bf16 %v1613_v55, %v1613_v55 }
 0x241   :  { %v1995_v27 = vrot.slane %v1988_v31, 7  ;;  %v2012_v28 = vsel %vm1701_vm10, %v1988_v31, %v2011_v60  ;;  %v2028_v14 = vrot.slane %v1988_v31, 1  ;;  %v5033_v25 = vpack.c.bf16 %v1620_v52, %v1620_v52 }
 0x242   :  { %v1623_v6 = vmax.f32 %v1599_v59, 0.0  ;;  %v1597_v20 = vadd.f32 %v6726_v48, %v1566_v37  ;;  %v1571_v3 = vadd.f32 %v5204_v10, %v6704_v23  ;;  %v1510_v36 = vpop.f32.mrf.mxu0 }
 0x243   :  { %v1996_v29 = vsel %vm1701_vm10, %v1995_v27, %v1987_v42  ;;  %v2029_v33 = vsel %vm1701_vm10, %v2028_v14, %v2027_v15  ;;  %v1569_v12 = vadd.f32 %v1510_v36, %v1313_v44  ;;  %v1989_v46 = vunpack.c.l.b16 %v5033_v25 }
 0x244   :  { %v5034_v35 = vpack.c.bf16 %v1623_v6, %v1623_v6  ;;  %v1621_v51 = vmax.f32 %v1597_v20, 0.0  ;;  %v1602_v61 = vadd.f32 %v6726_v48, %v1571_v3  ;;  %v5205_v17 = vpop.f32.mrf.mxu0  ;;  %v6823_v42 = vsel %vm1701_vm10, %v1788_v62, %v1787_v47 }
 0x245   :  { %v1600_v23 = vadd.f32 %v6726_v48, %v1569_v12  ;;  %v1572_v5 = vadd.f32 %v5205_v17, %v1324_v57  ;;  %v1997_v53 = vrot.slane %v1989_v46, 6  ;;  %v2013_v44 = vrot.slane %v1989_v46, 7 }
 0x246   :  { %v2030_v7 = vsel %vm1704_vm11, %v1989_v46, %v2029_v33  ;;  %v1990_v60 = vunpack.c.l.b16 %v5034_v35  ;;  %v1513_v58 = vpop.f32.mrf.mxu0  ;;  %v5018_v13 = vpack.c.bf16 %v1621_v51, %v1621_v51  ;;  %v1626_v41 = vmax.f32 %v1602_v61, 0.0 }
 0x247   :  { %v1624_v16 = vmax.f32 %v1600_v23, 0.0  ;;  %v1603_v1 = vadd.f32 %v6726_v48, %v1572_v5  ;;  %v1998_v15 = vsel %vm1704_vm11, %v1997_v53, %v1996_v29  ;;  %v2014_v31 = vsel %vm1704_vm11, %v2013_v44, %v2012_v28 }
 0x248   :  { %v1999_v52 = vrot.slane %v1990_v60, 5  ;;  %v2015_v57 = vrot.slane %v1990_v60, 6  ;;  %v5208_v37 = vpop.f32.mrf.mxu0  ;;  %v2031_v55 = vrot.slane %v1990_v60, 7  ;;  %v6829_v59 = vunpack.c.l.b16 %v5018_v13 }
 0x249   :  { %v5035_v10 = vpack.c.bf16 %v1626_v41, %v1626_v41  ;;  %v5019_v8 = vpack.c.bf16 %v1624_v16, %v1624_v16  ;;  %v1627_v14 = vmax.f32 %v1603_v1, 0.0  ;;  %v1570_v62 = vadd.f32 %v1513_v58, %v6712_v39 }
 0x24a   :  { %v2000_v47 = vsel %vm1707_vm12, %v1999_v52, %v1998_v15  ;;  %v6833_v27 = vsel %vm1707_vm12, %v2015_v57, %v2014_v31  ;;  %v1526_v25 = vpop.f32.mrf.mxu0  ;;  %v1616_v6 = vmax.f32 %v6755_v22, 0.0  ;;  %v2032_v28 = vsel %vm1707_vm12, %v2031_v55, %v2030_v7 }
 0x24b   :  { %v6838_v20 = vunpack.c.l.b16 %v5035_v10  ;;  %v1575_v3 = vadd.f32 %v5208_v37, %v6777_v54  ;;  %v1619_v36 = vmax.f32 %v6759_v9, 0.0  ;;  %v1601_v29 = vadd.f32 %v6726_v48, %v1570_v62 }
 0x24c   :  { %v1573_v33 = vadd.f32 %v1526_v25, %v6716_v56  ;;  %v5209_v12 = vpop.f32.mrf.mxu0  ;;  %v1727_v46 = vrot.slane %v6829_v59, 6  ;;  %v5020_v22 = vpack.c.bf16 %v1627_v14, %v1627_v14  ;;  %v1622_v61 = vmax.f32 %v6787_v4, 0.0 }
 0x24d   :  { %v2001_v39 = vrot.slane %v6838_v20, 4  ;;  %v2033_v35 = vrot.slane %v6838_v20, 6  ;;  %v1606_v51 = vadd.f32 %v6726_v48, %v1575_v3  ;;  %v6849_v17 = vunpack.c.l.b16 %v5019_v8 }
 0x24e   :  { %v1604_v9 = vadd.f32 %v6726_v48, %v1573_v33  ;;  %v1576_v54 = vadd.f32 %v5209_v12, %v6718_v63  ;;  %v1529_v23 = vpop.f32.mrf.mxu0  ;;  %v1625_v7 = vmax.f32 %v1601_v29, 0.0  ;;  %v1728_v13 = vsel %vm1707_vm12, %v1727_v46, %v6798_v21 }
 0x24f   :  { %v6854_v56 = vsel %vm1710_vm13, %v2001_v39, %v2000_v47  ;;  %v6857_v5 = vsel %vm1710_vm13, %v2033_v35, %v2032_v28  ;;  %v1630_v53 = vmax.f32 %v1606_v51, 0.0  ;;  %v1574_v44 = vadd.f32 %v1529_v23, %v6720_v11 }
 0x250   :  { %v1628_v60 = vmax.f32 %v1604_v9, 0.0  ;;  %v1607_v4 = vadd.f32 %v6726_v48, %v1576_v54  ;;  %v5212_v58 = vpop.f32.mrf.mxu0  ;;  %v6863_v63 = vunpack.c.l.b16 %v5023_v2  ;;  %v6865_v41 = vunpack.c.l.b16 %v5020_v22 }
 0x251   :  { %v1605_v16 = vadd.f32 %v6726_v48, %v1574_v44  ;;  %v1579_v1 = vadd.f32 %v5212_v58, %v6724_v24  ;;  %v5024_v15 = vpack.c.bf16 %v1616_v6, %v1616_v6  ;;  %v5021_v31 = vpack.c.bf16 %v1630_v53, %v1630_v53 }
 0x252   :  { %v1631_v52 = vmax.f32 %v1607_v4, 0.0  ;;  %v1542_v11 = vpop.f32.mrf.mxu0  ;;  %v1729_v57 = vrot.slane %v6849_v17, 5  ;;  %v5025_v37 = vpack.c.bf16 %v1619_v36, %v1619_v36  ;;  %v5026_v2 = vpack.c.bf16 %v1622_v61, %v1622_v61 }
 0x253   :  { %v1629_v55 = vmax.f32 %v1605_v16, 0.0  ;;  %v1610_v10 = vadd.f32 %v6726_v48, %v1579_v1  ;;  %v1577_v21 = vadd.f32 %v1542_v11, %v6731_v19  ;;  %v5027_v8 = vpack.c.bf16 %v1625_v7, %v1625_v7 }
 0x254   :  { %v5028_v47 = vpack.c.bf16 %v1628_v60, %v1628_v60  ;;  %v5213_v14 = vpop.f32.mrf.mxu0  ;;  %v1760_v24 = vsel %vm1707_vm12, %v6829_v59, %v6801_v40  ;;  %v5029_v62 = vpack.c.bf16 %v1631_v52, %v1631_v52  ;;  %v1731_v28 = vrot.slane %v6865_v41, 4 }
 0x255   :  { %v6876_v25 = vadd.f32 %v6726_v48, %v1577_v21  ;;  %v1580_v6 = vadd.f32 %v5213_v14, %v6736_v32  ;;  %v6880_v3 = vunpack.c.l.b16 %v5024_v15  ;;  %v6882_v19 = vunpack.c.l.b16 %v5021_v31 }
 0x256   :  { %v5036_v36 = vpack.c.bf16 %v1629_v55, %v1629_v55  ;;  %v1545_v29 = vpop.f32.mrf.mxu0  ;;  %v1730_v33 = vsel %vm1710_vm13, %v1729_v57, %v1728_v13  ;;  %v6885_v12 = vunpack.c.l.b16 %v5025_v37  ;;  %v1634_v40 = vmax.f32 %v1610_v10, 0.0 }
 0x257   :  { %v6888_v46 = vadd.f32 %v6726_v48, %v1580_v6  ;;  %v1761_v39 = vrot.slane %v6849_v17, 7  ;;  %v6891_v32 = vunpack.c.l.b16 %v5026_v2  ;;  %v2017_v35 = vrot.slane %v6838_v20, 5 }
 0x258   :  { %v1578_v22 = vadd.f32 %v1545_v29, %v6784_v18  ;;  %v1790_v51 = vrot.slane %v6779_v30, 3  ;;  %v6896_v61 = vunpack.c.l.b16 %v5027_v8  ;;  %v6898_v9 = vunpack.c.l.b16 %v5028_v47 }
 0x259   :  { %v6900_v54 = vunpack.c.l.b16 %v5029_v62  ;;  %v1732_v23 = vsel %vm1713_vm14, %v1731_v28, %v1730_v33  ;;  %v6903_v53 = vunpack.c.l.b16 %v5036_v36  ;;  %v1733_v7 = vrot.slane %v6882_v19, 3 }
 0x25a   :  { %v1609_v44 = vadd.f32 %v6726_v48, %v1578_v22  ;;  %v1763_v60 = vrot.slane %v6865_v41, 6  ;;  %v5030_v4 = vpack.c.bf16 %v1634_v40, %v1634_v40  ;;  %v1762_v18 = vsel %vm1710_vm13, %v1761_v39, %v1760_v24 }
 0x25b   :  { %v1706_v58 = vrot.slane %v6829_v59, 5  ;;  %v1709_v13 = vrot.slane %v6849_v17, 4  ;;  %v1632_v16 = vmax.f32 %v6876_v25, 0.0  ;;  %v1765_v15 = vrot.slane %v6882_v19, 5 }
 0x25c   :  { %v1633_v1 = vmax.f32 %v1609_v44, 0.0  ;;  %v1712_v31 = vrot.slane %v6865_v41, 3  ;;  %v1715_v52 = vrot.slane %v6882_v19, 2  ;;  %v1743_v11 = vrot.slane %v6829_v59, 7 }
 0x25d   :  { %v1708_v48 = vsel %vm1707_vm12, %v1706_v58, %v6804_v26  ;;  %v1745_v57 = vrot.slane %v6849_v17, 6  ;;  %v2003_v37 = vrot.slane %v6903_v53, 3  ;;  %v2019_v55 = vrot.slane %v6903_v53, 4 }
 0x25e   :  { %v1734_v10 = vsel %vm1716_vm15, %v1733_v7, %v1732_v23  ;;  %v1764_v21 = vsel %vm1713_vm14, %v1763_v60, %v1762_v18  ;;  %v5022_v2 = vpack.c.bf16 %v1633_v1, %v1633_v1  ;;  %v1711_v8 = vsel %vm1710_vm13, %v1709_v13, %v1708_v48 }
 0x25f   :  { %v1744_v26 = vsel %vm1707_vm12, %v1743_v11, %v6818_v34  ;;  %v1747_v47 = vrot.slane %v6865_v41, 5  ;;  %v2035_v14 = vrot.slane %v6903_v53, 5  ;;  %v6928_v24 = vunpack.c.l.b16 %v5030_v4  ;;  %v5365_v11 = vld [vmem:[#allocation10 + $0x370] ss:$8 sps:$4 sm:$0xff]  }
 0x260   :  { %v1766_v62 = vsel %vm1716_vm15, %v1765_v15, %v1764_v21  ;;  %v1714_v6 = vsel %vm1713_vm14, %v1712_v31, %v1711_v8  ;;  %v6932_v28 = vunpack.c.l.b16 %v5022_v2  ;;  %v1746_v29 = vsel %vm1710_vm13, %v1745_v57, %v1744_v26 }
 0x261   :  { %v1717_v36 = vsel %vm1716_vm15, %v1715_v52, %v1714_v6  ;;  %v1749_v33 = vrot.slane %v6882_v19, 4  ;;  %v1748_v34 = vsel %vm1713_vm14, %v1747_v47, %v1746_v29  ;;  %v1791_v40 = vsel %vm1704_vm11, %v1790_v51, %v6823_v42  ;;  %v5362_v52 = vld [vmem:[#allocation10 + $0x270] ss:$8 sps:$4 sm:$0xff]   ;;  %v5370_v47 = vld [vmem:[#allocation10 + $0x264] ss:$8 sps:$4 sm:$0xff]  }
 0x262   :  { %v1792_v39 = vrot.slane %v6829_v59, 2  ;;  %v1794_v22 = vrot.slane %v6849_v17, 1  ;;  %v1735_v23 = vrot.slane %v6932_v28, 2  ;;  %v1767_v44 = vrot.slane %v6932_v28, 4 }
 0x263   :  { %v1718_v7 = vrot.slane %v6932_v28, 1  ;;  %v1750_v60 = vsel %vm1716_vm15, %v1749_v33, %v1748_v34  ;;  %v1751_v4 = vrot.slane %v6932_v28, 3  ;;  %v1797_v58 = vrot.slane %v6882_v19, 7 }
 0x264   :  { %v1793_v18 = vsel %vm1707_vm12, %v1792_v39, %v1791_v40  ;;  %v1799_v42 = vrot.slane %v6932_v28, 6  ;;  %v1736_v51 = vsel %vm1719_vm0, %v1735_v23, %v1734_v10  ;;  %v1768_v13 = vsel %vm1719_vm0, %v1767_v44, %v1766_v62  ;;  %v5373_v62 = vld [vmem:[#allocation10 + $0x364] ss:$8 sps:$4 sm:$0xff]   ;;  %v5368_v23 = vld [vmem:[#allocation10 + $0x260] ss:$8 sps:$4 sm:$0xff]  }
 0x265   :  { %v1720_v1 = vsel %vm1719_vm0, %v1718_v7, %v1717_v36  ;;  %v1795_v15 = vsel %vm1710_vm13, %v1794_v22, %v1793_v18  ;;  %v1737_v31 = vpack.c.b16 %v1736_v51, %v1736_v51  ;;  %v1769_v48 = vpack.c.b16 %v1768_v13, %v1768_v13  ;;  %v5379_v51 = vld [vmem:[#allocation10 + $0x354] ss:$8 sps:$4 sm:$0xff]  }
 0x266   :  { %v1721_v57 = vpack.c.b16 %v1720_v1, %v1720_v1  ;;  %v1752_v21 = vsel %vm1719_vm0, %v1751_v4, %v1750_v60  ;;  %v1796_v8 = vsel %vm1713_vm14, %v6865_v41, %v1795_v15  ;;  %v1819_v26 = vrot.slane %v6746_v38, 7  ;;  %v5371_v60 = vld [vmem:[#allocation10 + $0x360] ss:$8 sps:$4 sm:$0xff]   ;;  %v5376_v4 = vld [vmem:[#allocation10 + $0x254] ss:$8 sps:$4 sm:$0xff]  }
 0x267   :  { %v1753_v2 = vpack.c.b16 %v1752_v21, %v1752_v21  ;;  %v1820_v10 = vrot.slane %v6750_v50, 6  ;;  %3911 = vmatprep.mubr.bf16.mxu1 %v1737_v31  ;;  %3952 = vmatprep.mubr.bf16.mxu0 %v1769_v48  ;;  %v1798_v6 = vsel %vm1716_vm15, %v1797_v58, %v1796_v8  ;;  %v1822_v36 = vrot.slane %v6779_v30, 5 }
 0x268   :  { %v1824_v29 = vrot.slane %v6829_v59, 4  ;;  %v1826_v33 = vrot.slane %v6849_v17, 3  ;;  %3912 = vmatmul.mubr.bf16.vlgmr.msra.gmra.mxu1 %v1721_v57  ;;  %v1800_v34 = vsel %vm1719_vm0, %v1799_v42, %v1798_v6  ;;  %v1828_v39 = vrot.slane %v6865_v41, 2 }
 0x269   :  { %3953 = vmatmul.mubr.bf16.vlgmr.msra.gmra.mxu0 %v1753_v2  ;;  %v1821_v40 = vsel %vm1701_vm10, %v1820_v10, %v1819_v26  ;;  %v1830_v22 = vrot.slane %v6882_v19, 1  ;;  %3962 = vmatpush1.bf16.msra.mxu1 %v5362_v52  ;;  %v1801_v44 = vpack.c.b16 %v1800_v34, %v1800_v34  ;;  %v1771_v18 = vrot.slane %v6746_v38, 4  ;;  %v5374_v10 = vld [vmem:[#allocation10 + $0x250] ss:$8 sps:$4 sm:$0xff]  }
 0x26a   :  { %4003 = vmatpush1.bf16.msra.mxu0 %v5365_v11  ;;  %v1823_v7 = vsel %vm1704_vm11, %v1822_v36, %v1821_v40  ;;  %v1772_v58 = vrot.slane %v6750_v50, 3  ;;  %3963 = vmatprep.subr.bf16.mxu1 %v5370_v47  ;;  %v1774_v13 = vrot.slane %v6779_v30, 2  ;;  %v1776_v1 = vrot.slane %v6829_v59, 1 }
 0x26b   :  { %v1825_v42 = vsel %vm1707_vm12, %v1824_v29, %v1823_v7  ;;  %4004 = vmatprep.subr.bf16.mxu0 %v5373_v62  ;;  %v1779_v15 = vrot.slane %v6865_v41, 7  ;;  %3993 = vmatprep.mubr.bf16.mxu1 %v1801_v44  ;;  %v1781_v52 = vrot.slane %v6882_v19, 6  ;;  %v1783_v11 = vrot.slane %v6932_v28, 5  ;;  %v5377_v29 = vld [vmem:[#allocation10 + $0x350] ss:$8 sps:$4 sm:$0xff]  }
 0x26c   :  { %v1827_v31 = vsel %vm1710_vm13, %v1826_v33, %v1825_v42  ;;  %v1773_v48 = vsel %vm1701_vm10, %v1772_v58, %v1771_v18  ;;  %v1803_v2 = vrot.slane %v6746_v38, 6  ;;  %v1804_v8 = vrot.slane %v6750_v50, 5  ;;  %v5382_v38 = vld [vmem:[#allocation10 + $0x244] ss:$8 sps:$4 sm:$0xff]  }
 0x26d   :  { %v1829_v57 = vsel %vm1713_vm14, %v1828_v39, %v1827_v31  ;;  %v1775_v21 = vsel %vm1704_vm11, %v1774_v13, %v1773_v48  ;;  %3964 = vmatpush1.bf16.msra.mxu1 %v5368_v23  ;;  %v1806_v62 = vrot.slane %v6779_v30, 4  ;;  %v1808_v6 = vrot.slane %v6829_v59, 3  ;;  %v5385_v39 = vld [vmem:[#allocation10 + $0x344] ss:$8 sps:$4 sm:$0xff]   ;;  %v5391_v31 = vld [vmem:[#allocation10 + $0x334] ss:$8 sps:$4 sm:$0xff]  }
 0x26e   :  { %v1831_v26 = vsel %vm1716_vm15, %v1830_v22, %v1829_v57  ;;  %4005 = vmatpush1.bf16.msra.mxu0 %v5371_v60  ;;  %v1777_v47 = vsel %vm1707_vm12, %v1776_v1, %v1775_v21  ;;  %3965 = vmatprep.subr.bf16.mxu1 %v5376_v4  ;;  %v1805_v33 = vsel %vm1701_vm10, %v1804_v8, %v1803_v2  ;;  %v1810_v34 = vrot.slane %v6849_v17, 2  ;;  %v5380_v4 = vld [vmem:[#allocation10 + $0x240] ss:$8 sps:$4 sm:$0xff]   ;;  %v5386_v8 = vld [vmem:[#allocation10 + $0x230] ss:$8 sps:$4 sm:$0xff]  }
 0x26f   :  { %v1832_v36 = vsel %vm1719_vm0, %v6932_v28, %v1831_v26  ;;  %4006 = vmatprep.subr.bf16.mxu0 %v5379_v51  ;;  %v1778_v50 = vsel %vm1710_vm13, %v6849_v17, %v1777_v47  ;;  %v1807_v59 = vsel %vm1704_vm11, %v1806_v62, %v1805_v33  ;;  %v1812_v22 = vrot.slane %v6865_v41, 1  ;;  %v5388_v51 = vld [vmem:[#allocation10 + $0x234] ss:$8 sps:$4 sm:$0xff]  }
 0x270   :  { %v1833_v40 = vpack.c.b16 %v1832_v36, %v1832_v36  ;;  %v1780_v30 = vsel %vm1713_vm14, %v1779_v15, %v1778_v50  ;;  %v1809_v44 = vsel %vm1707_vm12, %v1808_v6, %v1807_v59  ;;  %v1815_v7 = vrot.slane %v6932_v28, 7  ;;  %v5383_v28 = vld [vmem:[#allocation10 + $0x340] ss:$8 sps:$4 sm:$0xff]   ;;  %v5394_v6 = vld [vmem:[#allocation10 + $0x224] ss:$8 sps:$4 sm:$0xff]  }
 0x271   :  { %v1782_v23 = vsel %vm1716_vm15, %v1781_v52, %v1780_v30  ;;  %v1867_v60 = vrot.slane %v6863_v63, 1  ;;  %3966 = vmatpush1.bf16.msra.mxu1 %v5374_v10  ;;  %v1811_v18 = vsel %vm1710_vm13, %v1810_v34, %v1809_v44  ;;  %v1869_v58 = vrot.slane %v6885_v12, 7  ;;  %v5397_v50 = vld [vmem:[#allocation10 + $0x324] ss:$8 sps:$4 sm:$0xff]   ;;  %v5392_v44 = vld [vmem:[#allocation10 + $0x220] ss:$8 sps:$4 sm:$0xff]  }
 0x272   :  { %4034 = vmatprep.mubr.bf16.mxu0 %v1833_v40  ;;  %v7000_v17 = vsel %vm1719_vm0, %v1783_v11, %v1782_v23  ;;  %v1871_v41 = vrot.slane %v6891_v32, 6  ;;  %v5037_v42 = vpack.c.bf16 %v1632_v16, %v1632_v16  ;;  %4007 = vmatpush1.bf16.msra.mxu0 %v5377_v29  ;;  %v1813_v13 = vsel %vm1713_vm14, %v1812_v22, %v1811_v18 }
 0x273   :  { %3967 = vmatprep.subr.bf16.mxu1 %v5382_v38  ;;  %v1868_v1 = vsel %vm1701_vm10, %v6880_v3, %v1867_v60  ;;  %v1873_v15 = vrot.slane %v6896_v61, 5  ;;  %4008 = vmatprep.subr.bf16.mxu0 %v5385_v39  ;;  %v1814_v48 = vsel %vm1716_vm15, %v6882_v19, %v1813_v13  ;;  %v1875_v16 = vrot.slane %v6898_v9, 4 }
 0x274   :  { %v1870_v25 = vsel %vm1704_vm11, %v1869_v58, %v1868_v1  ;;  %v1877_v52 = vrot.slane %v6900_v54, 3  ;;  %v1635_v11 = vmax.f32 %v6888_v46, 0.0  ;;  %v7019_v57 = vsel %vm1719_vm0, %v1815_v7, %v1814_v48  ;;  %v5389_v46 = vld [vmem:[#allocation10 + $0x330] ss:$8 sps:$4 sm:$0xff]   ;;  %v5395_v58 = vld [vmem:[#allocation10 + $0x320] ss:$8 sps:$4 sm:$0xff]  }
 0x275   :  { %v1872_v21 = vsel %vm1707_vm12, %v1871_v41, %v1870_v25  ;;  %v1879_v2 = vrot.slane %v6928_v24, 2  ;;  %3968 = vmatpush1.bf16.msra.mxu1 %v5380_v4  ;;  %v1899_v19 = vrot.slane %v6863_v63, 3  ;;  %v1900_v10 = vrot.slane %v6880_v3, 2  ;;  %v5400_v41 = vld [vmem:[#allocation10 + $0x214] ss:$8 sps:$4 sm:$0xff]  }
 0x276   :  { %v1874_v26 = vsel %vm1710_vm13, %v1873_v15, %v1872_v21  ;;  %v1902_v47 = vrot.slane %v6885_v12, 1  ;;  %v7027_v62 = vunpack.c.l.b16 %v5037_v42  ;;  %4009 = vmatpush1.bf16.msra.mxu0 %v5383_v28  ;;  %3969 = vmatprep.subr.bf16.mxu1 %v5388_v51  ;;  %v1905_v29 = vrot.slane %v6896_v61, 7  ;;  %v5403_v1 = vld [vmem:[#allocation10 + $0x314] ss:$8 sps:$4 sm:$0xff]  }
 0x277   :  { %v1876_v36 = vsel %vm1713_vm14, %v1875_v16, %v1874_v26  ;;  %v1907_v38 = vrot.slane %v6898_v9, 6  ;;  %4010 = vmatprep.subr.bf16.mxu0 %v5391_v31  ;;  %v1901_v34 = vsel %vm1701_vm10, %v1900_v10, %v1899_v19  ;;  %v1909_v40 = vrot.slane %v6900_v54, 5  ;;  %v5398_v26 = vld [vmem:[#allocation10 + $0x210] ss:$8 sps:$4 sm:$0xff]  }
 0x278   :  { %v1878_v33 = vsel %vm1716_vm15, %v1877_v52, %v1876_v36  ;;  %v1851_v39 = vrot.slane %v6880_v3, 7  ;;  %v1903_v59 = vsel %vm1704_vm11, %v1902_v47, %v1901_v34  ;;  %v1853_v22 = vrot.slane %v6885_v12, 6  ;;  %v5406_v36 = vld [vmem:[#allocation10 + $0x204] ss:$8 sps:$4 sm:$0xff]  }
 0x279   :  { %v7037_v30 = vsel %vm1719_vm0, %v1879_v2, %v1878_v33  ;;  %v1855_v23 = vrot.slane %v6891_v32, 5  ;;  %3970 = vmatpush1.bf16.msra.mxu1 %v5386_v8  ;;  %v1904_v7 = vsel %vm1707_vm12, %v6891_v32, %v1903_v59  ;;  %v1911_v60 = vrot.slane %v6928_v24, 4 }
 0x27a   :  { %v1852_v4 = vsel %vm1701_vm10, %v1851_v39, %v6863_v63  ;;  %v1857_v18 = vrot.slane %v6896_v61, 4  ;;  %4011 = vmatpush1.bf16.msra.mxu0 %v5389_v46  ;;  %3971 = vmatprep.subr.bf16.mxu1 %v5394_v6  ;;  %v1906_v42 = vsel %vm1710_vm13, %v1905_v29, %v1904_v7  ;;  %v1859_v51 = vrot.slane %v6898_v9, 3  ;;  %v5401_v6 = vld [vmem:[#allocation10 + $0x310] ss:$8 sps:$4 sm:$0xff]   ;;  %v5404_v7 = vld [vmem:[#allocation10 + $0x200] ss:$8 sps:$4 sm:$0xff]  }
 0x27b   :  { %v1854_v28 = vsel %vm1704_vm11, %v1853_v22, %v1852_v4  ;;  %v1861_v13 = vrot.slane %v6900_v54, 2  ;;  %4012 = vmatprep.subr.bf16.mxu0 %v5397_v50  ;;  %v1908_v15 = vsel %vm1713_vm14, %v1907_v38, %v1906_v42  ;;  %v1863_v48 = vrot.slane %v6928_v24, 1  ;;  %v5409_v50 = vld [vmem:[#allocation10 + $0x304] ss:$8 sps:$4 sm:$0xff]   ;;  %v5412_v42 = vld [vmem:[#allocation10 + $0x2f4] ss:$8 sps:$4 sm:$0xff]  }
 0x27c   :  { %v1856_v31 = vsel %vm1707_vm12, %v1855_v23, %v1854_v28  ;;  %v1883_v25 = vrot.slane %v6863_v63, 2  ;;  %v1910_v16 = vsel %vm1716_vm15, %v1909_v40, %v1908_v15  ;;  %v1884_v21 = vrot.slane %v6880_v3, 1  ;;  %v5415_v15 = vld [vmem:[#allocation10 + $0x3f4] ss:$8 sps:$4 sm:$0xff]  }
 0x27d   :  { %v1858_v52 = vsel %vm1710_vm13, %v1857_v18, %v1856_v31  ;;  %v1887_v2 = vrot.slane %v6891_v32, 7  ;;  %v5038_v8 = vpack.c.bf16 %v1635_v11, %v1635_v11  ;;  %3972 = vmatpush1.bf16.msra.mxu1 %v5392_v44  ;;  %v7061_v19 = vsel %vm1719_vm0, %v1911_v60, %v1910_v16 }
 0x27e   :  { %v1860_v10 = vsel %vm1713_vm14, %v1859_v51, %v1858_v52  ;;  %v1889_v47 = vrot.slane %v6896_v61, 6  ;;  %v2005_v46 = vrot.slane %v7027_v62, 2  ;;  %4013 = vmatpush1.bf16.msra.mxu0 %v5395_v58  ;;  %3973 = vmatprep.subr.bf16.mxu1 %v5400_v41  ;;  %v1885_v38 = vsel %vm1701_vm10, %v1884_v21, %v1883_v25  ;;  %v5407_v41 = vld [vmem:[#allocation10 + $0x300] ss:$8 sps:$4 sm:$0xff]  }
 0x27f   :  { %v1862_v29 = vsel %vm1716_vm15, %v1861_v13, %v1860_v10  ;;  %v1891_v11 = vrot.slane %v6898_v9, 5  ;;  %4014 = vmatprep.subr.bf16.mxu0 %v5403_v1  ;;  %v1886_v34 = vsel %vm1704_vm11, %v6885_v12, %v1885_v38  ;;  %v1893_v40 = vrot.slane %v6900_v54, 4  ;;  %v5413_v38 = vld [vmem:[#allocation10 + $0x3f0] ss:$8 sps:$4 sm:$0xff]  }
 0x280   :  { %v7070_v33 = vsel %vm1719_vm0, %v1863_v48, %v1862_v29  ;;  %v1895_v39 = vrot.slane %v6928_v24, 3  ;;  %v1888_v59 = vsel %vm1707_vm12, %v1887_v2, %v1886_v34  ;;  %v1931_v22 = vrot.slane %v6863_v63, 5 }
 0x281   :  { %v1932_v23 = vrot.slane %v6880_v3, 4  ;;  %v1934_v44 = vrot.slane %v6885_v12, 3  ;;  %3974 = vmatpush1.bf16.msra.mxu1 %v5398_v26  ;;  %v1890_v60 = vsel %vm1710_vm13, %v1889_v47, %v1888_v59  ;;  %v1936_v4 = vrot.slane %v6891_v32, 2  ;;  %v5410_v47 = vld [vmem:[#allocation10 + $0x2f0] ss:$8 sps:$4 sm:$0xff]  }
 0x282   :  { %v1938_v18 = vrot.slane %v6896_v61, 1  ;;  %v1941_v58 = vrot.slane %v6900_v54, 7  ;;  %4015 = vmatpush1.bf16.msra.mxu0 %v5401_v6  ;;  %3975 = vmatprep.subr.bf16.mxu1 %v5406_v36  ;;  %v1892_v28 = vsel %vm1713_vm14, %v1891_v11, %v1890_v60  ;;  %v1943_v13 = vrot.slane %v6928_v24, 6  ;;  %v5418_v11 = vld [vmem:[#allocation10 + $0x2e4] ss:$8 sps:$4 sm:$0xff]  }
 0x283   :  { %v1933_v51 = vsel %vm1701_vm10, %v1932_v23, %v1931_v22  ;;  %v1963_v1 = vrot.slane %v6863_v63, 7  ;;  %4016 = vmatprep.subr.bf16.mxu0 %v5409_v50  ;;  %v1894_v31 = vsel %vm1716_vm15, %v1893_v40, %v1892_v28  ;;  %v1964_v25 = vrot.slane %v6880_v3, 6 }
 0x284   :  { %v1935_v48 = vsel %vm1704_vm11, %v1934_v44, %v1933_v51  ;;  %v1966_v16 = vrot.slane %v6885_v12, 5  ;;  %v7093_v52 = vsel %vm1719_vm0, %v1895_v39, %v1894_v31  ;;  %v1968_v2 = vrot.slane %v6891_v32, 4  ;;  %v5421_v39 = vld [vmem:[#allocation10 + $0x3e4] ss:$8 sps:$4 sm:$0xff]  }
 0x285   :  { %v1937_v21 = vsel %vm1707_vm12, %v1936_v4, %v1935_v48  ;;  %v1970_v26 = vrot.slane %v6896_v61, 3  ;;  %v7098_v10 = vunpack.c.l.b16 %v5038_v8  ;;  %3976 = vmatpush1.bf16.msra.mxu1 %v5404_v7  ;;  %v1965_v36 = vsel %vm1701_vm10, %v1964_v25, %v1963_v1  ;;  %v5419_v1 = vld [vmem:[#allocation10 + $0x3e0] ss:$8 sps:$4 sm:$0xff]  }
 0x286   :  { %v1939_v6 = vsel %vm1710_vm13, %v1938_v18, %v1937_v21  ;;  %v1972_v29 = vrot.slane %v6898_v9, 2  ;;  %4017 = vmatpush1.bf16.msra.mxu0 %v5407_v41  ;;  %3977 = vmatprep.subr.bf16.mxu1 %v5412_v42  ;;  %v1967_v34 = vsel %vm1704_vm11, %v1966_v16, %v1965_v36  ;;  %v1974_v8 = vrot.slane %v6900_v54, 1  ;;  %v5416_v42 = vld [vmem:[#allocation10 + $0x2e0] ss:$8 sps:$4 sm:$0xff]   ;;  %v5427_v21 = vld [vmem:[#allocation10 + $0x3d4] ss:$8 sps:$4 sm:$0xff]  }
 0x287   :  { %v1940_v50 = vsel %vm1713_vm14, %v6898_v9, %v1939_v6  ;;  %v1915_v40 = vrot.slane %v6863_v63, 4  ;;  %4018 = vmatprep.subr.bf16.mxu0 %v5415_v15  ;;  %v1969_v22 = vsel %vm1707_vm12, %v1968_v2, %v1967_v34  ;;  %v1916_v23 = vrot.slane %v6880_v3, 3  ;;  %v5424_v15 = vld [vmem:[#allocation10 + $0x2d4] ss:$8 sps:$4 sm:$0xff]   ;;  %v5425_v34 = vld [vmem:[#allocation10 + $0x3d0] ss:$8 sps:$4 sm:$0xff]  }
 0x288   :  { %v1942_v59 = vsel %vm1716_vm15, %v1941_v58, %v1940_v50  ;;  %v1918_v44 = vrot.slane %v6885_v12, 2  ;;  %v2021_v7 = vrot.slane %v7027_v62, 3  ;;  %v1971_v4 = vsel %vm1710_vm13, %v1970_v26, %v1969_v22 }
 0x289   :  { %v7114_v60 = vsel %vm1719_vm0, %v1943_v13, %v1942_v59  ;;  %v1920_v18 = vrot.slane %v6891_v32, 1  ;;  %v2037_v41 = vrot.slane %v7027_v62, 4  ;;  %3978 = vmatpush2.bf16.msra.mxu1 %v5410_v47  ;;  %v1973_v58 = vsel %vm1713_vm14, %v1972_v29, %v1971_v4  ;;  %v5422_v29 = vld [vmem:[#allocation10 + $0x2d0] ss:$8 sps:$4 sm:$0xff]   ;;  %v5445_v62 = vld [vmem:[#allocation10 + $0x3a4] ss:$8 sps:$4 sm:$0xff]  }
 0x28a   :  { %v1917_v28 = vsel %vm1701_vm10, %v1916_v23, %v1915_v40  ;;  %v1923_v51 = vrot.slane %v6898_v9, 7  ;;  %4019 = vmatpush2.bf16.msra.mxu0 %v5413_v38  ;;  %3979 = vmatprep.subr.bf16.mxu1 %v5418_v11  ;;  %v1975_v13 = vsel %vm1716_vm15, %v1974_v8, %v1973_v58  ;;  %v1925_v48 = vrot.slane %v6900_v54, 6  ;;  %v5430_v8 = vld [vmem:[#allocation10 + $0x2c4] ss:$8 sps:$4 sm:$0xff]  }
 0x28b   :  { %v1919_v31 = vsel %vm1704_vm11, %v1918_v44, %v1917_v28  ;;  %v2018_v25 = vsel %vm1710_vm13, %v2017_v35, %v6833_v27  ;;  %v2023_v16 = vrot.slane %v7098_v10, 2  ;;  %4020 = vmatprep.subr.bf16.mxu0 %v5421_v39  ;;  %v7132_v2 = vsel %vm1719_vm0, %v6928_v24, %v1975_v13  ;;  %v5451_v13 = vld [vmem:[#allocation10 + $0x394] ss:$8 sps:$4 sm:$0xff]  }
 0x28c   :  { %v1921_v26 = vsel %vm1707_vm12, %v1920_v18, %v1919_v31  ;;  %v1927_v47 = vrot.slane %v6928_v24, 5  ;;  %v1947_v36 = vrot.slane %v6863_v63, 6  ;;  %v1948_v20 = vrot.slane %v6880_v3, 5  ;;  %v5446_v31 = vld [vmem:[#allocation10 + $0x290] ss:$8 sps:$4 sm:$0xff]  }
 0x28d   :  { %v1922_v6 = vsel %vm1710_vm13, %v6896_v61, %v1921_v26  ;;  %v1950_v27 = vrot.slane %v6885_v12, 4  ;;  %v2039_v35 = vrot.slane %v7098_v10, 3  ;;  %3980 = vmatpush2.bf16.msra.mxu1 %v5416_v42  ;;  %v1952_v11 = vrot.slane %v6891_v32, 3  ;;  %v5433_v32 = vld [vmem:[#allocation10 + $0x3c4] ss:$8 sps:$4 sm:$0xff]  }
 0x28e   :  { %v1924_v38 = vsel %vm1713_vm14, %v1923_v51, %v1922_v6  ;;  %v1954_v50 = vrot.slane %v6896_v61, 2  ;;  %4021 = vmatpush2.bf16.msra.mxu0 %v5419_v1  ;;  %3981 = vmatprep.subr.bf16.mxu1 %v5424_v15  ;;  %v1949_v3 = vsel %vm1701_vm10, %v1948_v20, %v1947_v36  ;;  %v1956_v12 = vrot.slane %v6898_v9, 1  ;;  %v5436_v42 = vld [vmem:[#allocation10 + $0x2b4] ss:$8 sps:$4 sm:$0xff]   ;;  %v5437_v51 = vld [vmem:[#allocation10 + $0x3b0] ss:$8 sps:$4 sm:$0xff]  }
 0x28f   :  { %v1926_v63 = vsel %vm1716_vm15, %v1925_v48, %v1924_v38  ;;  %v2020_v40 = vsel %vm1713_vm14, %v2019_v55, %v2018_v25  ;;  %v2007_v39 = vrot.slane %v7098_v10, 1  ;;  %4022 = vmatprep.subr.bf16.mxu0 %v5427_v21  ;;  %v1951_v59 = vsel %vm1704_vm11, %v1950_v27, %v1949_v3  ;;  %v5428_v10 = vld [vmem:[#allocation10 + $0x2c0] ss:$8 sps:$4 sm:$0xff]   ;;  %v5442_v1 = vld [vmem:[#allocation10 + $0x2a4] ss:$8 sps:$4 sm:$0xff]  }
 0x290   :  { %v7153_v61 = vsel %vm1719_vm0, %v1927_v47, %v1926_v63  ;;  %v2022_v22 = vsel %vm1716_vm15, %v2021_v7, %v2020_v40  ;;  %v1953_v23 = vsel %vm1707_vm12, %v1952_v11, %v1951_v59  ;;  %v1959_v44 = vrot.slane %v6928_v24, 7  ;;  %v5431_v24 = vld [vmem:[#allocation10 + $0x3c0] ss:$8 sps:$4 sm:$0xff]   ;;  %v5449_v48 = vld [vmem:[#allocation10 + $0x390] ss:$8 sps:$4 sm:$0xff]  }
 0x291   :  { %v7160_v9 = vsel %vm1719_vm0, %v2023_v16, %v2022_v22  ;;  %v2036_v55 = vsel %vm1713_vm14, %v2035_v14, %v6857_v5  ;;  %3982 = vmatpush2.bf16.msra.mxu1 %v5422_v29  ;;  %v1955_v4 = vsel %vm1710_vm13, %v1954_v50, %v1953_v23  ;;  %v2004_v7 = vsel %vm1713_vm14, %v2003_v37, %v6854_v56  ;;  %v5439_v14 = vld [vmem:[#allocation10 + $0x3b4] ss:$8 sps:$4 sm:$0xff]   ;;  %v5443_v15 = vld [vmem:[#allocation10 + $0x3a0] ss:$8 sps:$4 sm:$0xff]   ;;  %v5454_v25 = vld [vmem:[#allocation10 + $0x284] ss:$8 sps:$4 sm:$0xff]  }
 0x292   :  { %v2038_v18 = vsel %vm1716_vm15, %v2037_v41, %v2036_v55  ;;  %4023 = vmatpush2.bf16.msra.mxu0 %v5425_v34  ;;  %3983 = vmatprep.subr.bf16.mxu1 %v5430_v8  ;;  %v1957_v58 = vsel %vm1713_vm14, %v1956_v12, %v1955_v4  ;;  %v2006_v5 = vsel %vm1716_vm15, %v2005_v46, %v2004_v7  ;;  %v5434_v41 = vld [vmem:[#allocation10 + $0x2b0] ss:$8 sps:$4 sm:$0xff]   ;;  %v5440_v46 = vld [vmem:[#allocation10 + $0x2a0] ss:$8 sps:$4 sm:$0xff]   ;;  %v5457_v16 = vld [vmem:[#allocation10 + $0x384] ss:$8 sps:$4 sm:$0xff]  }
 0x293   :  { %v7174_v28 = vsel %vm1719_vm0, %v2039_v35, %v2038_v18  ;;  %4024 = vmatprep.subr.bf16.mxu0 %v5433_v32  ;;  %v1958_v53 = vsel %vm1716_vm15, %v6900_v54, %v1957_v58  ;;  %v7182_v56 = vsel %vm1719_vm0, %v2007_v39, %v2006_v5  ;;  %v5448_v54 = vld [vmem:[#allocation10 + $0x294] ss:$8 sps:$4 sm:$0xff]   ;;  %v5452_v21 = vld [vmem:[#allocation10 + $0x280] ss:$8 sps:$4 sm:$0xff]   ;;  %v5458_v36 = vld [vmem:[#allocation10 + $0x470] ss:$8 sps:$4 sm:$0xff]   ;;  %v1785_v20 = vpack.c.b16 %v7000_v17, %v7000_v17 }
 0x294   :  { %v7185_v37 = vsel %vm1719_vm0, %v1959_v44, %v1958_v53  ;;  %v5455_v26 = vld [vmem:[#allocation10 + $0x380] ss:$8 sps:$4 sm:$0xff]   ;;  %v5460_v47 = vld [vmem:[#allocation10 + $0x474] ss:$8 sps:$4 sm:$0xff]   ;;  %v5461_v27 = vld [vmem:[#allocation10 + $0x570] ss:$8 sps:$4 sm:$0xff]   ;;  %v1817_v35 = vpack.c.b16 %v7019_v57, %v7019_v57  ;;  %v1881_v38 = vpack.c.b16 %v7037_v30, %v7037_v30  ;;  %v1913_v50 = vpack.c.b16 %v7061_v19, %v7061_v19 }
 0x295   :  { %3984 = vmatpush2.bf16.msra.mxu1 %v5428_v10  ;;  %v5463_v6 = vld [vmem:[#allocation10 + $0x574] ss:$8 sps:$4 sm:$0xff]   ;;  %v5466_v29 = vld [vmem:[#allocation10 + $0x464] ss:$8 sps:$4 sm:$0xff]   ;;  %v5464_v34 = vld [vmem:[#allocation10 + $0x460] ss:$8 sps:$4 sm:$0xff]  }
 0x296   :  { %4025 = vmatpush2.bf16.msra.mxu0 %v5431_v24  ;;  %3985 = vmatprep.subr.bf16.mxu1 %v5436_v42  ;;  %v5469_v11 = vld [vmem:[#allocation10 + $0x564] ss:$8 sps:$4 sm:$0xff]   ;;  %v5467_v17 = vld [vmem:[#allocation10 + $0x560] ss:$8 sps:$4 sm:$0xff]   ;;  %v5472_v8 = vld [vmem:[#allocation10 + $0x454] ss:$8 sps:$4 sm:$0xff]  }
 0x297   :  { %4026 = vmatprep.subr.bf16.mxu0 %v5439_v14  ;;  %v5475_v57 = vld [vmem:[#allocation10 + $0x554] ss:$8 sps:$4 sm:$0xff]   ;;  %v5470_v63 = vld [vmem:[#allocation10 + $0x450] ss:$8 sps:$4 sm:$0xff]   ;;  %v5478_v3 = vld [vmem:[#allocation10 + $0x444] ss:$8 sps:$4 sm:$0xff]  }
 0x298   :  { %v5473_v30 = vld [vmem:[#allocation10 + $0x550] ss:$8 sps:$4 sm:$0xff]   ;;  %v5481_v12 = vld [vmem:[#allocation10 + $0x544] ss:$8 sps:$4 sm:$0xff]   ;;  %v5476_v40 = vld [vmem:[#allocation10 + $0x440] ss:$8 sps:$4 sm:$0xff]  }
 0x299   :  { %3986 = vmatpush2.bf16.msra.mxu1 %v5434_v41  ;;  %v5479_v19 = vld [vmem:[#allocation10 + $0x540] ss:$8 sps:$4 sm:$0xff]   ;;  %v5484_v39 = vld [vmem:[#allocation10 + $0x434] ss:$8 sps:$4 sm:$0xff]   ;;  %v5482_v59 = vld [vmem:[#allocation10 + $0x430] ss:$8 sps:$4 sm:$0xff]  }
 0x29a   :  { %4027 = vmatpush2.bf16.msra.mxu0 %v5437_v51  ;;  %3987 = vmatprep.subr.bf16.mxu1 %v5442_v1  ;;  %v5487_v32 = vld [vmem:[#allocation10 + $0x534] ss:$8 sps:$4 sm:$0xff]   ;;  %v5485_v22 = vld [vmem:[#allocation10 + $0x530] ss:$8 sps:$4 sm:$0xff]   ;;  %v5490_v23 = vld [vmem:[#allocation10 + $0x424] ss:$8 sps:$4 sm:$0xff]  }
 0x29b   :  { %4028 = vmatprep.subr.bf16.mxu0 %v5445_v62  ;;  %v5493_v44 = vld [vmem:[#allocation10 + $0x524] ss:$8 sps:$4 sm:$0xff]   ;;  %v5488_v55 = vld [vmem:[#allocation10 + $0x420] ss:$8 sps:$4 sm:$0xff]   ;;  %v5496_v4 = vld [vmem:[#allocation10 + $0x414] ss:$8 sps:$4 sm:$0xff]  }
 0x29c   :  { %v5491_v10 = vld [vmem:[#allocation10 + $0x520] ss:$8 sps:$4 sm:$0xff]   ;;  %v5499_v18 = vld [vmem:[#allocation10 + $0x514] ss:$8 sps:$4 sm:$0xff]   ;;  %v5494_v7 = vld [vmem:[#allocation10 + $0x410] ss:$8 sps:$4 sm:$0xff]  }
 0x29d   :  { %3988 = vmatpush2.bf16.msra.mxu1 %v5440_v46  ;;  %v5497_v24 = vld [vmem:[#allocation10 + $0x510] ss:$8 sps:$4 sm:$0xff]   ;;  %v5502_v42 = vld [vmem:[#allocation10 + $0x404] ss:$8 sps:$4 sm:$0xff]   ;;  %v5500_v5 = vld [vmem:[#allocation10 + $0x400] ss:$8 sps:$4 sm:$0xff]  }
 0x29e   :  { %4029 = vmatpush2.bf16.msra.mxu0 %v5443_v15  ;;  %3989 = vmatprep.subr.bf16.mxu1 %v5448_v54  ;;  %v5505_v58 = vld [vmem:[#allocation10 + $0x504] ss:$8 sps:$4 sm:$0xff]   ;;  %v5503_v14 = vld [vmem:[#allocation10 + $0x500] ss:$8 sps:$4 sm:$0xff]   ;;  %v5508_v53 = vld [vmem:[#allocation10 + $0x4f4] ss:$8 sps:$4 sm:$0xff]  }
 0x29f   :  { %4030 = vmatprep.subr.bf16.mxu0 %v5451_v13  ;;  %v5511_v41 = vld [vmem:[#allocation10 + $0x5f4] ss:$8 sps:$4 sm:$0xff]   ;;  %v5506_v51 = vld [vmem:[#allocation10 + $0x4f0] ss:$8 sps:$4 sm:$0xff]   ;;  %v5514_v62 = vld [vmem:[#allocation10 + $0x4e4] ss:$8 sps:$4 sm:$0xff]  }
 0x2a0   :  { %v5509_v1 = vld [vmem:[#allocation10 + $0x5f0] ss:$8 sps:$4 sm:$0xff]   ;;  %v5517_v46 = vld [vmem:[#allocation10 + $0x5e4] ss:$8 sps:$4 sm:$0xff]   ;;  %v5512_v15 = vld [vmem:[#allocation10 + $0x4e0] ss:$8 sps:$4 sm:$0xff]  }
 0x2a1   :  { %3990 = vmatpush2.bf16.msra.mxu1 %v5446_v31  ;;  %v5515_v54 = vld [vmem:[#allocation10 + $0x5e0] ss:$8 sps:$4 sm:$0xff]   ;;  %v5520_v13 = vld [vmem:[#allocation10 + $0x4d4] ss:$8 sps:$4 sm:$0xff]  }
 0x2a2   :  { %4031 = vmatpush2.bf16.msra.mxu0 %v5449_v48  ;;  %3991 = vmatprep.subr.bf16.mxu1 %v5454_v25  ;;  %v5523_v31 = vld [vmem:[#allocation10 + $0x5d4] ss:$8 sps:$4 sm:$0xff]   ;;  %v5518_v48 = vld [vmem:[#allocation10 + $0x4d0] ss:$8 sps:$4 sm:$0xff]  }
 0x2a3   :  { %4032 = vmatprep.subr.bf16.mxu0 %v5457_v16  ;;  %v5521_v25 = vld [vmem:[#allocation10 + $0x5d0] ss:$8 sps:$4 sm:$0xff]   ;;  %v5526_v16 = vld [vmem:[#allocation10 + $0x4c4] ss:$8 sps:$4 sm:$0xff]  }
 0x2a5   :  { %3992 = vmatpush2.bf16.msra.mxu1 %v5452_v21  ;;  %v5529_v21 = vld [vmem:[#allocation10 + $0x5c4] ss:$8 sps:$4 sm:$0xff]  }
 0x2a6   :  { %4033 = vmatpush2.bf16.msra.mxu0 %v5455_v26  ;;  %4043 = vmatprep.subr.bf16.mxu1 %v5460_v47  ;;  %v5524_v26 = vld [vmem:[#allocation10 + $0x4c0] ss:$8 sps:$4 sm:$0xff]  }
 0x2a7   :  { %4084 = vmatprep.subr.bf16.mxu0 %v5463_v6  ;;  %v5527_v47 = vld [vmem:[#allocation10 + $0x5c0] ss:$8 sps:$4 sm:$0xff]   ;;  %v5532_v6 = vld [vmem:[#allocation10 + $0x4b4] ss:$8 sps:$4 sm:$0xff]  }
 0x2a8   :  { %3994 = vmatmul.mubr.bf16.vlgmr.msra.gmra.mxu1 %v1785_v20  ;;  %v5530_v20 = vld [vmem:[#allocation10 + $0x4b0] ss:$8 sps:$4 sm:$0xff]  }
 0x2a9   :  { %4035 = vmatmul.mubr.bf16.vlgmr.msra.gmra.mxu0 %v1817_v35  ;;  %4044 = vmatpush1.bf16.msra.mxu1 %v5458_v36  ;;  %v5535_v36 = vld [vmem:[#allocation10 + $0x5b4] ss:$8 sps:$4 sm:$0xff]   ;;  %v5538_v35 = vld [vmem:[#allocation10 + $0x4a4] ss:$8 sps:$4 sm:$0xff]  }
 0x2aa   :  { %4075 = vmatprep.mubr.bf16.mxu1 %v1881_v38  ;;  %4085 = vmatpush1.bf16.msra.mxu0 %v5461_v27  ;;  %v5533_v27 = vld [vmem:[#allocation10 + $0x5b0] ss:$8 sps:$4 sm:$0xff]   ;;  %v5536_v38 = vld [vmem:[#allocation10 + $0x4a0] ss:$8 sps:$4 sm:$0xff]  }
 0x2ab   :  { %4116 = vmatprep.mubr.bf16.mxu0 %v1913_v50  ;;  %4045 = vmatprep.subr.bf16.mxu1 %v5466_v29  ;;  %v5541_v29 = vld [vmem:[#allocation10 + $0x5a4] ss:$8 sps:$4 sm:$0xff]   ;;  %v5544_v50 = vld [vmem:[#allocation10 + $0x494] ss:$8 sps:$4 sm:$0xff]  }
 0x2ac   :  { %4086 = vmatprep.subr.bf16.mxu0 %v5469_v11  ;;  %v5539_v11 = vld [vmem:[#allocation10 + $0x5a0] ss:$8 sps:$4 sm:$0xff]  }
 0x2ad   :  { %4046 = vmatpush1.bf16.msra.mxu1 %v5464_v34  ;;  %v5547_v34 = vld [vmem:[#allocation10 + $0x594] ss:$8 sps:$4 sm:$0xff]  }
 0x2ae   :  { %4087 = vmatpush1.bf16.msra.mxu0 %v5467_v17  ;;  %4047 = vmatprep.subr.bf16.mxu1 %v5472_v8  ;;  %v5542_v17 = vld [vmem:[#allocation10 + $0x490] ss:$8 sps:$4 sm:$0xff]  }
 0x2af   :  { %4088 = vmatprep.subr.bf16.mxu0 %v5475_v57  ;;  %v5545_v8 = vld [vmem:[#allocation10 + $0x590] ss:$8 sps:$4 sm:$0xff]   ;;  %v5550_v57 = vld [vmem:[#allocation10 + $0x484] ss:$8 sps:$4 sm:$0xff]  }
 0x2b1   :  { %4048 = vmatpush1.bf16.msra.mxu1 %v5470_v63  ;;  %v5553_v63 = vld [vmem:[#allocation10 + $0x584] ss:$8 sps:$4 sm:$0xff]  }
 0x2b2   :  { %4089 = vmatpush1.bf16.msra.mxu0 %v5473_v30  ;;  %4049 = vmatprep.subr.bf16.mxu1 %v5478_v3  ;;  %v5548_v30 = vld [vmem:[#allocation10 + $0x480] ss:$8 sps:$4 sm:$0xff]  }
 0x2b3   :  { %4090 = vmatprep.subr.bf16.mxu0 %v5481_v12  ;;  %v5551_v3 = vld [vmem:[#allocation10 + $0x580] ss:$8 sps:$4 sm:$0xff]   ;;  %v5556_v12 = vld [vmem:[#allocation10 + $0x674] ss:$8 sps:$4 sm:$0xff]  }
 0x2b5   :  { %4050 = vmatpush1.bf16.msra.mxu1 %v5476_v40  ;;  %v5559_v40 = vld [vmem:[#allocation10 + $0x774] ss:$8 sps:$4 sm:$0xff]  }
 0x2b6   :  { %4091 = vmatpush1.bf16.msra.mxu0 %v5479_v19  ;;  %4051 = vmatprep.subr.bf16.mxu1 %v5484_v39  ;;  %v5554_v19 = vld [vmem:[#allocation10 + $0x670] ss:$8 sps:$4 sm:$0xff]   ;;  %v1865_v39 = vpack.c.b16 %v7070_v33, %v7070_v33  ;;  %v5563_v33 = vld [vmem:[#allocation10 + $0x760] ss:$8 sps:$4 sm:$0xff]  }
 0x2b7   :  { %4092 = vmatprep.subr.bf16.mxu0 %v5487_v32  ;;  %v5557_v32 = vld [vmem:[#allocation10 + $0x770] ss:$8 sps:$4 sm:$0xff]  }
 0x2b9   :  { %4052 = vmatpush1.bf16.msra.mxu1 %v5482_v59  ;;  %v1897_v59 = vpack.c.b16 %v7093_v52, %v7093_v52  ;;  %v5571_v52 = vld [vmem:[#allocation10 + $0x754] ss:$8 sps:$4 sm:$0xff]  }
 0x2ba   :  { %4093 = vmatpush1.bf16.msra.mxu0 %v5485_v22  ;;  %4053 = vmatprep.subr.bf16.mxu1 %v5490_v23  ;;  %v5562_v22 = vld [vmem:[#allocation10 + $0x664] ss:$8 sps:$4 sm:$0xff]   ;;  %v1945_v23 = vpack.c.b16 %v7114_v60, %v7114_v60  ;;  %v5569_v60 = vld [vmem:[#allocation10 + $0x750] ss:$8 sps:$4 sm:$0xff]  }
 0x2bb   :  { %4094 = vmatprep.subr.bf16.mxu0 %v5493_v44  ;;  %v5565_v44 = vld [vmem:[#allocation10 + $0x764] ss:$8 sps:$4 sm:$0xff]  }
 0x2bd   :  { %4054 = vmatpush1.bf16.msra.mxu1 %v5488_v55  ;;  %v1977_v55 = vpack.c.b16 %v7132_v2, %v7132_v2  ;;  %v5575_v2 = vld [vmem:[#allocation10 + $0x740] ss:$8 sps:$4 sm:$0xff]  }
 0x2be   :  { %4095 = vmatpush1.bf16.msra.mxu0 %v5491_v10  ;;  %4055 = vmatprep.subr.bf16.mxu1 %v5496_v4  ;;  %v5560_v10 = vld [vmem:[#allocation10 + $0x660] ss:$8 sps:$4 sm:$0xff]   ;;  %v5568_v4 = vld [vmem:[#allocation10 + $0x654] ss:$8 sps:$4 sm:$0xff]  }
 0x2bf   :  { %4096 = vmatprep.subr.bf16.mxu0 %v5499_v18  ;;  %v5566_v18 = vld [vmem:[#allocation10 + $0x650] ss:$8 sps:$4 sm:$0xff]  }
 0x2c1   :  { %4056 = vmatpush1.bf16.msra.mxu1 %v5494_v7  ;;  %v5574_v7 = vld [vmem:[#allocation10 + $0x644] ss:$8 sps:$4 sm:$0xff]  }
 0x2c2   :  { %4097 = vmatpush1.bf16.msra.mxu0 %v5497_v24  ;;  %4057 = vmatprep.subr.bf16.mxu1 %v5502_v42  ;;  %v5577_v24 = vld [vmem:[#allocation10 + $0x744] ss:$8 sps:$4 sm:$0xff]   ;;  %v5572_v42 = vld [vmem:[#allocation10 + $0x640] ss:$8 sps:$4 sm:$0xff]  }
 0x2c3   :  { %4098 = vmatprep.subr.bf16.mxu0 %v5505_v58  ;;  %v5580_v58 = vld [vmem:[#allocation10 + $0x634] ss:$8 sps:$4 sm:$0xff]  }
 0x2c5   :  { %4058 = vmatpush1.bf16.msra.mxu1 %v5500_v5  ;;  %v5583_v5 = vld [vmem:[#allocation10 + $0x734] ss:$8 sps:$4 sm:$0xff]  }
 0x2c6   :  { %4099 = vmatpush1.bf16.msra.mxu0 %v5503_v14  ;;  %4059 = vmatprep.subr.bf16.mxu1 %v5508_v53  ;;  %v5578_v14 = vld [vmem:[#allocation10 + $0x630] ss:$8 sps:$4 sm:$0xff]  }
 0x2c7   :  { %4100 = vmatprep.subr.bf16.mxu0 %v5511_v41  ;;  %v5581_v53 = vld [vmem:[#allocation10 + $0x730] ss:$8 sps:$4 sm:$0xff]   ;;  %v5586_v41 = vld [vmem:[#allocation10 + $0x624] ss:$8 sps:$4 sm:$0xff]  }
 0x2c9   :  { %4060 = vmatpush2.bf16.msra.mxu1 %v5506_v51  ;;  %v5589_v51 = vld [vmem:[#allocation10 + $0x724] ss:$8 sps:$4 sm:$0xff]  }
 0x2ca   :  { %4101 = vmatpush2.bf16.msra.mxu0 %v5509_v1  ;;  %4061 = vmatprep.subr.bf16.mxu1 %v5514_v62  ;;  %v5584_v1 = vld [vmem:[#allocation10 + $0x620] ss:$8 sps:$4 sm:$0xff]  }
 0x2cb   :  { %4102 = vmatprep.subr.bf16.mxu0 %v5517_v46  ;;  %v5587_v62 = vld [vmem:[#allocation10 + $0x720] ss:$8 sps:$4 sm:$0xff]   ;;  %v5592_v46 = vld [vmem:[#allocation10 + $0x614] ss:$8 sps:$4 sm:$0xff]  }
 0x2cd   :  { %4062 = vmatpush2.bf16.msra.mxu1 %v5512_v15  ;;  %v5595_v15 = vld [vmem:[#allocation10 + $0x714] ss:$8 sps:$4 sm:$0xff]  }
 0x2ce   :  { %4103 = vmatpush2.bf16.msra.mxu0 %v5515_v54  ;;  %4063 = vmatprep.subr.bf16.mxu1 %v5520_v13  ;;  %v5590_v54 = vld [vmem:[#allocation10 + $0x610] ss:$8 sps:$4 sm:$0xff]  }
 0x2cf   :  { %4104 = vmatprep.subr.bf16.mxu0 %v5523_v31  ;;  %v5593_v13 = vld [vmem:[#allocation10 + $0x710] ss:$8 sps:$4 sm:$0xff]   ;;  %v5598_v31 = vld [vmem:[#allocation10 + $0x604] ss:$8 sps:$4 sm:$0xff]  }
 0x2d1   :  { %4064 = vmatpush2.bf16.msra.mxu1 %v5518_v48  ;;  %v5601_v48 = vld [vmem:[#allocation10 + $0x704] ss:$8 sps:$4 sm:$0xff]  }
 0x2d2   :  { %4105 = vmatpush2.bf16.msra.mxu0 %v5521_v25  ;;  %4065 = vmatprep.subr.bf16.mxu1 %v5526_v16  ;;  %v5596_v25 = vld [vmem:[#allocation10 + $0x600] ss:$8 sps:$4 sm:$0xff]  }
 0x2d3   :  { %4106 = vmatprep.subr.bf16.mxu0 %v5529_v21  ;;  %v5599_v16 = vld [vmem:[#allocation10 + $0x700] ss:$8 sps:$4 sm:$0xff]   ;;  %v5604_v21 = vld [vmem:[#allocation10 + $0x6f4] ss:$8 sps:$4 sm:$0xff]  }
 0x2d5   :  { %4066 = vmatpush2.bf16.msra.mxu1 %v5524_v26  ;;  %v5607_v26 = vld [vmem:[#allocation10 + $0x7f4] ss:$8 sps:$4 sm:$0xff]  }
 0x2d6   :  { %4107 = vmatpush2.bf16.msra.mxu0 %v5527_v47  ;;  %4067 = vmatprep.subr.bf16.mxu1 %v5532_v6  ;;  %v5602_v47 = vld [vmem:[#allocation10 + $0x6f0] ss:$8 sps:$4 sm:$0xff]  }
 0x2d7   :  { %4108 = vmatprep.subr.bf16.mxu0 %v5535_v36  ;;  %v5605_v6 = vld [vmem:[#allocation10 + $0x7f0] ss:$8 sps:$4 sm:$0xff]   ;;  %v5610_v36 = vld [vmem:[#allocation10 + $0x6e4] ss:$8 sps:$4 sm:$0xff]  }
 0x2d9   :  { %4068 = vmatpush2.bf16.msra.mxu1 %v5530_v20  ;;  %v5613_v20 = vld [vmem:[#allocation10 + $0x7e4] ss:$8 sps:$4 sm:$0xff]  }
 0x2da   :  { %4109 = vmatpush2.bf16.msra.mxu0 %v5533_v27  ;;  %4069 = vmatprep.subr.bf16.mxu1 %v5538_v35  ;;  %v5608_v27 = vld [vmem:[#allocation10 + $0x6e0] ss:$8 sps:$4 sm:$0xff]  }
 0x2db   :  { %4110 = vmatprep.subr.bf16.mxu0 %v5541_v29  ;;  %v5611_v35 = vld [vmem:[#allocation10 + $0x7e0] ss:$8 sps:$4 sm:$0xff]   ;;  %v5616_v29 = vld [vmem:[#allocation10 + $0x6d4] ss:$8 sps:$4 sm:$0xff]  }
 0x2dd   :  { %4070 = vmatpush2.bf16.msra.mxu1 %v5536_v38  ;;  %v5619_v38 = vld [vmem:[#allocation10 + $0x7d4] ss:$8 sps:$4 sm:$0xff]  }
 0x2de   :  { %4111 = vmatpush2.bf16.msra.mxu0 %v5539_v11  ;;  %4071 = vmatprep.subr.bf16.mxu1 %v5544_v50  ;;  %v5614_v11 = vld [vmem:[#allocation10 + $0x6d0] ss:$8 sps:$4 sm:$0xff]  }
 0x2df   :  { %4112 = vmatprep.subr.bf16.mxu0 %v5547_v34  ;;  %v5617_v50 = vld [vmem:[#allocation10 + $0x7d0] ss:$8 sps:$4 sm:$0xff]   ;;  %v5622_v34 = vld [vmem:[#allocation10 + $0x6c4] ss:$8 sps:$4 sm:$0xff]  }
 0x2e1   :  { %4072 = vmatpush2.bf16.msra.mxu1 %v5542_v17  ;;  %v5625_v17 = vld [vmem:[#allocation10 + $0x7c4] ss:$8 sps:$4 sm:$0xff]  }
 0x2e2   :  { %4113 = vmatpush2.bf16.msra.mxu0 %v5545_v8  ;;  %4073 = vmatprep.subr.bf16.mxu1 %v5550_v57  ;;  %v5620_v8 = vld [vmem:[#allocation10 + $0x6c0] ss:$8 sps:$4 sm:$0xff]  }
 0x2e3   :  { %4114 = vmatprep.subr.bf16.mxu0 %v5553_v63  ;;  %v5623_v57 = vld [vmem:[#allocation10 + $0x7c0] ss:$8 sps:$4 sm:$0xff]   ;;  %v5628_v63 = vld [vmem:[#allocation10 + $0x6b4] ss:$8 sps:$4 sm:$0xff]  }
 0x2e5   :  { %4074 = vmatpush2.bf16.msra.mxu1 %v5548_v30  ;;  %v5631_v30 = vld [vmem:[#allocation10 + $0x7b4] ss:$8 sps:$4 sm:$0xff]  }
 0x2e6   :  { %4115 = vmatpush2.bf16.msra.mxu0 %v5551_v3  ;;  %4125 = vmatprep.subr.bf16.mxu1 %v5556_v12  ;;  %v5626_v3 = vld [vmem:[#allocation10 + $0x6b0] ss:$8 sps:$4 sm:$0xff]  }
 0x2e7   :  { %4166 = vmatprep.subr.bf16.mxu0 %v5559_v40  ;;  %v5629_v12 = vld [vmem:[#allocation10 + $0x7b0] ss:$8 sps:$4 sm:$0xff]   ;;  %v5634_v40 = vld [vmem:[#allocation10 + $0x6a4] ss:$8 sps:$4 sm:$0xff]  }
 0x2e8   :  { %4076 = vmatmul.mubr.bf16.vlgmr.msra.gmra.mxu1 %v1865_v39  ;;  %v5632_v39 = vld [vmem:[#allocation10 + $0x6a0] ss:$8 sps:$4 sm:$0xff]  }
 0x2e9   :  { %4117 = vmatmul.mubr.bf16.vlgmr.msra.gmra.mxu0 %v1897_v59  ;;  %4126 = vmatpush1.bf16.msra.mxu1 %v5554_v19  ;;  %v5637_v19 = vld [vmem:[#allocation10 + $0x7a4] ss:$8 sps:$4 sm:$0xff]   ;;  %v5640_v59 = vld [vmem:[#allocation10 + $0x694] ss:$8 sps:$4 sm:$0xff]  }
 0x2ea   :  { %4157 = vmatprep.mubr.bf16.mxu1 %v1945_v23  ;;  %4167 = vmatpush1.bf16.msra.mxu0 %v5557_v32  ;;  %v5635_v32 = vld [vmem:[#allocation10 + $0x7a0] ss:$8 sps:$4 sm:$0xff]   ;;  %v5638_v23 = vld [vmem:[#allocation10 + $0x690] ss:$8 sps:$4 sm:$0xff]  }
 0x2eb   :  { %4198 = vmatprep.mubr.bf16.mxu0 %v1977_v55  ;;  %4127 = vmatprep.subr.bf16.mxu1 %v5562_v22  ;;  %v5643_v22 = vld [vmem:[#allocation10 + $0x794] ss:$8 sps:$4 sm:$0xff]   ;;  %v5646_v55 = vld [vmem:[#allocation10 + $0x684] ss:$8 sps:$4 sm:$0xff]  }
 0x2ec   :  { %4168 = vmatprep.subr.bf16.mxu0 %v5565_v44  ;;  %v5641_v44 = vld [vmem:[#allocation10 + $0x790] ss:$8 sps:$4 sm:$0xff]  }
 0x2ed   :  { %4128 = vmatpush1.bf16.msra.mxu1 %v5560_v10  ;;  %v5649_v10 = vld [vmem:[#allocation10 + $0x784] ss:$8 sps:$4 sm:$0xff]  }
 0x2ee   :  { %4169 = vmatpush1.bf16.msra.mxu0 %v5563_v33  ;;  %4129 = vmatprep.subr.bf16.mxu1 %v5568_v4  ;;  %v5644_v33 = vld [vmem:[#allocation10 + $0x680] ss:$8 sps:$4 sm:$0xff]  }
 0x2ef   :  { %4170 = vmatprep.subr.bf16.mxu0 %v5571_v52  ;;  %v5647_v4 = vld [vmem:[#allocation10 + $0x780] ss:$8 sps:$4 sm:$0xff]   ;;  %v5652_v52 = vld [vmem:[#allocation10 + $0x874] ss:$8 sps:$4 sm:$0xff]  }
 0x2f1   :  { %4130 = vmatpush1.bf16.msra.mxu1 %v5566_v18  ;;  %v2347_v18 = vld [vmem:[#allocation11] sm:$0x3] }
 0x2f2   :  { %4171 = vmatpush1.bf16.msra.mxu0 %v5569_v60  ;;  %4131 = vmatprep.subr.bf16.mxu1 %v5574_v7  ;;  %v5655_v60 = vld [vmem:[#allocation10 + $0x974] ss:$8 sps:$4 sm:$0xff]   ;;  %v5650_v7 = vld [vmem:[#allocation10 + $0x870] ss:$8 sps:$4 sm:$0xff]  }
 0x2f3   :  { %4172 = vmatprep.subr.bf16.mxu0 %v5577_v24  ;;  %v2352_v24 = vrot.slane %v2347_v18, %v319_v49  ;;  %v2025_v49 = vpack.c.b16 %v7160_v9, %v7160_v9 }
 0x2f5   :  { %4132 = vmatpush1.bf16.msra.mxu1 %v5572_v42  ;;  %v1929_v42 = vpack.c.b16 %v7153_v61, %v7153_v61  ;;  %v5656_v61 = vld [vmem:[#allocation10 + $0x860] ss:$8 sps:$4 sm:$0xff]  }
 0x2f6   :  { %4173 = vmatpush1.bf16.msra.mxu0 %v5575_v2  ;;  %4133 = vmatprep.subr.bf16.mxu1 %v5580_v58  ;;  %v5653_v2 = vld [vmem:[#allocation10 + $0x970] ss:$8 sps:$4 sm:$0xff]   ;;  %v1961_v58 = vpack.c.b16 %v7185_v37, %v7185_v37 }
 0x2f7   :  { %4174 = vmatprep.subr.bf16.mxu0 %v5583_v5  ;;  %v2356_v5 = vrot.slane %v2347_v18, %v387_v45  ;;  %v5716_v18 = vld [vmem:[#allocation10 + $0x890] ss:$8 sps:$4 sm:$0xff]  }
 0x2f9   :  { %4134 = vmatpush1.bf16.msra.mxu1 %v5578_v14  ;;  %v5658_v14 = vld [vmem:[#allocation10 + $0x864] ss:$8 sps:$4 sm:$0xff]  }
 0x2fa   :  { %4175 = vmatpush1.bf16.msra.mxu0 %v5581_v53  ;;  %4135 = vmatprep.subr.bf16.mxu1 %v5586_v41  ;;  %v5661_v53 = vld [vmem:[#allocation10 + $0x964] ss:$8 sps:$4 sm:$0xff]  }
 0x2fb   :  { %4176 = vmatprep.subr.bf16.mxu0 %v5589_v51 }
 0x2fd   :  { %4136 = vmatpush1.bf16.msra.mxu1 %v5584_v1 }
 0x2fe   :  { %4177 = vmatpush1.bf16.msra.mxu0 %v5587_v62  ;;  %4137 = vmatprep.subr.bf16.mxu1 %v5592_v46  ;;  %v5659_v46 = vld [vmem:[#allocation10 + $0x960] ss:$8 sps:$4 sm:$0xff]  }
 0x2ff   :  { %4178 = vmatprep.subr.bf16.mxu0 %v5595_v15  ;;  %v5664_v15 = vld [vmem:[#allocation10 + $0x854] ss:$8 sps:$4 sm:$0xff]  }
 0x301   :  { %4138 = vmatpush1.bf16.msra.mxu1 %v5590_v54  ;;  %v5667_v54 = vld [vmem:[#allocation10 + $0x954] ss:$8 sps:$4 sm:$0xff]  }
 0x302   :  { %4179 = vmatpush1.bf16.msra.mxu0 %v5593_v13  ;;  %4139 = vmatprep.subr.bf16.mxu1 %v5598_v31 }
 0x303   :  { %4180 = vmatprep.subr.bf16.mxu0 %v5601_v48  ;;  %v5662_v48 = vld [vmem:[#allocation10 + $0x850] ss:$8 sps:$4 sm:$0xff]  }
 0x305   :  { %4140 = vmatpush1.bf16.msra.mxu1 %v5596_v25 }
 0x306   :  { %4181 = vmatpush1.bf16.msra.mxu0 %v5599_v16  ;;  %4141 = vmatprep.subr.bf16.mxu1 %v5604_v21  ;;  %v5665_v21 = vld [vmem:[#allocation10 + $0x950] ss:$8 sps:$4 sm:$0xff]  }
 0x307   :  { %4182 = vmatprep.subr.bf16.mxu0 %v5607_v26  ;;  %v5670_v26 = vld [vmem:[#allocation10 + $0x844] ss:$8 sps:$4 sm:$0xff]  }
 0x309   :  { %4142 = vmatpush2.bf16.msra.mxu1 %v5602_v47  ;;  %v5673_v47 = vld [vmem:[#allocation10 + $0x944] ss:$8 sps:$4 sm:$0xff]  }
 0x30a   :  { %4183 = vmatpush2.bf16.msra.mxu0 %v5605_v6  ;;  %4143 = vmatprep.subr.bf16.mxu1 %v5610_v36  ;;  %v5668_v6 = vld [vmem:[#allocation10 + $0x840] ss:$8 sps:$4 sm:$0xff]  }
 0x30b   :  { %4184 = vmatprep.subr.bf16.mxu0 %v5613_v20  ;;  %v5671_v36 = vld [vmem:[#allocation10 + $0x940] ss:$8 sps:$4 sm:$0xff]   ;;  %v5676_v20 = vld [vmem:[#allocation10 + $0x834] ss:$8 sps:$4 sm:$0xff]  }
 0x30d   :  { %4144 = vmatpush2.bf16.msra.mxu1 %v5608_v27  ;;  %v5674_v27 = vld [vmem:[#allocation10 + $0x830] ss:$8 sps:$4 sm:$0xff]  }
 0x30e   :  { %4185 = vmatpush2.bf16.msra.mxu0 %v5611_v35  ;;  %4145 = vmatprep.subr.bf16.mxu1 %v5616_v29  ;;  %v5677_v35 = vld [vmem:[#allocation10 + $0x930] ss:$8 sps:$4 sm:$0xff]   ;;  %v5682_v29 = vld [vmem:[#allocation10 + $0x824] ss:$8 sps:$4 sm:$0xff]  }
 0x30f   :  { %4186 = vmatprep.subr.bf16.mxu0 %v5619_v38  ;;  %v5685_v38 = vld [vmem:[#allocation10 + $0x924] ss:$8 sps:$4 sm:$0xff]  }
 0x311   :  { %4146 = vmatpush2.bf16.msra.mxu1 %v5614_v11  ;;  %v5680_v11 = vld [vmem:[#allocation10 + $0x820] ss:$8 sps:$4 sm:$0xff]  }
 0x312   :  { %4187 = vmatpush2.bf16.msra.mxu0 %v5617_v50  ;;  %4147 = vmatprep.subr.bf16.mxu1 %v5622_v34  ;;  %v5683_v50 = vld [vmem:[#allocation10 + $0x920] ss:$8 sps:$4 sm:$0xff]   ;;  %v5688_v34 = vld [vmem:[#allocation10 + $0x814] ss:$8 sps:$4 sm:$0xff]  }
 0x313   :  { %4188 = vmatprep.subr.bf16.mxu0 %v5625_v17  ;;  %v5691_v17 = vld [vmem:[#allocation10 + $0x914] ss:$8 sps:$4 sm:$0xff]  }
 0x315   :  { %4148 = vmatpush2.bf16.msra.mxu1 %v5620_v8  ;;  %v5686_v8 = vld [vmem:[#allocation10 + $0x810] ss:$8 sps:$4 sm:$0xff]  }
 0x316   :  { %4189 = vmatpush2.bf16.msra.mxu0 %v5623_v57  ;;  %4149 = vmatprep.subr.bf16.mxu1 %v5628_v63  ;;  %v5689_v57 = vld [vmem:[#allocation10 + $0x910] ss:$8 sps:$4 sm:$0xff]   ;;  %v5694_v63 = vld [vmem:[#allocation10 + $0x804] ss:$8 sps:$4 sm:$0xff]  }
 0x317   :  { %4190 = vmatprep.subr.bf16.mxu0 %v5631_v30  ;;  %v5697_v30 = vld [vmem:[#allocation10 + $0x904] ss:$8 sps:$4 sm:$0xff]  }
 0x319   :  { %4150 = vmatpush2.bf16.msra.mxu1 %v5626_v3  ;;  %v5692_v3 = vld [vmem:[#allocation10 + $0x800] ss:$8 sps:$4 sm:$0xff]  }
 0x31a   :  { %4191 = vmatpush2.bf16.msra.mxu0 %v5629_v12  ;;  %4151 = vmatprep.subr.bf16.mxu1 %v5634_v40  ;;  %v5695_v12 = vld [vmem:[#allocation10 + $0x900] ss:$8 sps:$4 sm:$0xff]   ;;  %v5700_v40 = vld [vmem:[#allocation10 + $0x8f4] ss:$8 sps:$4 sm:$0xff]  }
 0x31b   :  { %4192 = vmatprep.subr.bf16.mxu0 %v5637_v19  ;;  %v5698_v19 = vld [vmem:[#allocation10 + $0x8f0] ss:$8 sps:$4 sm:$0xff]  }
 0x31d   :  { %4152 = vmatpush2.bf16.msra.mxu1 %v5632_v39  ;;  %v5703_v39 = vld [vmem:[#allocation10 + $0x8e4] ss:$8 sps:$4 sm:$0xff]  }
 0x31e   :  { %4193 = vmatpush2.bf16.msra.mxu0 %v5635_v32  ;;  %4153 = vmatprep.subr.bf16.mxu1 %v5640_v59  ;;  %v2041_v32 = vpack.c.b16 %v7174_v28, %v7174_v28  ;;  %v5701_v59 = vld [vmem:[#allocation10 + $0x8e0] ss:$8 sps:$4 sm:$0xff]   ;;  %v5718_v28 = vld [vmem:[#allocation10 + $0x894] ss:$8 sps:$4 sm:$0xff]  }
 0x31f   :  { %4194 = vmatprep.subr.bf16.mxu0 %v5643_v22  ;;  %v5706_v22 = vld [vmem:[#allocation10 + $0x8d4] ss:$8 sps:$4 sm:$0xff]  }
 0x321   :  { %4154 = vmatpush2.bf16.msra.mxu1 %v5638_v23  ;;  %v5704_v23 = vld [vmem:[#allocation10 + $0x8d0] ss:$8 sps:$4 sm:$0xff]  }
 0x322   :  { %4195 = vmatpush2.bf16.msra.mxu0 %v5641_v44  ;;  %4155 = vmatprep.subr.bf16.mxu1 %v5646_v55  ;;  %v5709_v44 = vld [vmem:[#allocation10 + $0x8c4] ss:$8 sps:$4 sm:$0xff]   ;;  %v5707_v55 = vld [vmem:[#allocation10 + $0x8c0] ss:$8 sps:$4 sm:$0xff]  }
 0x323   :  { %4196 = vmatprep.subr.bf16.mxu0 %v5649_v10  ;;  %v5712_v10 = vld [vmem:[#allocation10 + $0x8b4] ss:$8 sps:$4 sm:$0xff]  }
 0x325   :  { %4156 = vmatpush2.bf16.msra.mxu1 %v5644_v33  ;;  %v5710_v33 = vld [vmem:[#allocation10 + $0x8b0] ss:$8 sps:$4 sm:$0xff]  }
 0x326   :  { %4197 = vmatpush2.bf16.msra.mxu0 %v5647_v4  ;;  %4207 = vmatprep.subr.bf16.mxu1 %v5652_v52  ;;  %v5715_v4 = vld [vmem:[#allocation10 + $0x8a4] ss:$8 sps:$4 sm:$0xff]   ;;  %v5713_v52 = vld [vmem:[#allocation10 + $0x8a0] ss:$8 sps:$4 sm:$0xff]  }
 0x327   :  { %4248 = vmatprep.subr.bf16.mxu0 %v5655_v60  ;;  %v5721_v60 = vld [vmem:[#allocation10 + $0x884] ss:$8 sps:$4 sm:$0xff]  }
 0x328   :  { %4158 = vmatmul.mubr.bf16.vlgmr.msra.gmra.mxu1 %v1929_v42  ;;  %v3913_v41 = vpop.f32.mrf.mxu1 }
 0x329   :  { %v3954_v51 = vpop.f32.mrf.mxu0  ;;  %4199 = vmatmul.mubr.bf16.vlgmr.msra.gmra.mxu0 %v1961_v58  ;;  %v3914_v1 = vadd.f32 %v3913_v41, %v2352_v24  ;;  %4208 = vmatpush1.bf16.msra.mxu1 %v5650_v7  ;;  %v5719_v7 = vld [vmem:[#allocation10 + $0x880] ss:$8 sps:$4 sm:$0xff]   ;;  %v2009_v24 = vpack.c.b16 %v7182_v56, %v7182_v56  ;;  %v5725_v56 = vld [vmem:[#allocation13 + $0x30] sm:$0xff]  }
 0x32a   :  { %4239 = vmatprep.mubr.bf16.mxu1 %v2025_v49  ;;  %4249 = vmatpush1.bf16.msra.mxu0 %v5653_v2  ;;  %v3915_v62 = vpop.f32.mrf.mxu1 }
 0x32b   :  { %v3956_v37 = vpop.f32.mrf.mxu0  ;;  %v7213_v43 = vadd.f32 %v3954_v51, %v3914_v1  ;;  %v3916_v45 = vadd.f32 %v3915_v62, %v2356_v5  ;;  %4209 = vmatprep.subr.bf16.mxu1 %v5658_v14  ;;  %4250 = vmatprep.subr.bf16.mxu0 %v5661_v53 }
 0x32c   :  { %v3917_v13 = vpop.f32.mrf.mxu1  ;;  %4280 = vmatprep.mubr.bf16.mxu0 %v5998_v0  ;;  %v5679_v0 = vld [vmem:[#allocation10 + $0x934] ss:$8 sps:$4 sm:$0xff]  }
 0x32d   :  { %v3958_v31 = vpop.f32.mrf.mxu0  ;;  %v7216_v9 = vadd.f32 %v3956_v37, %v3916_v45  ;;  %4210 = vmatpush1.bf16.msra.mxu1 %v5656_v61  ;;  %v5722_v37 = vld [vmem:[#allocation13 + $0x78] sm:$0xff]   ;;  %v5726_v45 = vld [vmem:[#allocation13 + $0x68] sm:$0xff]   ;;  %v5729_v13 = vld [vmem:[#allocation13 + $0x20] sm:$0xff]  }
 0x32e   :  { %4251 = vmatpush1.bf16.msra.mxu0 %v5659_v46  ;;  %v3918_v25 = vpop.f32.mrf.mxu1  ;;  %4211 = vmatprep.subr.bf16.mxu1 %v5664_v15  ;;  %v5723_v46 = vld [vmem:[#allocation13 + $0x38] sm:$0xff]   ;;  %v5724_v15 = vld [vmem:[#allocation13 + $0x70] sm:$0xff]  }
 0x32f   :  { %v3959_v16 = vpop.f32.mrf.mxu0  ;;  %4252 = vmatprep.subr.bf16.mxu0 %v5667_v54  ;;  %v5728_v54 = vld [vmem:[#allocation13 + $0x60] sm:$0xff]   ;;  %v5730_v31 = vld [vmem:[#allocation13 + $0x58] sm:$0xff]  }
 0x331   :  { %4212 = vmatpush1.bf16.msra.mxu1 %v5662_v48 }
 0x332   :  { %4253 = vmatpush1.bf16.msra.mxu0 %v5665_v21  ;;  %4213 = vmatprep.subr.bf16.mxu1 %v5670_v26 }
 0x333   :  { %4254 = vmatprep.subr.bf16.mxu0 %v5673_v47 }
 0x335   :  { %4214 = vmatpush1.bf16.msra.mxu1 %v5668_v6 }
 0x336   :  { %4255 = vmatpush1.bf16.msra.mxu0 %v5671_v36  ;;  %4215 = vmatprep.subr.bf16.mxu1 %v5676_v20 }
 0x337   :  { %4256 = vmatprep.subr.bf16.mxu0 %v5679_v0 }
 0x339   :  { %4216 = vmatpush1.bf16.msra.mxu1 %v5674_v27 }
 0x33a   :  { %4257 = vmatpush1.bf16.msra.mxu0 %v5677_v35  ;;  %4217 = vmatprep.subr.bf16.mxu1 %v5682_v29  ;;  %v5732_v29 = vld [vmem:[#allocation13 + $0x50] sm:$0xff]  }
 0x33b   :  { %4258 = vmatprep.subr.bf16.mxu0 %v5685_v38  ;;  %v5733_v38 = vld [vmem:[#allocation13 + $0x10] sm:$0xff]  }
 0x33d   :  { %4218 = vmatpush1.bf16.msra.mxu1 %v5680_v11  ;;  %v5734_v11 = vld [vmem:[#allocation13 + $0x48] sm:$0xff]  }
 0x33e   :  { %4259 = vmatpush1.bf16.msra.mxu0 %v5683_v50  ;;  %4219 = vmatprep.subr.bf16.mxu1 %v5688_v34  ;;  %v5735_v50 = vld [vmem:[#allocation13 + $0x8] sm:$0xff]   ;;  %v5736_v34 = vld [vmem:[#allocation13 + $0x40] sm:$0xff]  }
 0x33f   :  { %4260 = vmatprep.subr.bf16.mxu0 %v5691_v17  ;;  %v5738_v17 = vld [vmem:[#allocation16 + $0x38] sm:$0xff]  }
 0x341   :  { %4220 = vmatpush1.bf16.msra.mxu1 %v5686_v8  ;;  %v5999_v8 = vmov 0.0  }
 0x342   :  { %4261 = vmatpush1.bf16.msra.mxu0 %v5689_v57  ;;  %4221 = vmatprep.subr.bf16.mxu1 %v5694_v63  ;;  %v5737_v57 = vld [vmem:[#allocation13] sm:$0xff]   ;;  %v5739_v63 = vld [vmem:[#allocation16 + $0x30] sm:$0xff]  }
 0x343   :  { %4262 = vmatprep.subr.bf16.mxu0 %v5697_v30  ;;  %v5740_v30 = vld [vmem:[#allocation16 + $0x28] sm:$0xff]  }
 0x345   :  { %4222 = vmatpush1.bf16.msra.mxu1 %v5692_v3  ;;  %v5741_v3 = vld [vmem:[#allocation16 + $0x20] sm:$0xff]  }
 0x346   :  { %4263 = vmatpush1.bf16.msra.mxu0 %v5695_v12  ;;  %4223 = vmatprep.subr.bf16.mxu1 %v5700_v40  ;;  %v5742_v12 = vld [vmem:[#allocation16 + $0x18] sm:$0xff]  }
 0x347   :  { %5214 = vmatprep.subr.bf16.mxu0 %v5999_v8 }
 0x349   :  { %4281 = vmatmul.mubr.bf16.vlgmr.msra.gmra.mxu0 %v2041_v32  ;;  %4224 = vmatpush2.bf16.msra.mxu1 %v5698_v19 }
 0x34a   :  { %4225 = vmatprep.subr.bf16.mxu1 %v5703_v39  ;;  %5215 = vmatpush3.bf16.msra.mxu0 %v5738_v17 }
 0x34b   :  { %5216 = vmatprep.subr.bf16.mxu0 %v5999_v8  ;;  %5230 = vmatprep.mubr.msk.bf16.mxu0 %vm6000_vm1, %v5999_v8 }
 0x34d   :  { %4226 = vmatpush2.bf16.msra.mxu1 %v5701_v59 }
 0x34e   :  { %4227 = vmatprep.subr.bf16.mxu1 %v5706_v22  ;;  %5217 = vmatpush3.bf16.msra.mxu0 %v5739_v63 }
 0x34f   :  { %5218 = vmatprep.subr.bf16.mxu0 %v5999_v8 }
 0x351   :  { %4228 = vmatpush2.bf16.msra.mxu1 %v5704_v23 }
 0x352   :  { %4229 = vmatprep.subr.bf16.mxu1 %v5709_v44  ;;  %5219 = vmatpush3.bf16.msra.mxu0 %v5740_v30 }
 0x353   :  { %5220 = vmatprep.subr.bf16.mxu0 %v5999_v8 }
 0x355   :  { %4230 = vmatpush2.bf16.msra.mxu1 %v5707_v55 }
 0x356   :  { %4231 = vmatprep.subr.bf16.mxu1 %v5712_v10  ;;  %5221 = vmatpush3.bf16.msra.mxu0 %v5741_v3 }
 0x357   :  { %5222 = vmatprep.subr.bf16.mxu0 %v5999_v8 }
 0x359   :  { %4232 = vmatpush2.bf16.msra.mxu1 %v5710_v33 }
 0x35a   :  { %4233 = vmatprep.subr.bf16.mxu1 %v5715_v4  ;;  %5223 = vmatpush3.bf16.msra.mxu0 %v5742_v12 }
 0x35b   :  { %5224 = vmatprep.subr.bf16.mxu0 %v5999_v8 }
 0x35d   :  { %4234 = vmatpush2.bf16.msra.mxu1 %v5713_v52 }
 0x35e   :  { %4235 = vmatprep.subr.bf16.mxu1 %v5718_v28 }
 0x361   :  { %4236 = vmatpush2.bf16.msra.mxu1 %v5716_v18 }
 0x362   :  { %4237 = vmatprep.subr.bf16.mxu1 %v5721_v60 }
 0x365   :  { %4238 = vmatpush2.bf16.msra.mxu1 %v5719_v7 }
 0x366   :  { %5087 = vmatprep.subr.bf16.mxu1 %v5722_v37  ;;  %v5745_v37 = vld [vmem:[#allocation16] sm:$0xff]  }
 0x368   :  { %v3995_v42 = vpop.f32.mrf.mxu1  ;;  %4240 = vmatmul.mubr.bf16.vlgmr.msra.gmra.mxu1 %v2009_v24 }
 0x369   :  { %v3996_v2 = vadd.f32 %v3995_v42, %v7213_v43  ;;  %v4036_v58 = vpop.f32.mrf.mxu0  ;;  %5088 = vmatpush3.bf16.msra.mxu1 %v5723_v46  ;;  %v5727_v43 = vld [vmem:[#allocation13 + $0x28] sm:$0xff]  }
 0x36a   :  { %v3997_v5 = vpop.f32.mrf.mxu1  ;;  %5089 = vmatprep.subr.bf16.mxu1 %v5724_v15  ;;  %v4989_v15 = vld [vmem:[#allocation14] ss:$0 sm:$0xff] }
 0x36b   :  { %v4037_v14 = vadd.f32 %v4036_v58, %v3996_v2  ;;  %v3998_v53 = vadd.f32 %v3997_v5, %v7216_v9  ;;  %v4038_v41 = vpop.f32.mrf.mxu0  ;;  %v5731_v9 = vld [vmem:[#allocation13 + $0x18] sm:$0xff]  }
 0x36c   :  { %v3999_v51 = vpop.f32.mrf.mxu1 }
 0x36d   :  { %v4039_v49 = vadd.f32 %v4038_v41, %v3998_v53  ;;  %v4040_v1 = vpop.f32.mrf.mxu0  ;;  %5090 = vmatpush3.bf16.msra.mxu1 %v5725_v56 }
 0x36e   :  { %v4000_v61 = vpop.f32.mrf.mxu1  ;;  %5091 = vmatprep.subr.bf16.mxu1 %v5726_v45 }
 0x36f   :  { %v4041_v62 = vpop.f32.mrf.mxu0  ;;  %v5743_v61 = vld [vmem:[#allocation16 + $0x10] sm:$0xff]  }
 0x370   :  { %5225 = vmatpush3.bf16.msra.mxu0 %v5743_v61  ;;  %v5744_v62 = vld [vmem:[#allocation16 + $0x8] sm:$0xff]  }
 0x371   :  { %5092 = vmatpush3.bf16.msra.mxu1 %v5727_v43  ;;  %5226 = vmatprep.subr.bf16.mxu0 %v5999_v8 }
 0x372   :  { %5093 = vmatprep.subr.bf16.mxu1 %v5728_v54 }
 0x374   :  { %5227 = vmatpush3.bf16.msra.mxu0 %v5744_v62 }
 0x375   :  { %5094 = vmatpush3.bf16.msra.mxu1 %v5729_v13  ;;  %5228 = vmatprep.subr.bf16.mxu0 %v5999_v8 }
 0x376   :  { %5095 = vmatprep.subr.bf16.mxu1 %v5730_v31 }
 0x378   :  { %5229 = vmatpush3.bf16.msra.mxu0 %v5745_v37 }
 0x379   :  { %5096 = vmatpush3.bf16.msra.mxu1 %v5731_v9 }
 0x37a   :  { %5097 = vmatprep.subr.bf16.mxu1 %v5732_v29 }
 0x37d   :  { %5098 = vmatpush3.bf16.msra.mxu1 %v5733_v38 }
 0x37e   :  { %5099 = vmatprep.subr.bf16.mxu1 %v5734_v11 }
 0x381   :  { %5100 = vmatpush3.bf16.msra.mxu1 %v5735_v50 }
 0x382   :  { %5101 = vmatprep.subr.bf16.mxu1 %v5736_v34 }
 0x385   :  { %5102 = vmatpush3.bf16.msra.mxu1 %v5737_v57 }
 0x3a8   :  { %v4077_v48 = vpop.f32.mrf.mxu1 }
 0x3a9   :  { %v4078_v25 = vadd.f32 %v4077_v48, %v4037_v14  ;;  %v4118_v16 = vpop.f32.mrf.mxu0  ;;  %v5006_v48 = vld [vmem:[#allocation17] ss:$0 sm:$0xff] }
 0x3aa   :  { %v4079_v21 = vpop.f32.mrf.mxu1 }
 0x3ab   :  { %v4119_v26 = vadd.f32 %v4118_v16, %v4078_v25  ;;  %v4080_v47 = vadd.f32 %v4079_v21, %v4039_v49  ;;  %v4120_v6 = vpop.f32.mrf.mxu0 }
 0x3ac   :  { %v4081_v36 = vpop.f32.mrf.mxu1 }
 0x3ad   :  { %v4121_v20 = vadd.f32 %v4120_v6, %v4080_v47  ;;  %v4122_v0 = vpop.f32.mrf.mxu0 }
 0x3ae   :  { %v4082_v27 = vpop.f32.mrf.mxu1 }
 0x3af   :  { %v4123_v35 = vpop.f32.mrf.mxu0 }
 0x3e8   :  { %v4159_v40 = vpop.f32.mrf.mxu1 }
 0x3e9   :  { %v4160_v19 = vadd.f32 %v4159_v40, %v4119_v26  ;;  %v4200_v39 = vpop.f32.mrf.mxu0 }
 0x3ea   :  { %v4161_v32 = vpop.f32.mrf.mxu1 }
 0x3eb   :  { %v4201_v59 = vadd.f32 %v4200_v39, %v4160_v19  ;;  %v4202_v22 = vpop.f32.mrf.mxu0  ;;  %v4162_v18 = vadd.f32 %v4161_v32, %v4121_v20 }
 0x3ec   :  { %v4163_v23 = vpop.f32.mrf.mxu1 }
 0x3ed   :  { %v4204_v44 = vpop.f32.mrf.mxu0  ;;  %v4203_v7 = vadd.f32 %v4202_v22, %v4162_v18 }
 0x3ee   :  { %v4164_v55 = vpop.f32.mrf.mxu1 }
 0x3ef   :  { %v4205_v10 = vpop.f32.mrf.mxu0 }
 0x409   :  { %v4282_v33 = vpop.f32.mrf.mxu0 }
 0x40b   :  { %v4284_v4 = vpop.f32.mrf.mxu0 }
 0x40d   :  { %v4286_v52 = vpop.f32.mrf.mxu0 }
 0x40f   :  { %v4287_v28 = vpop.f32.mrf.mxu0 }
 0x428   :  { %v4241_v60 = vpop.f32.mrf.mxu1 }
 0x429   :  { %v4242_v24 = vadd.f32 %v4241_v60, %v4201_v59 }
 0x42a   :  { %v4243_v42 = vpop.f32.mrf.mxu1 }
 0x42b   :  { %v4283_v2 = vadd.f32 %v4282_v33, %v4242_v24  ;;  %v4244_v58 = vadd.f32 %v4243_v42, %v4203_v7 }
 0x42c   :  { %v4245_v5 = vpop.f32.mrf.mxu1 }
 0x42d   :  { %v4285_v14 = vadd.f32 %v4284_v4, %v4244_v58  ;;  %v4289_v53 = vmax.f32 %v4283_v2, 0.0 }
 0x42e   :  { %v4246_v41 = vpop.f32.mrf.mxu1 }
 0x42f   :  { %v4290_v51 = vmax.f32 %v4285_v14, 0.0  ;;  %v4291_v1 = vpack.c.bf16 %v4289_v53, %v4289_v53 }
 0x431   :  { %v4292_v49 = vpack.c.bf16 %v4290_v51, %v4290_v51 }
 0x433   :  { %4460 = vmatprep.mubr.bf16.mxu1 %v4292_v49 }
 0x434   :  { %4461 = vmatmul.mubr.bf16.vlgmr.msra.gmra.mxu1 %v4291_v1 }
 0x4f4   :  { %v5103_v46 = vpop.f32.mrf.mxu1 }
 0x4f6   :  { %v5104_v56 = vpop.f32.mrf.mxu1 }
 0x4f7   :  { %v5105_v45 = vadd.f32 %v5104_v56, %v5103_v46 }
 0x4f8   :  { %v5106_v43 = vpop.f32.mrf.mxu1 }
 0x4f9   :  { %v4463_v54 = vadd.f32 %v5105_v45, %v4989_v15 }
 0x4fa   :  { %v5107_v13 = vpop.f32.mrf.mxu1 }
 0x4fb   :  { %v4468_v31 = vmax.f32 %v4463_v54, 0.0 }
 0x4fd   :  { %v4469_v9 = vpack.c.bf16 %v4468_v31, %v4468_v31 }
 0x4ff   :  { %5231 = vmatmul.mubr.bf16.vlgmr.msra.gmra.mxu0 %v4469_v9 }
 0x5bf   :  { %v4575_v25 = vpop.f32.mrf.mxu0 }
 0x5c0   :  { %v4576_v16 = vadd.f32 %v5006_v48, %v4575_v25 }
 0x5c1   :  { %v5232_v21 = vpop.f32.mrf.mxu0 }
 0x5c2   :  { %4581 = vmax.xlane.f32.xlu0 %v4576_v16 }
 0x5c3   :  { %v4578_v26 = vpop.f32.mrf.mxu0 }
 0x5c5   :  { %v5233_v47 = vpop.f32.mrf.mxu0 }
 0x64b   :  { %v4582_v6 = vpop.xlane.xlu0 %4581 }
 0x64c   :  { %v4583_v36 = vsub.f32 %v4576_v16, %v4582_v6 }
 0x64e   :  { %v4584_v20 = vmul.f32 1.442695, %v4583_v36 }
 0x650   :  { %5746 = vpow2.f32 %v4584_v20 }
 0x65d   :  { %v5747_v0 = vpop.eup %5746 }
 0x65e   :  { %4586 = vadd.xlane.f32.xlu1 %v5747_v0 }
 0x6e7   :  { %v4587_v27 = vpop.xlane.xlu1 %4586 }
 0x6e8   :  { %5748 = vrcp.f32 %v4587_v27 }
 0x6f5   :  { %v5749_v35 = vpop.eup %5748 }
 0x6f6   :  { %v4589_v29 = vmul.f32 %v5749_v35, %v5747_v0 }
 0x6f8   :  { %4590 = vst [vmem:[#allocation19] sm:$0xff] %v4589_v29 }
 0x6f9   :  { %5961 = shalt.err (!%p5958_p12)
}
 0x6fa   :  { %4600 = dma.vmem_to_hbm [thread:$0]  %s4598_s29, 128, %s7238_s11, [#allocation4]  }
 0x6fb   :  { %5982 = dma.done.wait [#allocation4], 128  }
 0x6fc   :  { %5983 = vsyncadd [#allocation4], 4294967168 }
 0x6fd   :  { %4604 = vsyncpa [#allocation3], 1 }
 0x6fe   :  { %4605 = vsyncpa [#allocation6], 1 }
 0x6ff   :  { %4606 = vsyncpa [#allocation9], 1 }
 0x700   :  { %4607 = vsyncpa [#allocation12], 1 }
 0x701   :  { %4608 = vsyncpa [#allocation15], 1 }
 0x702   :  { %4609 = vsyncpa [#allocation18], 1 }
 0x703   :  { %4610 = vsyncpa [#allocation4], 1 }

</bundles_post_ra>
